<compile_context>
chip_gen: v6e
topology: v6e:2x2x1
jax: 0.10.0
libtpu: 0.0.40
codegen_flags: <defaults>
</compile_context>

<pallas_src>
import math
import jax
import jax.numpy as jnp
from jax.experimental import pallas as pl
from jax.experimental.pallas import tpu as pltpu

# ----------------------------- small config ---------------------------------
B = 2           # batch
S = 8           # sequence length
VOCAB = 100     # vocab for the encoder substitute
D_ENC = 64      # stand-in for 768 (encoder hidden size)
D_MID = 48      # stand-in for 512 (ffn intermediate)
D_MODEL = 32    # text_feature_dim (stand-in for 512), AdditiveAttention input_dim
NHEAD = 4
DH = D_MODEL // NHEAD
D_FF = 64       # stand-in for 2048 (transformer dim_feedforward)
ATT_HID = 64    # stand-in for 1024 (AdditiveAttention hidden_dim)
NUM_LAYERS = 2
LN_EPS = 1e-5

VMEM_SPEC = pl.BlockSpec(memory_space=pltpu.MemorySpace.VMEM)
NUM_KERNEL_INPUTS = 1 + 4 + 12 + 4   # x, ffn, stacked layer tensors, additive attn


# ----------------------------- kernel helpers --------------------------------
def _mish(x):
    # mish(x) = x * tanh(softplus(x)), softplus with overflow guard (PyTorch thr=20)
    sp = jnp.where(x > 20.0, x, jnp.log1p(jnp.exp(jnp.minimum(x, 20.0))))
    return x * jnp.tanh(sp)


def _layer_norm(x, gamma, beta):
    mu = jnp.mean(x, axis=-1, keepdims=True)
    var = jnp.mean((x - mu) ** 2, axis=-1, keepdims=True)
    return (x - mu) * jax.lax.rsqrt(var + LN_EPS) * gamma + beta


def _softmax_lastdim(s):
    # softmax over the (lane) last axis; divide -> EUP reciprocal (approx)
    s = s - jnp.max(s, axis=-1, keepdims=True)
    p = jnp.exp(s)
    return p * pl.reciprocal(jnp.sum(p, axis=-1, keepdims=True), approx=True)


# ----------------------------- fused Pallas kernel ----------------------------
def query_encoder_kernel(
        x_ref,                                              # [B*S, D_ENC]
        w1_ref, b1_ref, w2_ref, b2_ref,                     # ffn
        wqkv_ref, bqkv_ref,                                 # [L, D, 3D] / [L, 1, 3D]
        wo_ref, bo_ref,                                     # [L, D, D] / [L, 1, D]
        g1_ref, be1_ref, wf1_ref, bf1_ref,
        wf2_ref, bf2_ref, g2_ref, be2_ref,                  # per-layer FF / LN
        wa_ref, ba_ref, we_ref, bea_ref,                    # additive attention
        o_ref,                                              # [B, D_MODEL]
        qkv_scr,                                            # VMEM [B*S, 3*D_MODEL]
        hd_scr,                                             # VMEM [3*NHEAD, B*S, DH]
        om_scr):                                            # VMEM [B*S, D_MODEL]

    # ---------------- ffn: Linear -> Mish -> Linear -> Mish -------------------
    x = x_ref[...]                                          # [B*S, D_ENC]
    h = _mish(jnp.dot(x, w1_ref[...], preferred_element_type=jnp.float32) + b1_ref[...])
    xf = _mish(jnp.dot(h, w2_ref[...], preferred_element_type=jnp.float32) + b2_ref[...])
    # xf: [B*S, D_MODEL]

    # -------- 2 x TransformerEncoderLayer (post-norm, NHEAD heads, ReLU FF) ---
    for l in range(NUM_LAYERS):                             # static unroll (L=2)
        # One packed, lane-dense QKV projection.  Column order is
        # [q heads | k heads | v heads]; the 1/sqrt(DH) scale is already folded
        # into the Wq / bq columns at pack time.
        qkv_scr[...] = (jnp.dot(xf, wqkv_ref[l], preferred_element_type=jnp.float32)
                        + bqkv_ref[l])                      # [B*S, 3*D_MODEL]

        # Head split: feature-axis -> batch-axis relayout, realized through a
        # small VMEM scratch with window reads / full stores only.
        for i in range(3 * NHEAD):
            hd_scr[i] = qkv_scr[:, pl.ds(i * DH, DH)]
        allh = hd_scr[...]                                  # [3*NHEAD, B*S, DH]
        qh = allh[0 * NHEAD:1 * NHEAD].reshape(NHEAD * B, S, DH)
        kh = allh[1 * NHEAD:2 * NHEAD].reshape(NHEAD * B, S, DH)
        vh = allh[2 * NHEAD:3 * NHEAD].reshape(NHEAD * B, S, DH)

        # Batched attention over g = (head, batch).
        s = jnp.einsum('gqd,gkd->gqk', qh, kh,
                       preferred_element_type=jnp.float32)  # scale pre-folded
        p = _softmax_lastdim(s)
        oh = jnp.einsum('gqk,gkd->gqd', p, vh,
                        preferred_element_type=jnp.float32)  # [NHEAD*B, S, DH]

        # Head merge (== torch.cat(heads, -1)) back to the feature axis, then
        # ONE full-contraction (K = D_MODEL) output projection.
        oh3 = oh.reshape(NHEAD, B * S, DH)
        for hd in range(NHEAD):
            om_scr[:, pl.ds(hd * DH, DH)] = oh3[hd]
        attn_out = (jnp.dot(om_scr[...], wo_ref[l], preferred_element_type=jnp.float32)
                    + bo_ref[l])                             # [B*S, D_MODEL]

        # Post-norm residual blocks.
        y = _layer_norm(xf + attn_out, g1_ref[l], be1_ref[l])
        ff = jnp.maximum(
            jnp.dot(y, wf1_ref[l], preferred_element_type=jnp.float32) + bf1_ref[l],
            0.0)
        ff = jnp.dot(ff, wf2_ref[l], preferred_element_type=jnp.float32) + bf2_ref[l]
        xf = _layer_norm(y + ff, g2_ref[l], be2_ref[l])

    # ---------------- AdditiveAttention -> context Qv [B, D_MODEL] ------------
    t = jnp.tanh(jnp.dot(xf, wa_ref[...], preferred_element_type=jnp.float32)
                 + ba_ref[...])                              # [B*S, ATT_HID]
    t3 = t.reshape(B, S, ATT_HID)
    we_b = jnp.broadcast_to(we_ref[...].reshape(1, 1, ATT_HID), (B, 1, ATT_HID))
    # energy lane-dense: [B, 1, S] with the sequence on the lane axis
    energy = jnp.einsum('bqa,bsa->bqs', we_b, t3,
                        preferred_element_type=jnp.float32) + bea_ref[...]
    w = _softmax_lastdim(energy)                             # [B, 1, S]
    x3 = xf.reshape(B, S, D_MODEL)
    ctx = jnp.einsum('bqs,bsd->bqd', w, x3,
                     preferred_element_type=jnp.float32)     # bmm, [B, 1, D]
    # NOTE: [B, D_MODEL] = [2, 32] output is lane-sparse at toy dims (masked
    # vst); negligible here, lane-dense at real D_MODEL=512.
    o_ref[...] = ctx.reshape(B, D_MODEL)


# ----------------------------- parameters -------------------------------------
def init_params(key):
    ks = jax.random.split(key, 40)

    def w(k, shape, scale=0.05):
        return jax.random.normal(k, shape, jnp.float32) * scale

    params = {'emb': w(ks[0], (VOCAB, D_ENC), 0.1)}
    params['ffn'] = dict(
        w1=w(ks[1], (D_ENC, D_MID)), b1=w(ks[2], (D_MID,)),
        w2=w(ks[3], (D_MID, D_MODEL)), b2=w(ks[4], (D_MODEL,)))

    layers, idx = [], 5
    for _ in range(NUM_LAYERS):
        layers.append(dict(
            wq=w(ks[idx + 0], (D_MODEL, D_MODEL)),
            wk=w(ks[idx + 1], (D_MODEL, D_MODEL)),
            wv=w(ks[idx + 2], (D_MODEL, D_MODEL)),
            bq=w(ks[idx + 3], (D_MODEL,)),
            bk=w(ks[idx + 4], (D_MODEL,)),
            bv=w(ks[idx + 5], (D_MODEL,)),
            wo=w(ks[idx + 6], (D_MODEL, D_MODEL)),
            bo=w(ks[idx + 7], (D_MODEL,)),
            g1=jnp.ones((D_MODEL,), jnp.float32),
            be1=jnp.zeros((D_MODEL,), jnp.float32),
            wf1=w(ks[idx + 8], (D_MODEL, D_FF)),
            bf1=w(ks[idx + 9], (D_FF,)),
            wf2=w(ks[idx + 10], (D_FF, D_MODEL)),
            bf2=w(ks[idx + 11], (D_MODEL,)),
            g2=jnp.ones((D_MODEL,), jnp.float32),
            be2=jnp.zeros((D_MODEL,), jnp.float32)))
        idx += 12
    params['layers'] = layers
    params['attn'] = dict(
        wa=w(ks[idx + 0], (D_MODEL, ATT_HID)), ba=w(ks[idx + 1], (ATT_HID,)),
        we=w(ks[idx + 2], (ATT_HID,)), be=w(ks[idx + 3], (1, 1)))
    return params


def pack_params(params):
    """ONE-TIME packing, called outside the jitted forward (review item:
    hoist weight repacking out of the per-call path).

      * Wqkv = [Wq*scale | Wk | Wv]  -> [L, D_MODEL, 3*D_MODEL]
      * bqkv = [bq*scale | bk | bv]  -> [L, 1, 3*D_MODEL]
      * attention scale 1/sqrt(DH) folded into the Wq/bq columns
      * all per-layer tensors stacked over a leading L dim
    """
    scale = 1.0 / math.sqrt(DH)
    f, a = params['ffn'], params['attn']

    def r1(v):
        return v.reshape(1, -1)

    keys = ('wqkv', 'bqkv', 'wo', 'bo', 'g1', 'be1',
            'wf1', 'bf1', 'wf2', 'bf2', 'g2', 'be2')
    per = {k: [] for k in keys}
    for lp in params['layers']:
        per['wqkv'].append(jnp.concatenate([lp['wq'] * scale, lp['wk'], lp['wv']], axis=1))
        per['bqkv'].append(r1(jnp.concatenate([lp['bq'] * scale, lp['bk'], lp['bv']], axis=0)))
        per['wo'].append(lp['wo']);   per['bo'].append(r1(lp['bo']))
        per['g1'].append(r1(lp['g1'])); per['be1'].append(r1(lp['be1']))
        per['wf1'].append(lp['wf1']); per['bf1'].append(r1(lp['bf1']))
        per['wf2'].append(lp['wf2']); per['bf2'].append(r1(lp['bf2']))
        per['g2'].append(r1(lp['g2'])); per['be2'].append(r1(lp['be2']))
    stk = {k: jnp.stack(v, axis=0) for k, v in per.items()}

    args = (f['w1'], r1(f['b1']), f['w2'], r1(f['b2']),
            stk['wqkv'], stk['bqkv'], stk['wo'], stk['bo'],
            stk['g1'], stk['be1'], stk['wf1'], stk['bf1'],
            stk['wf2'], stk['bf2'], stk['g2'], stk['be2'],
            a['wa'], r1(a['ba']), r1(a['we']), a['be'].reshape(1, 1))
    assert len(args) == NUM_KERNEL_INPUTS - 1
    return {'emb': params['emb'], 'args': args}


# ----------------------------- forward -----------------------------------------
def query_encoder_forward(input_ids, packed):
    # Encoder substitute (plain-JAX glue): embedding lookup -> last_hidden_state.
    hidden = jnp.take(packed['emb'], input_ids, axis=0)          # [B, S, D_ENC]
    x2d = hidden.reshape(B * S, D_ENC)                           # reshape in wrapper (free)

    # Single fused kernel: whole forward in one pallas_call, everything in VMEM.
    qv = pl.pallas_call(
        query_encoder_kernel,
        out_shape=jax.ShapeDtypeStruct((B, D_MODEL), jnp.float32),
        in_specs=[VMEM_SPEC] * NUM_KERNEL_INPUTS,
        out_specs=VMEM_SPEC,
        scratch_shapes=[
            pltpu.VMEM((B * S, 3 * D_MODEL), jnp.float32),   # packed qkv
            pltpu.VMEM((3 * NHEAD, B * S, DH), jnp.float32),  # head-split relayout
            pltpu.VMEM((B * S, D_MODEL), jnp.float32),        # head-merge relayout
        ],
        compiler_params=pltpu.CompilerParams(
            # Explicit scoped-VMEM budget (defaults: 16 MiB v5e / 32 MiB v6e,v7x);
            # resize to the real working set at production dims.
            vmem_limit_bytes=32 * 1024 * 1024),
    )(x2d, *packed['args'])
    return qv                                                    # [B, D_MODEL]


if __name__ == "__main__":
    key = jax.random.PRNGKey(0)
    k_ids, k_params = jax.random.split(key)
    input_ids = jax.random.randint(k_ids, (B, S), 0, VOCAB, dtype=jnp.int32)

    params = init_params(k_params)
    packed = pack_params(params)          # one-time packing, outside the jit

    fwd = jax.jit(query_encoder_forward)
    qv = jax.block_until_ready(fwd(input_ids, packed))

    assert qv.shape == (B, D_MODEL) and qv.dtype == jnp.float32
    assert bool(jnp.all(jnp.isfinite(qv)))
    print("KERNEL_OK")
</pallas_src>

<mosaic_0001>
module attributes {stable_mosaic.version = 11 : i64} {
  func.func @query_encoder_kernel(%arg0: memref<16x64xf32, #tpu.memory_space<vmem>>, %arg1: memref<64x48xf32, #tpu.memory_space<vmem>>, %arg2: memref<1x48xf32, #tpu.memory_space<vmem>>, %arg3: memref<48x32xf32, #tpu.memory_space<vmem>>, %arg4: memref<1x32xf32, #tpu.memory_space<vmem>>, %arg5: memref<2x32x96xf32, #tpu.memory_space<vmem>>, %arg6: memref<2x1x96xf32, #tpu.memory_space<vmem>>, %arg7: memref<2x32x32xf32, #tpu.memory_space<vmem>>, %arg8: memref<2x1x32xf32, #tpu.memory_space<vmem>>, %arg9: memref<2x1x32xf32, #tpu.memory_space<vmem>>, %arg10: memref<2x1x32xf32, #tpu.memory_space<vmem>>, %arg11: memref<2x32x64xf32, #tpu.memory_space<vmem>>, %arg12: memref<2x1x64xf32, #tpu.memory_space<vmem>>, %arg13: memref<2x64x32xf32, #tpu.memory_space<vmem>>, %arg14: memref<2x1x32xf32, #tpu.memory_space<vmem>>, %arg15: memref<2x1x32xf32, #tpu.memory_space<vmem>>, %arg16: memref<2x1x32xf32, #tpu.memory_space<vmem>>, %arg17: memref<32x64xf32, #tpu.memory_space<vmem>>, %arg18: memref<1x64xf32, #tpu.memory_space<vmem>>, %arg19: memref<1x64xf32, #tpu.memory_space<vmem>>, %arg20: memref<1x1xf32, #tpu.memory_space<vmem>>, %arg21: memref<2x32xf32, #tpu.memory_space<vmem>>, %arg22: memref<16x96xf32, #tpu.memory_space<vmem>>, %arg23: memref<12x16x8xf32, #tpu.memory_space<vmem>>, %arg24: memref<16x32xf32, #tpu.memory_space<vmem>>) attributes {dimension_semantics = [], scalar_prefetch = 0 : i64, scratch_operands = 3 : i64, tpu.core_type = #tpu.core_type<tc>} {
    %c0 = arith.constant 0 : index
    %c0_0 = arith.constant 0 : index
    %0 = vector.load %arg0[%c0, %c0_0] : memref<16x64xf32, #tpu.memory_space<vmem>>, vector<16x64xf32>
    %c0_1 = arith.constant 0 : index
    %c0_2 = arith.constant 0 : index
    %1 = vector.load %arg1[%c0_1, %c0_2] : memref<64x48xf32, #tpu.memory_space<vmem>>, vector<64x48xf32>
    %cst = arith.constant dense<0.000000e+00> : vector<16x48xf32>
    %2 = tpu.matmul %0, %1, %cst {dimension_numbers = #tpu.dot_dimension_numbers<[1], [0], [0], [1], [0, 0, 1, 1], [], []>} : vector<16x64xf32>, vector<64x48xf32>, vector<16x48xf32> -> vector<16x48xf32>
    %c0_3 = arith.constant 0 : index
    %c0_4 = arith.constant 0 : index
    %3 = vector.load %arg2[%c0_3, %c0_4] : memref<1x48xf32, #tpu.memory_space<vmem>>, vector<1x48xf32>
    %4 = vector.broadcast %3 : vector<1x48xf32> to vector<16x48xf32>
    %5 = arith.addf %2, %4 : vector<16x48xf32>
    %cst_5 = arith.constant 2.000000e+01 : f32
    %6 = vector.broadcast %cst_5 : f32 to vector<16x48xf32>
    %7 = arith.cmpf ogt, %5, %6 : vector<16x48xf32>
    %cst_6 = arith.constant 2.000000e+01 : f32
    %8 = vector.broadcast %cst_6 : f32 to vector<16x48xf32>
    %9 = arith.minimumf %5, %8 : vector<16x48xf32>
    %10 = math.exp %9 : vector<16x48xf32>
    %11 = math.log1p %10 : vector<16x48xf32>
    %12 = arith.select %7, %5, %11 : vector<16x48xi1>, vector<16x48xf32>
    %13 = math.tanh %12 : vector<16x48xf32>
    %14 = arith.mulf %5, %13 : vector<16x48xf32>
    %c0_7 = arith.constant 0 : index
    %c0_8 = arith.constant 0 : index
    %15 = vector.load %arg3[%c0_7, %c0_8] : memref<48x32xf32, #tpu.memory_space<vmem>>, vector<48x32xf32>
    %cst_9 = arith.constant dense<0.000000e+00> : vector<16x32xf32>
    %16 = tpu.matmul %14, %15, %cst_9 {dimension_numbers = #tpu.dot_dimension_numbers<[1], [0], [0], [1], [0, 0, 1, 1], [], []>} : vector<16x48xf32>, vector<48x32xf32>, vector<16x32xf32> -> vector<16x32xf32>
    %c0_10 = arith.constant 0 : index
    %c0_11 = arith.constant 0 : index
    %17 = vector.load %arg4[%c0_10, %c0_11] : memref<1x32xf32, #tpu.memory_space<vmem>>, vector<1x32xf32>
    %18 = vector.broadcast %17 : vector<1x32xf32> to vector<16x32xf32>
    %19 = arith.addf %16, %18 : vector<16x32xf32>
    %cst_12 = arith.constant 2.000000e+01 : f32
    %20 = vector.broadcast %cst_12 : f32 to vector<16x32xf32>
    %21 = arith.cmpf ogt, %19, %20 : vector<16x32xf32>
    %cst_13 = arith.constant 2.000000e+01 : f32
    %22 = vector.broadcast %cst_13 : f32 to vector<16x32xf32>
    %23 = arith.minimumf %19, %22 : vector<16x32xf32>
    %24 = math.exp %23 : vector<16x32xf32>
    %25 = math.log1p %24 : vector<16x32xf32>
    %26 = arith.select %21, %19, %25 : vector<16x32xi1>, vector<16x32xf32>
    %27 = math.tanh %26 : vector<16x32xf32>
    %28 = arith.mulf %19, %27 : vector<16x32xf32>
    %c0_14 = arith.constant 0 : index
    %c0_15 = arith.constant 0 : index
    %c0_16 = arith.constant 0 : index
    %29 = vector.load %arg5[%c0_14, %c0_15, %c0_16] : memref<2x32x96xf32, #tpu.memory_space<vmem>>, vector<1x32x96xf32>
    %30 = vector.shape_cast %29 : vector<1x32x96xf32> to vector<32x96xf32>
    %cst_17 = arith.constant dense<0.000000e+00> : vector<16x96xf32>
    %31 = tpu.matmul %28, %30, %cst_17 {dimension_numbers = #tpu.dot_dimension_numbers<[1], [0], [0], [1], [0, 0, 1, 1], [], []>} : vector<16x32xf32>, vector<32x96xf32>, vector<16x96xf32> -> vector<16x96xf32>
    %c0_18 = arith.constant 0 : index
    %c0_19 = arith.constant 0 : index
    %c0_20 = arith.constant 0 : index
    %32 = vector.load %arg6[%c0_18, %c0_19, %c0_20] : memref<2x1x96xf32, #tpu.memory_space<vmem>>, vector<1x1x96xf32>
    %33 = vector.shape_cast %32 : vector<1x1x96xf32> to vector<1x96xf32>
    %34 = vector.broadcast %33 : vector<1x96xf32> to vector<16x96xf32>
    %35 = arith.addf %31, %34 : vector<16x96xf32>
    %c0_21 = arith.constant 0 : index
    %c0_22 = arith.constant 0 : index
    %36 = vector.load %arg22[%c0_21, %c0_22] : memref<16x96xf32, #tpu.memory_space<vmem>>, vector<16x96xf32>
    tpu.vector_store %arg22[%c0_21, %c0_22], %35 {strides = array<i32>} : memref<16x96xf32, #tpu.memory_space<vmem>>, vector<16x96xf32>,
    %c0_23 = arith.constant 0 : index
    %c0_24 = arith.constant 0 : index
    %37 = vector.load %arg22[%c0_23, %c0_24] : memref<16x96xf32, #tpu.memory_space<vmem>>, vector<16x8xf32>
    %c0_25 = arith.constant 0 : index
    %c0_26 = arith.constant 0 : index
    %c0_27 = arith.constant 0 : index
    %38 = vector.load %arg23[%c0_25, %c0_26, %c0_27] : memref<12x16x8xf32, #tpu.memory_space<vmem>>, vector<1x16x8xf32>
    %39 = vector.shape_cast %38 : vector<1x16x8xf32> to vector<16x8xf32>
    %40 = vector.shape_cast %37 : vector<16x8xf32> to vector<1x16x8xf32>
    tpu.vector_store %arg23[%c0_25, %c0_26, %c0_27], %40 {strides = array<i32>} : memref<12x16x8xf32, #tpu.memory_space<vmem>>, vector<1x16x8xf32>,
    %c0_28 = arith.constant 0 : index
    %c8 = arith.constant 8 : index
    %41 = vector.load %arg22[%c0_28, %c8] : memref<16x96xf32, #tpu.memory_space<vmem>>, vector<16x8xf32>
    %c1 = arith.constant 1 : index
    %c0_29 = arith.constant 0 : index
    %c0_30 = arith.constant 0 : index
    %42 = vector.load %arg23[%c1, %c0_29, %c0_30] : memref<12x16x8xf32, #tpu.memory_space<vmem>>, vector<1x16x8xf32>
    %43 = vector.shape_cast %42 : vector<1x16x8xf32> to vector<16x8xf32>
    %44 = vector.shape_cast %41 : vector<16x8xf32> to vector<1x16x8xf32>
    tpu.vector_store %arg23[%c1, %c0_29, %c0_30], %44 {strides = array<i32>} : memref<12x16x8xf32, #tpu.memory_space<vmem>>, vector<1x16x8xf32>,
    %c0_31 = arith.constant 0 : index
    %c16 = arith.constant 16 : index
    %45 = vector.load %arg22[%c0_31, %c16] : memref<16x96xf32, #tpu.memory_space<vmem>>, vector<16x8xf32>
    %c2 = arith.constant 2 : index
    %c0_32 = arith.constant 0 : index
    %c0_33 = arith.constant 0 : index
    %46 = vector.load %arg23[%c2, %c0_32, %c0_33] : memref<12x16x8xf32, #tpu.memory_space<vmem>>, vector<1x16x8xf32>
    %47 = vector.shape_cast %46 : vector<1x16x8xf32> to vector<16x8xf32>
    %48 = vector.shape_cast %45 : vector<16x8xf32> to vector<1x16x8xf32>
    tpu.vector_store %arg23[%c2, %c0_32, %c0_33], %48 {strides = array<i32>} : memref<12x16x8xf32, #tpu.memory_space<vmem>>, vector<1x16x8xf32>,
    %c0_34 = arith.constant 0 : index
    %c24 = arith.constant 24 : index
    %49 = vector.load %arg22[%c0_34, %c24] : memref<16x96xf32, #tpu.memory_space<vmem>>, vector<16x8xf32>
    %c3 = arith.constant 3 : index
    %c0_35 = arith.constant 0 : index
    %c0_36 = arith.constant 0 : index
    %50 = vector.load %arg23[%c3, %c0_35, %c0_36] : memref<12x16x8xf32, #tpu.memory_space<vmem>>, vector<1x16x8xf32>
    %51 = vector.shape_cast %50 : vector<1x16x8xf32> to vector<16x8xf32>
    %52 = vector.shape_cast %49 : vector<16x8xf32> to vector<1x16x8xf32>
    tpu.vector_store %arg23[%c3, %c0_35, %c0_36], %52 {strides = array<i32>} : memref<12x16x8xf32, #tpu.memory_space<vmem>>, vector<1x16x8xf32>,
    %c0_37 = arith.constant 0 : index
    %c32 = arith.constant 32 : index
    %53 = vector.load %arg22[%c0_37, %c32] : memref<16x96xf32, #tpu.memory_space<vmem>>, vector<16x8xf32>
    %c4 = arith.constant 4 : index
    %c0_38 = arith.constant 0 : index
    %c0_39 = arith.constant 0 : index
    %54 = vector.load %arg23[%c4, %c0_38, %c0_39] : memref<12x16x8xf32, #tpu.memory_space<vmem>>, vector<1x16x8xf32>
    %55 = vector.shape_cast %54 : vector<1x16x8xf32> to vector<16x8xf32>
    %56 = vector.shape_cast %53 : vector<16x8xf32> to vector<1x16x8xf32>
    tpu.vector_store %arg23[%c4, %c0_38, %c0_39], %56 {strides = array<i32>} : memref<12x16x8xf32, #tpu.memory_space<vmem>>, vector<1x16x8xf32>,
    %c0_40 = arith.constant 0 : index
    %c40 = arith.constant 40 : index
    %57 = vector.load %arg22[%c0_40, %c40] : memref<16x96xf32, #tpu.memory_space<vmem>>, vector<16x8xf32>
    %c5 = arith.constant 5 : index
    %c0_41 = arith.constant 0 : index
    %c0_42 = arith.constant 0 : index
    %58 = vector.load %arg23[%c5, %c0_41, %c0_42] : memref<12x16x8xf32, #tpu.memory_space<vmem>>, vector<1x16x8xf32>
    %59 = vector.shape_cast %58 : vector<1x16x8xf32> to vector<16x8xf32>
    %60 = vector.shape_cast %57 : vector<16x8xf32> to vector<1x16x8xf32>
    tpu.vector_store %arg23[%c5, %c0_41, %c0_42], %60 {strides = array<i32>} : memref<12x16x8xf32, #tpu.memory_space<vmem>>, vector<1x16x8xf32>,
    %c0_43 = arith.constant 0 : index
    %c48 = arith.constant 48 : index
    %61 = vector.load %arg22[%c0_43, %c48] : memref<16x96xf32, #tpu.memory_space<vmem>>, vector<16x8xf32>
    %c6 = arith.constant 6 : index
    %c0_44 = arith.constant 0 : index
    %c0_45 = arith.constant 0 : index
    %62 = vector.load %arg23[%c6, %c0_44, %c0_45] : memref<12x16x8xf32, #tpu.memory_space<vmem>>, vector<1x16x8xf32>
    %63 = vector.shape_cast %62 : vector<1x16x8xf32> to vector<16x8xf32>
    %64 = vector.shape_cast %61 : vector<16x8xf32> to vector<1x16x8xf32>
    tpu.vector_store %arg23[%c6, %c0_44, %c0_45], %64 {strides = array<i32>} : memref<12x16x8xf32, #tpu.memory_space<vmem>>, vector<1x16x8xf32>,
    %c0_46 = arith.constant 0 : index
    %c56 = arith.constant 56 : index
    %65 = vector.load %arg22[%c0_46, %c56] : memref<16x96xf32, #tpu.memory_space<vmem>>, vector<16x8xf32>
    %c7 = arith.constant 7 : index
    %c0_47 = arith.constant 0 : index
    %c0_48 = arith.constant 0 : index
    %66 = vector.load %arg23[%c7, %c0_47, %c0_48] : memref<12x16x8xf32, #tpu.memory_space<vmem>>, vector<1x16x8xf32>
    %67 = vector.shape_cast %66 : vector<1x16x8xf32> to vector<16x8xf32>
    %68 = vector.shape_cast %65 : vector<16x8xf32> to vector<1x16x8xf32>
    tpu.vector_store %arg23[%c7, %c0_47, %c0_48], %68 {strides = array<i32>} : memref<12x16x8xf32, #tpu.memory_space<vmem>>, vector<1x16x8xf32>,
    %c0_49 = arith.constant 0 : index
    %c64 = arith.constant 64 : index
    %69 = vector.load %arg22[%c0_49, %c64] : memref<16x96xf32, #tpu.memory_space<vmem>>, vector<16x8xf32>
    %c8_50 = arith.constant 8 : index
    %c0_51 = arith.constant 0 : index
    %c0_52 = arith.constant 0 : index
    %70 = vector.load %arg23[%c8_50, %c0_51, %c0_52] : memref<12x16x8xf32, #tpu.memory_space<vmem>>, vector<1x16x8xf32>
    %71 = vector.shape_cast %70 : vector<1x16x8xf32> to vector<16x8xf32>
    %72 = vector.shape_cast %69 : vector<16x8xf32> to vector<1x16x8xf32>
    tpu.vector_store %arg23[%c8_50, %c0_51, %c0_52], %72 {strides = array<i32>} : memref<12x16x8xf32, #tpu.memory_space<vmem>>, vector<1x16x8xf32>,
    %c0_53 = arith.constant 0 : index
    %c72 = arith.constant 72 : index
    %73 = vector.load %arg22[%c0_53, %c72] : memref<16x96xf32, #tpu.memory_space<vmem>>, vector<16x8xf32>
    %c9 = arith.constant 9 : index
    %c0_54 = arith.constant 0 : index
    %c0_55 = arith.constant 0 : index
    %74 = vector.load %arg23[%c9, %c0_54, %c0_55] : memref<12x16x8xf32, #tpu.memory_space<vmem>>, vector<1x16x8xf32>
    %75 = vector.shape_cast %74 : vector<1x16x8xf32> to vector<16x8xf32>
    %76 = vector.shape_cast %73 : vector<16x8xf32> to vector<1x16x8xf32>
    tpu.vector_store %arg23[%c9, %c0_54, %c0_55], %76 {strides = array<i32>} : memref<12x16x8xf32, #tpu.memory_space<vmem>>, vector<1x16x8xf32>,
    %c0_56 = arith.constant 0 : index
    %c80 = arith.constant 80 : index
    %77 = vector.load %arg22[%c0_56, %c80] : memref<16x96xf32, #tpu.memory_space<vmem>>, vector<16x8xf32>
    %c10 = arith.constant 10 : index
    %c0_57 = arith.constant 0 : index
    %c0_58 = arith.constant 0 : index
    %78 = vector.load %arg23[%c10, %c0_57, %c0_58] : memref<12x16x8xf32, #tpu.memory_space<vmem>>, vector<1x16x8xf32>
    %79 = vector.shape_cast %78 : vector<1x16x8xf32> to vector<16x8xf32>
    %80 = vector.shape_cast %77 : vector<16x8xf32> to vector<1x16x8xf32>
    tpu.vector_store %arg23[%c10, %c0_57, %c0_58], %80 {strides = array<i32>} : memref<12x16x8xf32, #tpu.memory_space<vmem>>, vector<1x16x8xf32>,
    %c0_59 = arith.constant 0 : index
    %c88 = arith.constant 88 : index
    %81 = vector.load %arg22[%c0_59, %c88] : memref<16x96xf32, #tpu.memory_space<vmem>>, vector<16x8xf32>
    %c11 = arith.constant 11 : index
    %c0_60 = arith.constant 0 : index
    %c0_61 = arith.constant 0 : index
    %82 = vector.load %arg23[%c11, %c0_60, %c0_61] : memref<12x16x8xf32, #tpu.memory_space<vmem>>, vector<1x16x8xf32>
    %83 = vector.shape_cast %82 : vector<1x16x8xf32> to vector<16x8xf32>
    %84 = vector.shape_cast %81 : vector<16x8xf32> to vector<1x16x8xf32>
    tpu.vector_store %arg23[%c11, %c0_60, %c0_61], %84 {strides = array<i32>} : memref<12x16x8xf32, #tpu.memory_space<vmem>>, vector<1x16x8xf32>,
    %c0_62 = arith.constant 0 : index
    %c0_63 = arith.constant 0 : index
    %c0_64 = arith.constant 0 : index
    %85 = vector.load %arg23[%c0_62, %c0_63, %c0_64] : memref<12x16x8xf32, #tpu.memory_space<vmem>>, vector<12x16x8xf32>
    %86 = vector.extract_strided_slice %85 {offsets = [0, 0, 0], sizes = [4, 16, 8], strides = [1, 1, 1]} : vector<12x16x8xf32> to vector<4x16x8xf32>
    %87 = vector.shape_cast %86 : vector<4x16x8xf32> to vector<8x8x8xf32>
    %88 = vector.extract_strided_slice %85 {offsets = [4, 0, 0], sizes = [4, 16, 8], strides = [1, 1, 1]} : vector<12x16x8xf32> to vector<4x16x8xf32>
    %89 = vector.shape_cast %88 : vector<4x16x8xf32> to vector<8x8x8xf32>
    %90 = vector.extract_strided_slice %85 {offsets = [8, 0, 0], sizes = [4, 16, 8], strides = [1, 1, 1]} : vector<12x16x8xf32> to vector<4x16x8xf32>
    %91 = vector.shape_cast %90 : vector<4x16x8xf32> to vector<8x8x8xf32>
    "tpu.trace_start"() <{level = 10 : i32, message = "gqd,gkd->gqk"}> : () -> ()
    %cst_65 = arith.constant dense<0.000000e+00> : vector<8x8x8xf32>
    %92 = tpu.matmul %87, %89, %cst_65 {dimension_numbers = #tpu.dot_dimension_numbers<[2], [2], [1], [1], [0, 0, 0, 1, 1, 1], [0], [0]>} : vector<8x8x8xf32>, vector<8x8x8xf32>, vector<8x8x8xf32> -> vector<8x8x8xf32>
    "tpu.trace_stop"() : () -> ()
    %cst_66 = arith.constant dense<0xFF800000> : vector<8x8xf32>
    %93 = vector.multi_reduction <maximumf>, %92, %cst_66 [2] : vector<8x8x8xf32> to vector<8x8xf32>
    %94 = vector.shape_cast %93 : vector<8x8xf32> to vector<8x8x1xf32>
    %95 = vector.broadcast %94 : vector<8x8x1xf32> to vector<8x8x8xf32>
    %96 = arith.subf %92, %95 : vector<8x8x8xf32>
    %97 = math.exp %96 : vector<8x8x8xf32>
    %cst_67 = arith.constant dense<0.000000e+00> : vector<8x8xf32>
    %98 = vector.multi_reduction <add>, %97, %cst_67 [2] : vector<8x8x8xf32> to vector<8x8xf32>
    %99 = vector.shape_cast %98 : vector<8x8xf32> to vector<8x8x1xf32>
    %100 = tpu.reciprocal %99 {approx = true} : vector<8x8x1xf32> -> vector<8x8x1xf32>
    %101 = vector.broadcast %100 : vector<8x8x1xf32> to vector<8x8x8xf32>
    %102 = arith.mulf %97, %101 : vector<8x8x8xf32>
    "tpu.trace_start"() <{level = 10 : i32, message = "gqk,gkd->gqd"}> : () -> ()
    %cst_68 = arith.constant dense<0.000000e+00> : vector<8x8x8xf32>
    %103 = tpu.matmul %102, %91, %cst_68 {dimension_numbers = #tpu.dot_dimension_numbers<[2], [1], [1], [2], [0, 0, 0, 1, 1, 2], [0], [0]>} : vector<8x8x8xf32>, vector<8x8x8xf32>, vector<8x8x8xf32> -> vector<8x8x8xf32>
    "tpu.trace_stop"() : () -> ()
    %104 = vector.shape_cast %103 : vector<8x8x8xf32> to vector<4x16x8xf32>
    %105 = vector.extract_strided_slice %104 {offsets = [0, 0, 0], sizes = [1, 16, 8], strides = [1, 1, 1]} : vector<4x16x8xf32> to vector<1x16x8xf32>
    %106 = vector.shape_cast %105 : vector<1x16x8xf32> to vector<16x8xf32>
    %c0_69 = arith.constant 0 : index
    %c0_70 = arith.constant 0 : index
    %107 = vector.load %arg24[%c0_69, %c0_70] : memref<16x32xf32, #tpu.memory_space<vmem>>, vector<16x8xf32>
    tpu.vector_store %arg24[%c0_69, %c0_70], %106 {strides = array<i32>} : memref<16x32xf32, #tpu.memory_space<vmem>>, vector<16x8xf32>,
    %108 = vector.extract_strided_slice %104 {offsets = [1, 0, 0], sizes = [1, 16, 8], strides = [1, 1, 1]} : vector<4x16x8xf32> to vector<1x16x8xf32>
    %109 = vector.shape_cast %108 : vector<1x16x8xf32> to vector<16x8xf32>
    %c0_71 = arith.constant 0 : index
    %c8_72 = arith.constant 8 : index
    %110 = vector.load %arg24[%c0_71, %c8_72] : memref<16x32xf32, #tpu.memory_space<vmem>>, vector<16x8xf32>
    tpu.vector_store %arg24[%c0_71, %c8_72], %109 {strides = array<i32>} : memref<16x32xf32, #tpu.memory_space<vmem>>, vector<16x8xf32>,
    %111 = vector.extract_strided_slice %104 {offsets = [2, 0, 0], sizes = [1, 16, 8], strides = [1, 1, 1]} : vector<4x16x8xf32> to vector<1x16x8xf32>
    %112 = vector.shape_cast %111 : vector<1x16x8xf32> to vector<16x8xf32>
    %c0_73 = arith.constant 0 : index
    %c16_74 = arith.constant 16 : index
    %113 = vector.load %arg24[%c0_73, %c16_74] : memref<16x32xf32, #tpu.memory_space<vmem>>, vector<16x8xf32>
    tpu.vector_store %arg24[%c0_73, %c16_74], %112 {strides = array<i32>} : memref<16x32xf32, #tpu.memory_space<vmem>>, vector<16x8xf32>,
    %114 = vector.extract_strided_slice %104 {offsets = [3, 0, 0], sizes = [1, 16, 8], strides = [1, 1, 1]} : vector<4x16x8xf32> to vector<1x16x8xf32>
    %115 = vector.shape_cast %114 : vector<1x16x8xf32> to vector<16x8xf32>
    %c0_75 = arith.constant 0 : index
    %c24_76 = arith.constant 24 : index
    %116 = vector.load %arg24[%c0_75, %c24_76] : memref<16x32xf32, #tpu.memory_space<vmem>>, vector<16x8xf32>
    tpu.vector_store %arg24[%c0_75, %c24_76], %115 {strides = array<i32>} : memref<16x32xf32, #tpu.memory_space<vmem>>, vector<16x8xf32>,
    %c0_77 = arith.constant 0 : index
    %c0_78 = arith.constant 0 : index
    %117 = vector.load %arg24[%c0_77, %c0_78] : memref<16x32xf32, #tpu.memory_space<vmem>>, vector<16x32xf32>
    %c0_79 = arith.constant 0 : index
    %c0_80 = arith.constant 0 : index
    %c0_81 = arith.constant 0 : index
    %118 = vector.load %arg7[%c0_79, %c0_80, %c0_81] : memref<2x32x32xf32, #tpu.memory_space<vmem>>, vector<1x32x32xf32>
    %119 = vector.shape_cast %118 : vector<1x32x32xf32> to vector<32x32xf32>
    %cst_82 = arith.constant dense<0.000000e+00> : vector<16x32xf32>
    %120 = tpu.matmul %117, %119, %cst_82 {dimension_numbers = #tpu.dot_dimension_numbers<[1], [0], [0], [1], [0, 0, 1, 1], [], []>} : vector<16x32xf32>, vector<32x32xf32>, vector<16x32xf32> -> vector<16x32xf32>
    %c0_83 = arith.constant 0 : index
    %c0_84 = arith.constant 0 : index
    %c0_85 = arith.constant 0 : index
    %121 = vector.load %arg8[%c0_83, %c0_84, %c0_85] : memref<2x1x32xf32, #tpu.memory_space<vmem>>, vector<1x1x32xf32>
    %122 = vector.shape_cast %121 : vector<1x1x32xf32> to vector<1x32xf32>
    %123 = vector.broadcast %122 : vector<1x32xf32> to vector<16x32xf32>
    %124 = arith.addf %120, %123 : vector<16x32xf32>
    %125 = arith.addf %28, %124 : vector<16x32xf32>
    %c0_86 = arith.constant 0 : index
    %c0_87 = arith.constant 0 : index
    %c0_88 = arith.constant 0 : index
    %126 = vector.load %arg9[%c0_86, %c0_87, %c0_88] : memref<2x1x32xf32, #tpu.memory_space<vmem>>, vector<1x1x32xf32>
    %127 = vector.shape_cast %126 : vector<1x1x32xf32> to vector<1x32xf32>
    %c0_89 = arith.constant 0 : index
    %c0_90 = arith.constant 0 : index
    %c0_91 = arith.constant 0 : index
    %128 = vector.load %arg10[%c0_89, %c0_90, %c0_91] : memref<2x1x32xf32, #tpu.memory_space<vmem>>, vector<1x1x32xf32>
    %129 = vector.shape_cast %128 : vector<1x1x32xf32> to vector<1x32xf32>
    %cst_92 = arith.constant dense<0.000000e+00> : vector<16xf32>
    %130 = vector.multi_reduction <add>, %125, %cst_92 [1] : vector<16x32xf32> to vector<16xf32>
    %131 = vector.shape_cast %130 : vector<16xf32> to vector<16x1xf32>
    %cst_93 = arith.constant 3.200000e+01 : f32
    %132 = vector.broadcast %cst_93 : f32 to vector<16x1xf32>
    %133 = arith.divf %131, %132 : vector<16x1xf32>
    %134 = vector.broadcast %133 : vector<16x1xf32> to vector<16x32xf32>
    %135 = arith.subf %125, %134 : vector<16x32xf32>
    %136 = arith.mulf %135, %135 : vector<16x32xf32>
    %cst_94 = arith.constant dense<0.000000e+00> : vector<16xf32>
    %137 = vector.multi_reduction <add>, %136, %cst_94 [1] : vector<16x32xf32> to vector<16xf32>
    %138 = vector.shape_cast %137 : vector<16xf32> to vector<16x1xf32>
    %cst_95 = arith.constant 3.200000e+01 : f32
    %139 = vector.broadcast %cst_95 : f32 to vector<16x1xf32>
    %140 = arith.divf %138, %139 : vector<16x1xf32>
    %141 = vector.broadcast %133 : vector<16x1xf32> to vector<16x32xf32>
    %142 = arith.subf %125, %141 : vector<16x32xf32>
    %cst_96 = arith.constant 9.99999974E-6 : f32
    %143 = vector.broadcast %cst_96 : f32 to vector<16x1xf32>
    %144 = arith.addf %140, %143 : vector<16x1xf32>
    %145 = math.rsqrt %144 : vector<16x1xf32>
    %146 = vector.broadcast %145 : vector<16x1xf32> to vector<16x32xf32>
    %147 = arith.mulf %142, %146 : vector<16x32xf32>
    %148 = vector.broadcast %127 : vector<1x32xf32> to vector<16x32xf32>
    %149 = arith.mulf %147, %148 : vector<16x32xf32>
    %150 = vector.broadcast %129 : vector<1x32xf32> to vector<16x32xf32>
    %151 = arith.addf %149, %150 : vector<16x32xf32>
    %c0_97 = arith.constant 0 : index
    %c0_98 = arith.constant 0 : index
    %c0_99 = arith.constant 0 : index
    %152 = vector.load %arg11[%c0_97, %c0_98, %c0_99] : memref<2x32x64xf32, #tpu.memory_space<vmem>>, vector<1x32x64xf32>
    %153 = vector.shape_cast %152 : vector<1x32x64xf32> to vector<32x64xf32>
    %cst_100 = arith.constant dense<0.000000e+00> : vector<16x64xf32>
    %154 = tpu.matmul %151, %153, %cst_100 {dimension_numbers = #tpu.dot_dimension_numbers<[1], [0], [0], [1], [0, 0, 1, 1], [], []>} : vector<16x32xf32>, vector<32x64xf32>, vector<16x64xf32> -> vector<16x64xf32>
    %c0_101 = arith.constant 0 : index
    %c0_102 = arith.constant 0 : index
    %c0_103 = arith.constant 0 : index
    %155 = vector.load %arg12[%c0_101, %c0_102, %c0_103] : memref<2x1x64xf32, #tpu.memory_space<vmem>>, vector<1x1x64xf32>
    %156 = vector.shape_cast %155 : vector<1x1x64xf32> to vector<1x64xf32>
    %157 = vector.broadcast %156 : vector<1x64xf32> to vector<16x64xf32>
    %158 = arith.addf %154, %157 : vector<16x64xf32>
    %cst_104 = arith.constant 0.000000e+00 : f32
    %159 = vector.broadcast %cst_104 : f32 to vector<16x64xf32>
    %160 = arith.maximumf %158, %159 : vector<16x64xf32>
    %c0_105 = arith.constant 0 : index
    %c0_106 = arith.constant 0 : index
    %c0_107 = arith.constant 0 : index
    %161 = vector.load %arg13[%c0_105, %c0_106, %c0_107] : memref<2x64x32xf32, #tpu.memory_space<vmem>>, vector<1x64x32xf32>
    %162 = vector.shape_cast %161 : vector<1x64x32xf32> to vector<64x32xf32>
    %cst_108 = arith.constant dense<0.000000e+00> : vector<16x32xf32>
    %163 = tpu.matmul %160, %162, %cst_108 {dimension_numbers = #tpu.dot_dimension_numbers<[1], [0], [0], [1], [0, 0, 1, 1], [], []>} : vector<16x64xf32>, vector<64x32xf32>, vector<16x32xf32> -> vector<16x32xf32>
    %c0_109 = arith.constant 0 : index
    %c0_110 = arith.constant 0 : index
    %c0_111 = arith.constant 0 : index
    %164 = vector.load %arg14[%c0_109, %c0_110, %c0_111] : memref<2x1x32xf32, #tpu.memory_space<vmem>>, vector<1x1x32xf32>
    %165 = vector.shape_cast %164 : vector<1x1x32xf32> to vector<1x32xf32>
    %166 = vector.broadcast %165 : vector<1x32xf32> to vector<16x32xf32>
    %167 = arith.addf %163, %166 : vector<16x32xf32>
    %168 = arith.addf %151, %167 : vector<16x32xf32>
    %c0_112 = arith.constant 0 : index
    %c0_113 = arith.constant 0 : index
    %c0_114 = arith.constant 0 : index
    %169 = vector.load %arg15[%c0_112, %c0_113, %c0_114] : memref<2x1x32xf32, #tpu.memory_space<vmem>>, vector<1x1x32xf32>
    %170 = vector.shape_cast %169 : vector<1x1x32xf32> to vector<1x32xf32>
    %c0_115 = arith.constant 0 : index
    %c0_116 = arith.constant 0 : index
    %c0_117 = arith.constant 0 : index
    %171 = vector.load %arg16[%c0_115, %c0_116, %c0_117] : memref<2x1x32xf32, #tpu.memory_space<vmem>>, vector<1x1x32xf32>
    %172 = vector.shape_cast %171 : vector<1x1x32xf32> to vector<1x32xf32>
    %cst_118 = arith.constant dense<0.000000e+00> : vector<16xf32>
    %173 = vector.multi_reduction <add>, %168, %cst_118 [1] : vector<16x32xf32> to vector<16xf32>
    %174 = vector.shape_cast %173 : vector<16xf32> to vector<16x1xf32>
    %cst_119 = arith.constant 3.200000e+01 : f32
    %175 = vector.broadcast %cst_119 : f32 to vector<16x1xf32>
    %176 = arith.divf %174, %175 : vector<16x1xf32>
    %177 = vector.broadcast %176 : vector<16x1xf32> to vector<16x32xf32>
    %178 = arith.subf %168, %177 : vector<16x32xf32>
    %179 = arith.mulf %178, %178 : vector<16x32xf32>
    %cst_120 = arith.constant dense<0.000000e+00> : vector<16xf32>
    %180 = vector.multi_reduction <add>, %179, %cst_120 [1] : vector<16x32xf32> to vector<16xf32>
    %181 = vector.shape_cast %180 : vector<16xf32> to vector<16x1xf32>
    %cst_121 = arith.constant 3.200000e+01 : f32
    %182 = vector.broadcast %cst_121 : f32 to vector<16x1xf32>
    %183 = arith.divf %181, %182 : vector<16x1xf32>
    %184 = vector.broadcast %176 : vector<16x1xf32> to vector<16x32xf32>
    %185 = arith.subf %168, %184 : vector<16x32xf32>
    %cst_122 = arith.constant 9.99999974E-6 : f32
    %186 = vector.broadcast %cst_122 : f32 to vector<16x1xf32>
    %187 = arith.addf %183, %186 : vector<16x1xf32>
    %188 = math.rsqrt %187 : vector<16x1xf32>
    %189 = vector.broadcast %188 : vector<16x1xf32> to vector<16x32xf32>
    %190 = arith.mulf %185, %189 : vector<16x32xf32>
    %191 = vector.broadcast %170 : vector<1x32xf32> to vector<16x32xf32>
    %192 = arith.mulf %190, %191 : vector<16x32xf32>
    %193 = vector.broadcast %172 : vector<1x32xf32> to vector<16x32xf32>
    %194 = arith.addf %192, %193 : vector<16x32xf32>
    %c1_123 = arith.constant 1 : index
    %c0_124 = arith.constant 0 : index
    %c0_125 = arith.constant 0 : index
    %195 = vector.load %arg5[%c1_123, %c0_124, %c0_125] : memref<2x32x96xf32, #tpu.memory_space<vmem>>, vector<1x32x96xf32>
    %196 = vector.shape_cast %195 : vector<1x32x96xf32> to vector<32x96xf32>
    %cst_126 = arith.constant dense<0.000000e+00> : vector<16x96xf32>
    %197 = tpu.matmul %194, %196, %cst_126 {dimension_numbers = #tpu.dot_dimension_numbers<[1], [0], [0], [1], [0, 0, 1, 1], [], []>} : vector<16x32xf32>, vector<32x96xf32>, vector<16x96xf32> -> vector<16x96xf32>
    %c1_127 = arith.constant 1 : index
    %c0_128 = arith.constant 0 : index
    %c0_129 = arith.constant 0 : index
    %198 = vector.load %arg6[%c1_127, %c0_128, %c0_129] : memref<2x1x96xf32, #tpu.memory_space<vmem>>, vector<1x1x96xf32>
    %199 = vector.shape_cast %198 : vector<1x1x96xf32> to vector<1x96xf32>
    %200 = vector.broadcast %199 : vector<1x96xf32> to vector<16x96xf32>
    %201 = arith.addf %197, %200 : vector<16x96xf32>
    %c0_130 = arith.constant 0 : index
    %c0_131 = arith.constant 0 : index
    %202 = vector.load %arg22[%c0_130, %c0_131] : memref<16x96xf32, #tpu.memory_space<vmem>>, vector<16x96xf32>
    tpu.vector_store %arg22[%c0_130, %c0_131], %201 {strides = array<i32>} : memref<16x96xf32, #tpu.memory_space<vmem>>, vector<16x96xf32>,
    %c0_132 = arith.constant 0 : index
    %c0_133 = arith.constant 0 : index
    %203 = vector.load %arg22[%c0_132, %c0_133] : memref<16x96xf32, #tpu.memory_space<vmem>>, vector<16x8xf32>
    %c0_134 = arith.constant 0 : index
    %c0_135 = arith.constant 0 : index
    %c0_136 = arith.constant 0 : index
    %204 = vector.load %arg23[%c0_134, %c0_135, %c0_136] : memref<12x16x8xf32, #tpu.memory_space<vmem>>, vector<1x16x8xf32>
    %205 = vector.shape_cast %204 : vector<1x16x8xf32> to vector<16x8xf32>
    %206 = vector.shape_cast %203 : vector<16x8xf32> to vector<1x16x8xf32>
    tpu.vector_store %arg23[%c0_134, %c0_135, %c0_136], %206 {strides = array<i32>} : memref<12x16x8xf32, #tpu.memory_space<vmem>>, vector<1x16x8xf32>,
    %c0_137 = arith.constant 0 : index
    %c8_138 = arith.constant 8 : index
    %207 = vector.load %arg22[%c0_137, %c8_138] : memref<16x96xf32, #tpu.memory_space<vmem>>, vector<16x8xf32>
    %c1_139 = arith.constant 1 : index
    %c0_140 = arith.constant 0 : index
    %c0_141 = arith.constant 0 : index
    %208 = vector.load %arg23[%c1_139, %c0_140, %c0_141] : memref<12x16x8xf32, #tpu.memory_space<vmem>>, vector<1x16x8xf32>
    %209 = vector.shape_cast %208 : vector<1x16x8xf32> to vector<16x8xf32>
    %210 = vector.shape_cast %207 : vector<16x8xf32> to vector<1x16x8xf32>
    tpu.vector_store %arg23[%c1_139, %c0_140, %c0_141], %210 {strides = array<i32>} : memref<12x16x8xf32, #tpu.memory_space<vmem>>, vector<1x16x8xf32>,
    %c0_142 = arith.constant 0 : index
    %c16_143 = arith.constant 16 : index
    %211 = vector.load %arg22[%c0_142, %c16_143] : memref<16x96xf32, #tpu.memory_space<vmem>>, vector<16x8xf32>
    %c2_144 = arith.constant 2 : index
    %c0_145 = arith.constant 0 : index
    %c0_146 = arith.constant 0 : index
    %212 = vector.load %arg23[%c2_144, %c0_145, %c0_146] : memref<12x16x8xf32, #tpu.memory_space<vmem>>, vector<1x16x8xf32>
    %213 = vector.shape_cast %212 : vector<1x16x8xf32> to vector<16x8xf32>
    %214 = vector.shape_cast %211 : vector<16x8xf32> to vector<1x16x8xf32>
    tpu.vector_store %arg23[%c2_144, %c0_145, %c0_146], %214 {strides = array<i32>} : memref<12x16x8xf32, #tpu.memory_space<vmem>>, vector<1x16x8xf32>,
    %c0_147 = arith.constant 0 : index
    %c24_148 = arith.constant 24 : index
    %215 = vector.load %arg22[%c0_147, %c24_148] : memref<16x96xf32, #tpu.memory_space<vmem>>, vector<16x8xf32>
    %c3_149 = arith.constant 3 : index
    %c0_150 = arith.constant 0 : index
    %c0_151 = arith.constant 0 : index
    %216 = vector.load %arg23[%c3_149, %c0_150, %c0_151] : memref<12x16x8xf32, #tpu.memory_space<vmem>>, vector<1x16x8xf32>
    %217 = vector.shape_cast %216 : vector<1x16x8xf32> to vector<16x8xf32>
    %218 = vector.shape_cast %215 : vector<16x8xf32> to vector<1x16x8xf32>
    tpu.vector_store %arg23[%c3_149, %c0_150, %c0_151], %218 {strides = array<i32>} : memref<12x16x8xf32, #tpu.memory_space<vmem>>, vector<1x16x8xf32>,
    %c0_152 = arith.constant 0 : index
    %c32_153 = arith.constant 32 : index
    %219 = vector.load %arg22[%c0_152, %c32_153] : memref<16x96xf32, #tpu.memory_space<vmem>>, vector<16x8xf32>
    %c4_154 = arith.constant 4 : index
    %c0_155 = arith.constant 0 : index
    %c0_156 = arith.constant 0 : index
    %220 = vector.load %arg23[%c4_154, %c0_155, %c0_156] : memref<12x16x8xf32, #tpu.memory_space<vmem>>, vector<1x16x8xf32>
    %221 = vector.shape_cast %220 : vector<1x16x8xf32> to vector<16x8xf32>
    %222 = vector.shape_cast %219 : vector<16x8xf32> to vector<1x16x8xf32>
    tpu.vector_store %arg23[%c4_154, %c0_155, %c0_156], %222 {strides = array<i32>} : memref<12x16x8xf32, #tpu.memory_space<vmem>>, vector<1x16x8xf32>,
    %c0_157 = arith.constant 0 : index
    %c40_158 = arith.constant 40 : index
    %223 = vector.load %arg22[%c0_157, %c40_158] : memref<16x96xf32, #tpu.memory_space<vmem>>, vector<16x8xf32>
    %c5_159 = arith.constant 5 : index
    %c0_160 = arith.constant 0 : index
    %c0_161 = arith.constant 0 : index
    %224 = vector.load %arg23[%c5_159, %c0_160, %c0_161] : memref<12x16x8xf32, #tpu.memory_space<vmem>>, vector<1x16x8xf32>
    %225 = vector.shape_cast %224 : vector<1x16x8xf32> to vector<16x8xf32>
    %226 = vector.shape_cast %223 : vector<16x8xf32> to vector<1x16x8xf32>
    tpu.vector_store %arg23[%c5_159, %c0_160, %c0_161], %226 {strides = array<i32>} : memref<12x16x8xf32, #tpu.memory_space<vmem>>, vector<1x16x8xf32>,
    %c0_162 = arith.constant 0 : index
    %c48_163 = arith.constant 48 : index
    %227 = vector.load %arg22[%c0_162, %c48_163] : memref<16x96xf32, #tpu.memory_space<vmem>>, vector<16x8xf32>
    %c6_164 = arith.constant 6 : index
    %c0_165 = arith.constant 0 : index
    %c0_166 = arith.constant 0 : index
    %228 = vector.load %arg23[%c6_164, %c0_165, %c0_166] : memref<12x16x8xf32, #tpu.memory_space<vmem>>, vector<1x16x8xf32>
    %229 = vector.shape_cast %228 : vector<1x16x8xf32> to vector<16x8xf32>
    %230 = vector.shape_cast %227 : vector<16x8xf32> to vector<1x16x8xf32>
    tpu.vector_store %arg23[%c6_164, %c0_165, %c0_166], %230 {strides = array<i32>} : memref<12x16x8xf32, #tpu.memory_space<vmem>>, vector<1x16x8xf32>,
    %c0_167 = arith.constant 0 : index
    %c56_168 = arith.constant 56 : index
    %231 = vector.load %arg22[%c0_167, %c56_168] : memref<16x96xf32, #tpu.memory_space<vmem>>, vector<16x8xf32>
    %c7_169 = arith.constant 7 : index
    %c0_170 = arith.constant 0 : index
    %c0_171 = arith.constant 0 : index
    %232 = vector.load %arg23[%c7_169, %c0_170, %c0_171] : memref<12x16x8xf32, #tpu.memory_space<vmem>>, vector<1x16x8xf32>
    %233 = vector.shape_cast %232 : vector<1x16x8xf32> to vector<16x8xf32>
    %234 = vector.shape_cast %231 : vector<16x8xf32> to vector<1x16x8xf32>
    tpu.vector_store %arg23[%c7_169, %c0_170, %c0_171], %234 {strides = array<i32>} : memref<12x16x8xf32, #tpu.memory_space<vmem>>, vector<1x16x8xf32>,
    %c0_172 = arith.constant 0 : index
    %c64_173 = arith.constant 64 : index
    %235 = vector.load %arg22[%c0_172, %c64_173] : memref<16x96xf32, #tpu.memory_space<vmem>>, vector<16x8xf32>
    %c8_174 = arith.constant 8 : index
    %c0_175 = arith.constant 0 : index
    %c0_176 = arith.constant 0 : index
    %236 = vector.load %arg23[%c8_174, %c0_175, %c0_176] : memref<12x16x8xf32, #tpu.memory_space<vmem>>, vector<1x16x8xf32>
    %237 = vector.shape_cast %236 : vector<1x16x8xf32> to vector<16x8xf32>
    %238 = vector.shape_cast %235 : vector<16x8xf32> to vector<1x16x8xf32>
    tpu.vector_store %arg23[%c8_174, %c0_175, %c0_176], %238 {strides = array<i32>} : memref<12x16x8xf32, #tpu.memory_space<vmem>>, vector<1x16x8xf32>,
    %c0_177 = arith.constant 0 : index
    %c72_178 = arith.constant 72 : index
    %239 = vector.load %arg22[%c0_177, %c72_178] : memref<16x96xf32, #tpu.memory_space<vmem>>, vector<16x8xf32>
    %c9_179 = arith.constant 9 : index
    %c0_180 = arith.constant 0 : index
    %c0_181 = arith.constant 0 : index
    %240 = vector.load %arg23[%c9_179, %c0_180, %c0_181] : memref<12x16x8xf32, #tpu.memory_space<vmem>>, vector<1x16x8xf32>
    %241 = vector.shape_cast %240 : vector<1x16x8xf32> to vector<16x8xf32>
    %242 = vector.shape_cast %239 : vector<16x8xf32> to vector<1x16x8xf32>
    tpu.vector_store %arg23[%c9_179, %c0_180, %c0_181], %242 {strides = array<i32>} : memref<12x16x8xf32, #tpu.memory_space<vmem>>, vector<1x16x8xf32>,
    %c0_182 = arith.constant 0 : index
    %c80_183 = arith.constant 80 : index
    %243 = vector.load %arg22[%c0_182, %c80_183] : memref<16x96xf32, #tpu.memory_space<vmem>>, vector<16x8xf32>
    %c10_184 = arith.constant 10 : index
    %c0_185 = arith.constant 0 : index
    %c0_186 = arith.constant 0 : index
    %244 = vector.load %arg23[%c10_184, %c0_185, %c0_186] : memref<12x16x8xf32, #tpu.memory_space<vmem>>, vector<1x16x8xf32>
    %245 = vector.shape_cast %244 : vector<1x16x8xf32> to vector<16x8xf32>
    %246 = vector.shape_cast %243 : vector<16x8xf32> to vector<1x16x8xf32>
    tpu.vector_store %arg23[%c10_184, %c0_185, %c0_186], %246 {strides = array<i32>} : memref<12x16x8xf32, #tpu.memory_space<vmem>>, vector<1x16x8xf32>,
    %c0_187 = arith.constant 0 : index
    %c88_188 = arith.constant 88 : index
    %247 = vector.load %arg22[%c0_187, %c88_188] : memref<16x96xf32, #tpu.memory_space<vmem>>, vector<16x8xf32>
    %c11_189 = arith.constant 11 : index
    %c0_190 = arith.constant 0 : index
    %c0_191 = arith.constant 0 : index
    %248 = vector.load %arg23[%c11_189, %c0_190, %c0_191] : memref<12x16x8xf32, #tpu.memory_space<vmem>>, vector<1x16x8xf32>
    %249 = vector.shape_cast %248 : vector<1x16x8xf32> to vector<16x8xf32>
    %250 = vector.shape_cast %247 : vector<16x8xf32> to vector<1x16x8xf32>
    tpu.vector_store %arg23[%c11_189, %c0_190, %c0_191], %250 {strides = array<i32>} : memref<12x16x8xf32, #tpu.memory_space<vmem>>, vector<1x16x8xf32>,
    %c0_192 = arith.constant 0 : index
    %c0_193 = arith.constant 0 : index
    %c0_194 = arith.constant 0 : index
    %251 = vector.load %arg23[%c0_192, %c0_193, %c0_194] : memref<12x16x8xf32, #tpu.memory_space<vmem>>, vector<12x16x8xf32>
    %252 = vector.extract_strided_slice %251 {offsets = [0, 0, 0], sizes = [4, 16, 8], strides = [1, 1, 1]} : vector<12x16x8xf32> to vector<4x16x8xf32>
    %253 = vector.shape_cast %252 : vector<4x16x8xf32> to vector<8x8x8xf32>
    %254 = vector.extract_strided_slice %251 {offsets = [4, 0, 0], sizes = [4, 16, 8], strides = [1, 1, 1]} : vector<12x16x8xf32> to vector<4x16x8xf32>
    %255 = vector.shape_cast %254 : vector<4x16x8xf32> to vector<8x8x8xf32>
    %256 = vector.extract_strided_slice %251 {offsets = [8, 0, 0], sizes = [4, 16, 8], strides = [1, 1, 1]} : vector<12x16x8xf32> to vector<4x16x8xf32>
    %257 = vector.shape_cast %256 : vector<4x16x8xf32> to vector<8x8x8xf32>
    "tpu.trace_start"() <{level = 10 : i32, message = "gqd,gkd->gqk"}> : () -> ()
    %cst_195 = arith.constant dense<0.000000e+00> : vector<8x8x8xf32>
    %258 = tpu.matmul %253, %255, %cst_195 {dimension_numbers = #tpu.dot_dimension_numbers<[2], [2], [1], [1], [0, 0, 0, 1, 1, 1], [0], [0]>} : vector<8x8x8xf32>, vector<8x8x8xf32>, vector<8x8x8xf32> -> vector<8x8x8xf32>
    "tpu.trace_stop"() : () -> ()
    %cst_196 = arith.constant dense<0xFF800000> : vector<8x8xf32>
    %259 = vector.multi_reduction <maximumf>, %258, %cst_196 [2] : vector<8x8x8xf32> to vector<8x8xf32>
    %260 = vector.shape_cast %259 : vector<8x8xf32> to vector<8x8x1xf32>
    %261 = vector.broadcast %260 : vector<8x8x1xf32> to vector<8x8x8xf32>
    %262 = arith.subf %258, %261 : vector<8x8x8xf32>
    %263 = math.exp %262 : vector<8x8x8xf32>
    %cst_197 = arith.constant dense<0.000000e+00> : vector<8x8xf32>
    %264 = vector.multi_reduction <add>, %263, %cst_197 [2] : vector<8x8x8xf32> to vector<8x8xf32>
    %265 = vector.shape_cast %264 : vector<8x8xf32> to vector<8x8x1xf32>
    %266 = tpu.reciprocal %265 {approx = true} : vector<8x8x1xf32> -> vector<8x8x1xf32>
    %267 = vector.broadcast %266 : vector<8x8x1xf32> to vector<8x8x8xf32>
    %268 = arith.mulf %263, %267 : vector<8x8x8xf32>
    "tpu.trace_start"() <{level = 10 : i32, message = "gqk,gkd->gqd"}> : () -> ()
    %cst_198 = arith.constant dense<0.000000e+00> : vector<8x8x8xf32>
    %269 = tpu.matmul %268, %257, %cst_198 {dimension_numbers = #tpu.dot_dimension_numbers<[2], [1], [1], [2], [0, 0, 0, 1, 1, 2], [0], [0]>} : vector<8x8x8xf32>, vector<8x8x8xf32>, vector<8x8x8xf32> -> vector<8x8x8xf32>
    "tpu.trace_stop"() : () -> ()
    %270 = vector.shape_cast %269 : vector<8x8x8xf32> to vector<4x16x8xf32>
    %271 = vector.extract_strided_slice %270 {offsets = [0, 0, 0], sizes = [1, 16, 8], strides = [1, 1, 1]} : vector<4x16x8xf32> to vector<1x16x8xf32>
    %272 = vector.shape_cast %271 : vector<1x16x8xf32> to vector<16x8xf32>
    %c0_199 = arith.constant 0 : index
    %c0_200 = arith.constant 0 : index
    %273 = vector.load %arg24[%c0_199, %c0_200] : memref<16x32xf32, #tpu.memory_space<vmem>>, vector<16x8xf32>
    tpu.vector_store %arg24[%c0_199, %c0_200], %272 {strides = array<i32>} : memref<16x32xf32, #tpu.memory_space<vmem>>, vector<16x8xf32>,
    %274 = vector.extract_strided_slice %270 {offsets = [1, 0, 0], sizes = [1, 16, 8], strides = [1, 1, 1]} : vector<4x16x8xf32> to vector<1x16x8xf32>
    %275 = vector.shape_cast %274 : vector<1x16x8xf32> to vector<16x8xf32>
    %c0_201 = arith.constant 0 : index
    %c8_202 = arith.constant 8 : index
    %276 = vector.load %arg24[%c0_201, %c8_202] : memref<16x32xf32, #tpu.memory_space<vmem>>, vector<16x8xf32>
    tpu.vector_store %arg24[%c0_201, %c8_202], %275 {strides = array<i32>} : memref<16x32xf32, #tpu.memory_space<vmem>>, vector<16x8xf32>,
    %277 = vector.extract_strided_slice %270 {offsets = [2, 0, 0], sizes = [1, 16, 8], strides = [1, 1, 1]} : vector<4x16x8xf32> to vector<1x16x8xf32>
    %278 = vector.shape_cast %277 : vector<1x16x8xf32> to vector<16x8xf32>
    %c0_203 = arith.constant 0 : index
    %c16_204 = arith.constant 16 : index
    %279 = vector.load %arg24[%c0_203, %c16_204] : memref<16x32xf32, #tpu.memory_space<vmem>>, vector<16x8xf32>
    tpu.vector_store %arg24[%c0_203, %c16_204], %278 {strides = array<i32>} : memref<16x32xf32, #tpu.memory_space<vmem>>, vector<16x8xf32>,
    %280 = vector.extract_strided_slice %270 {offsets = [3, 0, 0], sizes = [1, 16, 8], strides = [1, 1, 1]} : vector<4x16x8xf32> to vector<1x16x8xf32>
    %281 = vector.shape_cast %280 : vector<1x16x8xf32> to vector<16x8xf32>
    %c0_205 = arith.constant 0 : index
    %c24_206 = arith.constant 24 : index
    %282 = vector.load %arg24[%c0_205, %c24_206] : memref<16x32xf32, #tpu.memory_space<vmem>>, vector<16x8xf32>
    tpu.vector_store %arg24[%c0_205, %c24_206], %281 {strides = array<i32>} : memref<16x32xf32, #tpu.memory_space<vmem>>, vector<16x8xf32>,
    %c0_207 = arith.constant 0 : index
    %c0_208 = arith.constant 0 : index
    %283 = vector.load %arg24[%c0_207, %c0_208] : memref<16x32xf32, #tpu.memory_space<vmem>>, vector<16x32xf32>
    %c1_209 = arith.constant 1 : index
    %c0_210 = arith.constant 0 : index
    %c0_211 = arith.constant 0 : index
    %284 = vector.load %arg7[%c1_209, %c0_210, %c0_211] : memref<2x32x32xf32, #tpu.memory_space<vmem>>, vector<1x32x32xf32>
    %285 = vector.shape_cast %284 : vector<1x32x32xf32> to vector<32x32xf32>
    %cst_212 = arith.constant dense<0.000000e+00> : vector<16x32xf32>
    %286 = tpu.matmul %283, %285, %cst_212 {dimension_numbers = #tpu.dot_dimension_numbers<[1], [0], [0], [1], [0, 0, 1, 1], [], []>} : vector<16x32xf32>, vector<32x32xf32>, vector<16x32xf32> -> vector<16x32xf32>
    %c1_213 = arith.constant 1 : index
    %c0_214 = arith.constant 0 : index
    %c0_215 = arith.constant 0 : index
    %287 = vector.load %arg8[%c1_213, %c0_214, %c0_215] : memref<2x1x32xf32, #tpu.memory_space<vmem>>, vector<1x1x32xf32>
    %288 = vector.shape_cast %287 : vector<1x1x32xf32> to vector<1x32xf32>
    %289 = vector.broadcast %288 : vector<1x32xf32> to vector<16x32xf32>
    %290 = arith.addf %286, %289 : vector<16x32xf32>
    %291 = arith.addf %194, %290 : vector<16x32xf32>
    %c1_216 = arith.constant 1 : index
    %c0_217 = arith.constant 0 : index
    %c0_218 = arith.constant 0 : index
    %292 = vector.load %arg9[%c1_216, %c0_217, %c0_218] : memref<2x1x32xf32, #tpu.memory_space<vmem>>, vector<1x1x32xf32>
    %293 = vector.shape_cast %292 : vector<1x1x32xf32> to vector<1x32xf32>
    %c1_219 = arith.constant 1 : index
    %c0_220 = arith.constant 0 : index
    %c0_221 = arith.constant 0 : index
    %294 = vector.load %arg10[%c1_219, %c0_220, %c0_221] : memref<2x1x32xf32, #tpu.memory_space<vmem>>, vector<1x1x32xf32>
    %295 = vector.shape_cast %294 : vector<1x1x32xf32> to vector<1x32xf32>
    %cst_222 = arith.constant dense<0.000000e+00> : vector<16xf32>
    %296 = vector.multi_reduction <add>, %291, %cst_222 [1] : vector<16x32xf32> to vector<16xf32>
    %297 = vector.shape_cast %296 : vector<16xf32> to vector<16x1xf32>
    %cst_223 = arith.constant 3.200000e+01 : f32
    %298 = vector.broadcast %cst_223 : f32 to vector<16x1xf32>
    %299 = arith.divf %297, %298 : vector<16x1xf32>
    %300 = vector.broadcast %299 : vector<16x1xf32> to vector<16x32xf32>
    %301 = arith.subf %291, %300 : vector<16x32xf32>
    %302 = arith.mulf %301, %301 : vector<16x32xf32>
    %cst_224 = arith.constant dense<0.000000e+00> : vector<16xf32>
    %303 = vector.multi_reduction <add>, %302, %cst_224 [1] : vector<16x32xf32> to vector<16xf32>
    %304 = vector.shape_cast %303 : vector<16xf32> to vector<16x1xf32>
    %cst_225 = arith.constant 3.200000e+01 : f32
    %305 = vector.broadcast %cst_225 : f32 to vector<16x1xf32>
    %306 = arith.divf %304, %305 : vector<16x1xf32>
    %307 = vector.broadcast %299 : vector<16x1xf32> to vector<16x32xf32>
    %308 = arith.subf %291, %307 : vector<16x32xf32>
    %cst_226 = arith.constant 9.99999974E-6 : f32
    %309 = vector.broadcast %cst_226 : f32 to vector<16x1xf32>
    %310 = arith.addf %306, %309 : vector<16x1xf32>
    %311 = math.rsqrt %310 : vector<16x1xf32>
    %312 = vector.broadcast %311 : vector<16x1xf32> to vector<16x32xf32>
    %313 = arith.mulf %308, %312 : vector<16x32xf32>
    %314 = vector.broadcast %293 : vector<1x32xf32> to vector<16x32xf32>
    %315 = arith.mulf %313, %314 : vector<16x32xf32>
    %316 = vector.broadcast %295 : vector<1x32xf32> to vector<16x32xf32>
    %317 = arith.addf %315, %316 : vector<16x32xf32>
    %c1_227 = arith.constant 1 : index
    %c0_228 = arith.constant 0 : index
    %c0_229 = arith.constant 0 : index
    %318 = vector.load %arg11[%c1_227, %c0_228, %c0_229] : memref<2x32x64xf32, #tpu.memory_space<vmem>>, vector<1x32x64xf32>
    %319 = vector.shape_cast %318 : vector<1x32x64xf32> to vector<32x64xf32>
    %cst_230 = arith.constant dense<0.000000e+00> : vector<16x64xf32>
    %320 = tpu.matmul %317, %319, %cst_230 {dimension_numbers = #tpu.dot_dimension_numbers<[1], [0], [0], [1], [0, 0, 1, 1], [], []>} : vector<16x32xf32>, vector<32x64xf32>, vector<16x64xf32> -> vector<16x64xf32>
    %c1_231 = arith.constant 1 : index
    %c0_232 = arith.constant 0 : index
    %c0_233 = arith.constant 0 : index
    %321 = vector.load %arg12[%c1_231, %c0_232, %c0_233] : memref<2x1x64xf32, #tpu.memory_space<vmem>>, vector<1x1x64xf32>
    %322 = vector.shape_cast %321 : vector<1x1x64xf32> to vector<1x64xf32>
    %323 = vector.broadcast %322 : vector<1x64xf32> to vector<16x64xf32>
    %324 = arith.addf %320, %323 : vector<16x64xf32>
    %cst_234 = arith.constant 0.000000e+00 : f32
    %325 = vector.broadcast %cst_234 : f32 to vector<16x64xf32>
    %326 = arith.maximumf %324, %325 : vector<16x64xf32>
    %c1_235 = arith.constant 1 : index
    %c0_236 = arith.constant 0 : index
    %c0_237 = arith.constant 0 : index
    %327 = vector.load %arg13[%c1_235, %c0_236, %c0_237] : memref<2x64x32xf32, #tpu.memory_space<vmem>>, vector<1x64x32xf32>
    %328 = vector.shape_cast %327 : vector<1x64x32xf32> to vector<64x32xf32>
    %cst_238 = arith.constant dense<0.000000e+00> : vector<16x32xf32>
    %329 = tpu.matmul %326, %328, %cst_238 {dimension_numbers = #tpu.dot_dimension_numbers<[1], [0], [0], [1], [0, 0, 1, 1], [], []>} : vector<16x64xf32>, vector<64x32xf32>, vector<16x32xf32> -> vector<16x32xf32>
    %c1_239 = arith.constant 1 : index
    %c0_240 = arith.constant 0 : index
    %c0_241 = arith.constant 0 : index
    %330 = vector.load %arg14[%c1_239, %c0_240, %c0_241] : memref<2x1x32xf32, #tpu.memory_space<vmem>>, vector<1x1x32xf32>
    %331 = vector.shape_cast %330 : vector<1x1x32xf32> to vector<1x32xf32>
    %332 = vector.broadcast %331 : vector<1x32xf32> to vector<16x32xf32>
    %333 = arith.addf %329, %332 : vector<16x32xf32>
    %334 = arith.addf %317, %333 : vector<16x32xf32>
    %c1_242 = arith.constant 1 : index
    %c0_243 = arith.constant 0 : index
    %c0_244 = arith.constant 0 : index
    %335 = vector.load %arg15[%c1_242, %c0_243, %c0_244] : memref<2x1x32xf32, #tpu.memory_space<vmem>>, vector<1x1x32xf32>
    %336 = vector.shape_cast %335 : vector<1x1x32xf32> to vector<1x32xf32>
    %c1_245 = arith.constant 1 : index
    %c0_246 = arith.constant 0 : index
    %c0_247 = arith.constant 0 : index
    %337 = vector.load %arg16[%c1_245, %c0_246, %c0_247] : memref<2x1x32xf32, #tpu.memory_space<vmem>>, vector<1x1x32xf32>
    %338 = vector.shape_cast %337 : vector<1x1x32xf32> to vector<1x32xf32>
    %cst_248 = arith.constant dense<0.000000e+00> : vector<16xf32>
    %339 = vector.multi_reduction <add>, %334, %cst_248 [1] : vector<16x32xf32> to vector<16xf32>
    %340 = vector.shape_cast %339 : vector<16xf32> to vector<16x1xf32>
    %cst_249 = arith.constant 3.200000e+01 : f32
    %341 = vector.broadcast %cst_249 : f32 to vector<16x1xf32>
    %342 = arith.divf %340, %341 : vector<16x1xf32>
    %343 = vector.broadcast %342 : vector<16x1xf32> to vector<16x32xf32>
    %344 = arith.subf %334, %343 : vector<16x32xf32>
    %345 = arith.mulf %344, %344 : vector<16x32xf32>
    %cst_250 = arith.constant dense<0.000000e+00> : vector<16xf32>
    %346 = vector.multi_reduction <add>, %345, %cst_250 [1] : vector<16x32xf32> to vector<16xf32>
    %347 = vector.shape_cast %346 : vector<16xf32> to vector<16x1xf32>
    %cst_251 = arith.constant 3.200000e+01 : f32
    %348 = vector.broadcast %cst_251 : f32 to vector<16x1xf32>
    %349 = arith.divf %347, %348 : vector<16x1xf32>
    %350 = vector.broadcast %342 : vector<16x1xf32> to vector<16x32xf32>
    %351 = arith.subf %334, %350 : vector<16x32xf32>
    %cst_252 = arith.constant 9.99999974E-6 : f32
    %352 = vector.broadcast %cst_252 : f32 to vector<16x1xf32>
    %353 = arith.addf %349, %352 : vector<16x1xf32>
    %354 = math.rsqrt %353 : vector<16x1xf32>
    %355 = vector.broadcast %354 : vector<16x1xf32> to vector<16x32xf32>
    %356 = arith.mulf %351, %355 : vector<16x32xf32>
    %357 = vector.broadcast %336 : vector<1x32xf32> to vector<16x32xf32>
    %358 = arith.mulf %356, %357 : vector<16x32xf32>
    %359 = vector.broadcast %338 : vector<1x32xf32> to vector<16x32xf32>
    %360 = arith.addf %358, %359 : vector<16x32xf32>
    %c0_253 = arith.constant 0 : index
    %c0_254 = arith.constant 0 : index
    %361 = vector.load %arg17[%c0_253, %c0_254] : memref<32x64xf32, #tpu.memory_space<vmem>>, vector<32x64xf32>
    %cst_255 = arith.constant dense<0.000000e+00> : vector<16x64xf32>
    %362 = tpu.matmul %360, %361, %cst_255 {dimension_numbers = #tpu.dot_dimension_numbers<[1], [0], [0], [1], [0, 0, 1, 1], [], []>} : vector<16x32xf32>, vector<32x64xf32>, vector<16x64xf32> -> vector<16x64xf32>
    %c0_256 = arith.constant 0 : index
    %c0_257 = arith.constant 0 : index
    %363 = vector.load %arg18[%c0_256, %c0_257] : memref<1x64xf32, #tpu.memory_space<vmem>>, vector<1x64xf32>
    %364 = vector.broadcast %363 : vector<1x64xf32> to vector<16x64xf32>
    %365 = arith.addf %362, %364 : vector<16x64xf32>
    %366 = math.tanh %365 : vector<16x64xf32>
    %367 = vector.shape_cast %366 : vector<16x64xf32> to vector<2x8x64xf32>
    %c0_258 = arith.constant 0 : index
    %c0_259 = arith.constant 0 : index
    %368 = vector.load %arg19[%c0_258, %c0_259] : memref<1x64xf32, #tpu.memory_space<vmem>>, vector<1x64xf32>
    %369 = vector.shape_cast %368 : vector<1x64xf32> to vector<1x1x64xf32>
    %370 = vector.shape_cast %369 : vector<1x1x64xf32> to vector<1x1x64xf32>
    %371 = vector.broadcast %370 : vector<1x1x64xf32> to vector<2x1x64xf32>
    "tpu.trace_start"() <{level = 10 : i32, message = "bqa,bsa->bqs"}> : () -> ()
    %cst_260 = arith.constant dense<0.000000e+00> : vector<2x1x8xf32>
    %372 = tpu.matmul %371, %367, %cst_260 {dimension_numbers = #tpu.dot_dimension_numbers<[2], [2], [1], [1], [0, 0, 0, 1, 1, 1], [0], [0]>} : vector<2x1x64xf32>, vector<2x8x64xf32>, vector<2x1x8xf32> -> vector<2x1x8xf32>
    "tpu.trace_stop"() : () -> ()
    %c0_261 = arith.constant 0 : index
    %c0_262 = arith.constant 0 : index
    %373 = vector.load %arg20[%c0_261, %c0_262] : memref<1x1xf32, #tpu.memory_space<vmem>>, vector<1x1xf32>
    %374 = vector.shape_cast %373 : vector<1x1xf32> to vector<1x1x1xf32>
    %375 = vector.broadcast %374 : vector<1x1x1xf32> to vector<2x1x8xf32>
    %376 = arith.addf %372, %375 : vector<2x1x8xf32>
    %cst_263 = arith.constant dense<0xFF800000> : vector<2x1xf32>
    %377 = vector.multi_reduction <maximumf>, %376, %cst_263 [2] : vector<2x1x8xf32> to vector<2x1xf32>
    %378 = vector.shape_cast %377 : vector<2x1xf32> to vector<2x1x1xf32>
    %379 = vector.broadcast %378 : vector<2x1x1xf32> to vector<2x1x8xf32>
    %380 = arith.subf %376, %379 : vector<2x1x8xf32>
    %381 = math.exp %380 : vector<2x1x8xf32>
    %cst_264 = arith.constant dense<0.000000e+00> : vector<2x1xf32>
    %382 = vector.multi_reduction <add>, %381, %cst_264 [2] : vector<2x1x8xf32> to vector<2x1xf32>
    %383 = vector.shape_cast %382 : vector<2x1xf32> to vector<2x1x1xf32>
    %384 = tpu.reciprocal %383 {approx = true} : vector<2x1x1xf32> -> vector<2x1x1xf32>
    %385 = vector.broadcast %384 : vector<2x1x1xf32> to vector<2x1x8xf32>
    %386 = arith.mulf %381, %385 : vector<2x1x8xf32>
    %387 = vector.shape_cast %360 : vector<16x32xf32> to vector<2x8x32xf32>
    "tpu.trace_start"() <{level = 10 : i32, message = "bqs,bsd->bqd"}> : () -> ()
    %cst_265 = arith.constant dense<0.000000e+00> : vector<2x1x32xf32>
    %388 = tpu.matmul %386, %387, %cst_265 {dimension_numbers = #tpu.dot_dimension_numbers<[2], [1], [1], [2], [0, 0, 0, 1, 1, 2], [0], [0]>} : vector<2x1x8xf32>, vector<2x8x32xf32>, vector<2x1x32xf32> -> vector<2x1x32xf32>
    "tpu.trace_stop"() : () -> ()
    %389 = vector.shape_cast %388 : vector<2x1x32xf32> to vector<2x32xf32>
    %c0_266 = arith.constant 0 : index
    %c0_267 = arith.constant 0 : index
    %390 = vector.load %arg21[%c0_266, %c0_267] : memref<2x32xf32, #tpu.memory_space<vmem>>, vector<2x32xf32>
    tpu.vector_store %arg21[%c0_266, %c0_267], %389 {strides = array<i32>} : memref<2x32xf32, #tpu.memory_space<vmem>>, vector<2x32xf32>,
    return
  }
}

</mosaic_0001>

<bundles_post_ra>
// kernel: query_encoder_forward.1
= control target key start
LH: loop header
LB: loop body
LE: loop exit
PB: predicated region body
PF: predicated region fallthrough
CT: control target
= control target key end

     0   :  { %s6318_s0 = inlined_call_operand.vmem [shape: f32[16,64], index: 0, kind: input, shape index: {}]   ;;  %s6319_s1 = inlined_call_operand.vmem [shape: f32[64,48], index: 1, kind: input, shape index: {}]   ;;  %s6320_s2 = inlined_call_operand.vmem [shape: f32[1,48], index: 2, kind: input, shape index: {}]   ;;  %s6321_s3 = inlined_call_operand.vmem [shape: f32[48,32], index: 3, kind: input, shape index: {}]   ;;  %s6322_s4 = inlined_call_operand.vmem [shape: f32[1,32], index: 4, kind: input, shape index: {}]   ;;  %s6323_s5 = inlined_call_operand.vmem [shape: f32[2,32,96], index: 5, kind: input, shape index: {}]   ;;  %s6324_s6 = inlined_call_operand.vmem [shape: f32[2,1,96], index: 6, kind: input, shape index: {}]   ;;  %s6325_s7 = inlined_call_operand.vmem [shape: f32[2,32,32], index: 7, kind: input, shape index: {}]   ;;  %s6326_s8 = inlined_call_operand.vmem [shape: f32[2,1,32], index: 8, kind: input, shape index: {}]   ;;  %s6327_s9 = inlined_call_operand.vmem [shape: f32[2,1,32], index: 9, kind: input, shape index: {}]   ;;  %s6328_s10 = inlined_call_operand.vmem [shape: f32[2,1,32], index: 10, kind: input, shape index: {}]   ;;  %s6329_s11 = inlined_call_operand.vmem [shape: f32[2,32,64], index: 11, kind: input, shape index: {}]   ;;  %s6330_s12 = inlined_call_operand.vmem [shape: f32[2,1,64], index: 12, kind: input, shape index: {}]   ;;  %s6331_s13 = inlined_call_operand.vmem [shape: f32[2,64,32], index: 13, kind: input, shape index: {}]   ;;  %s6332_s14 = inlined_call_operand.vmem [shape: f32[2,1,32], index: 14, kind: input, shape index: {}]   ;;  %s6333_s15 = inlined_call_operand.vmem [shape: f32[2,1,32], index: 15, kind: input, shape index: {}]   ;;  %s6334_s16 = inlined_call_operand.vmem [shape: f32[2,1,32], index: 16, kind: input, shape index: {}]   ;;  %s6335_s17 = inlined_call_operand.vmem [shape: f32[32,64], index: 17, kind: input, shape index: {}]   ;;  %s6336_s18 = inlined_call_operand.vmem [shape: f32[1,64], index: 18, kind: input, shape index: {}]   ;;  %s6337_s19 = inlined_call_operand.vmem [shape: f32[1,64], index: 19, kind: input, shape index: {}]   ;;  %s6338_s20 = inlined_call_operand.<no memory space> [shape: f32[1,1], index: 20, kind: input, shape index: {}]   ;;  %s6339_s21 = inlined_call_operand.hbm [shape: f32[2,32], index: 21, kind: output, shape index: {}]  }
   0x1   :  { %6358 = sst [smem:[#allocation9_spill]] %s6318_s0  ;;  %v26_v0 = vstv %s6338_s20 }
   0x2   :  { %6359 = sst [smem:[#allocation10_spill]] %s6319_s1  ;;  %27 = vst [vmem:[#allocation5] sm:$0x1] %v26_v0 }
   0x3   :  { %6360 = sst [smem:[#allocation11_spill]] %s6320_s2 }
   0x4   :  { %6361 = sst [smem:[#allocation12_spill]] %s6321_s3 }
   0x5   :  { %6362 = sst [smem:[#allocation13_spill]] %s6322_s4 }
   0x6   :  { %6363 = sst [smem:[#allocation14_spill]] %s6323_s5 }
   0x7   :  { %s6364_s3 = sld [smem:[#allocation10_spill]]  ;;  %vm88_vm0 = vcmask 523264  }
   0x8   :  { %s6365_s22 = sld [smem:[#allocation9_spill]] }
   0xd   :  { %v80_v1 = vld [vmem:[%s6364_s3 + $0x38] sm:$0xff]  ;;  %v79_v2 = vld [vmem:[%s6364_s3 + $0x30] sm:$0xff]  ;;  %v78_v3 = vld [vmem:[%s6364_s3 + $0x28] sm:$0xff] }
   0xe   :  { %4963 = vmatprep.subr.mxu0 %v80_v1  ;;  %v71_v4 = vld [vmem:[%s6365_s22] sm:$0xff] }
   0xf   :  { %4964 = vmatpush3.msra.mxu0 %v80_v1  ;;  %4979 = vmatprep.mubr.msk.f32.mxu0 %vm88_vm0, %v71_v4 }
  0x10   :  { %4965 = vmatprep.subr.mxu0 %v79_v2 }
  0x11   :  { %28 = vsyncpa [#allocation7], 0  ;;  %4966 = vmatpush3.msra.mxu0 %v79_v2  ;;  %v77_v5 = vld [vmem:[%s6364_s3 + $0x20] sm:$0xff]  ;;  %v76_v6 = vld [vmem:[%s6364_s3 + $0x18] sm:$0xff]  ;;  %s6366_s20 = sld [smem:[#allocation12_spill]]  ;;  %vm215_vm5 = vcmask 392192  }
  0x12   :  { %4967 = vmatprep.subr.mxu0 %v78_v3  ;;  %v75_v7 = vld [vmem:[%s6364_s3 + $0x10] sm:$0xff]  ;;  %v74_v8 = vld [vmem:[%s6364_s3 + $0x8] sm:$0xff]  ;;  %v73_v9 = vld [vmem:[%s6364_s3] sm:$0xff]  ;;  %s6367_s4 = sld [smem:[#allocation11_spill]]  ;;  %vm340_vm10 = vcmask 261120   ;;  %vm422_vm11 = vcmask 785408  }
  0x13   :  { %4968 = vmatpush3.msra.mxu0 %v78_v3  ;;  %v72_v10 = vld [vmem:[%s6365_s22 + $0x8] sm:$0xff]  ;;  %s6369_s27 = sld [smem:[#allocation13_spill]]  ;;  %vm427_vm12 = vcmask 64512   ;;  %s5451_s0 = smov 88   ;;  %vm5453_vm13 = vmmov 0   ;;  %vm1887_vm14 = vcmask 130112  }
  0x14   :  { %4969 = vmatprep.subr.mxu0 %v77_v5  ;;  %s5454_s30 = smov 120   ;;  %s5455_s5 = smov 80   ;;  %vm1898_vm15 = vcmask 195712  }
  0x15   :  { %4970 = vmatpush3.msra.mxu0 %v77_v5  ;;  %s5456_s23 = smov 112   ;;  %s5457_s1 = smov 72  }
  0x16   :  { %4971 = vmatprep.subr.mxu0 %v76_v6  ;;  %s5458_s3 = smov 104   ;;  %s6350_s24 = smov 64  }
  0x17   :  { %4972 = vmatpush3.msra.mxu0 %v76_v6  ;;  %v207_v11 = vld [vmem:[%s6366_s20 + $0x28] sm:$0xff]  ;;  %v206_v12 = vld [vmem:[%s6366_s20 + $0x20] sm:$0xff]  ;;  %v205_v13 = vld [vmem:[%s6366_s20 + $0x18] sm:$0xff]  ;;  %s6348_s22 = smov 56   ;;  %s6346_s2 = smov 48  }
  0x18   :  { %4973 = vmatprep.subr.mxu0 %v75_v7  ;;  %4982 = vmatprep.subr.mxu1 %v207_v11  ;;  %v204_v14 = vld [vmem:[%s6366_s20 + $0x10] sm:$0xff]  ;;  %v203_v15 = vld [vmem:[%s6366_s20 + $0x8] sm:$0xff]  ;;  %v202_v16 = vld [vmem:[%s6366_s20] sm:$0xff]  ;;  %s6368_s20 = sld [smem:[#allocation14_spill]]  ;;  %s6344_s25 = smov 40  }
  0x19   :  { %4974 = vmatpush3.msra.mxu0 %v75_v7  ;;  %4983 = vmatpush3.msra.mxu1 %v207_v11  ;;  %v4688_v17 = vld [vmem:[%s6367_s4] ss:$0 sm:$0xff]  ;;  %s5452_s4 = smov 96   ;;  %s6356_s26 = smov 8  }
  0x1a   :  { %4975 = vmatprep.subr.mxu0 %v74_v8  ;;  %4984 = vmatprep.subr.mxu1 %v206_v12  ;;  %v4691_v54 = vld [vmem:[%s6369_s27] ss:$0 sm:$0xff]  ;;  %s6375_s29 = smov 16   ;;  %s6376_s27 = smov 24  }
  0x1b   :  { %4976 = vmatpush3.msra.mxu0 %v74_v8  ;;  %4985 = vmatpush3.msra.mxu1 %v206_v12 }
  0x1c   :  { %4977 = vmatprep.subr.mxu0 %v73_v9  ;;  %4986 = vmatprep.subr.mxu1 %v205_v13 }
  0x1d   :  { %4978 = vmatpush3.msra.mxu0 %v73_v9  ;;  %4987 = vmatpush3.msra.mxu1 %v205_v13 }
  0x1e   :  { %4980 = vmatmul.mubr.msk.f32.vlgmr.msra.gmra.mxu0 %vm88_vm0, %v72_v10  ;;  %4988 = vmatprep.subr.mxu1 %v204_v14  ;;  %v332_v50 = vld [vmem:[%s6368_s20 + $0x18] sm:$0xff]  ;;  %v331_v51 = vld [vmem:[%s6368_s20 + $0x10] sm:$0xff]  ;;  %v330_v52 = vld [vmem:[%s6368_s20 + $0x8] sm:$0xff] }
  0x1f   :  { %4989 = vmatpush3.msra.mxu1 %v204_v14  ;;  %v329_v53 = vld [vmem:[%s6368_s20] sm:$0xff] }
  0x20   :  { %4990 = vmatprep.subr.mxu1 %v203_v15 }
  0x21   :  { %4991 = vmatpush3.msra.mxu1 %v203_v15 }
  0x22   :  { %4992 = vmatprep.subr.mxu1 %v202_v16 }
  0x23   :  { %4993 = vmatpush3.msra.mxu1 %v202_v16 }
  0x24   :  { %4997 = vmatprep.subr.mxu1 %v332_v50 }
  0xde   :  { %v4981_v18 = vpop.f32.mrf.mxu0 }
  0xdf   :  { %v167_v19 = vadd.f32 %v4981_v18, %v4688_v17 }
  0xe0   :  { %v161_v20 = vpop.f32.mrf.mxu0 }
  0xe1   :  { %v173_v21 = vmin.f32 %v167_v19, 20.0  ;;  %v162_v22 = vadd.f32 %v4688_v17, %v161_v20  ;;  %vm171_vm2 = vcmp.gt.f32.partialorder %v167_v19, 20.0 }
  0xe3   :  { %v176_v23 = vmul.f32 1.442695, %v173_v21  ;;  %v172_v24 = vmin.f32 %v162_v22, 20.0  ;;  %vm170_vm4 = vcmp.gt.f32.partialorder %v162_v22, 20.0 }
  0xe5   :  { %5312 = vpow2.f32 %v176_v23  ;;  %v174_v25 = vmul.f32 1.442695, %v172_v24  ;;  %v4694_v23 = vld [vmem:[%s6324_s6] ss:$0 sm:$0xff] }
  0xe7   :  { %5314 = vpow2.f32 %v174_v25 }
  0xf2   :  { %v5313_v26 = vpop.eup %5312 }
  0xf3   :  { %v187_v27 = vadd.f32 1.0, %v5313_v26  ;;  %v190_v30 = vmul.f32 -0.5, %v5313_v26  ;;  %v193_v33 = vand.u32 2147483647, %v5313_v26 }
  0xf4   :  { %v5315_v28 = vpop.eup %5314 }
  0xf5   :  { %5316 = vlog2.f32 %v187_v27  ;;  %v178_v29 = vadd.f32 1.0, %v5315_v28  ;;  %v181_v31 = vmul.f32 -0.5, %v5315_v28  ;;  %v191_v32 = vadd.f32 1.0, %v190_v30 }
  0xf6   :  { %v184_v36 = vand.u32 2147483647, %v5315_v28  ;;  %vm194_vm1 = vcmp.lt.f32.partialorder %v193_v33, 0.0004427343 }
  0xf7   :  { %5318 = vlog2.f32 %v178_v29  ;;  %v182_v34 = vadd.f32 1.0, %v181_v31  ;;  %v192_v38 = vmul.f32 %v5313_v26, %v191_v32 }
  0xf8   :  { %vm185_vm3 = vcmp.lt.f32.partialorder %v184_v36, 0.0004427343 }
  0xf9   :  { %v183_v42 = vmul.f32 %v5315_v28, %v182_v34  ;;  %v5450_v28 = vmov 0.0  }
  0xfa   :  { %5008 = vmatprep.subr.mxu0 %v5450_v28  ;;  %5010 = vmatprep.mubr.msk.f32.mxu0 %vm5453_vm13, %v5450_v28 }
 0x102   :  { %v5317_v35 = vpop.eup %5316 }
 0x103   :  { %v189_v37 = vmul.f32 0.6931472, %v5317_v35 }
 0x104   :  { %v5319_v39 = vpop.eup %5318 }
 0x105   :  { %v195_v40 = vsel %vm194_vm1, %v192_v38, %v189_v37  ;;  %v180_v41 = vmul.f32 0.6931472, %v5319_v39  ;;  %vm1909_vm1 = vcmask 261312  }
 0x106   :  { %v197_v43 = vsel %vm171_vm2, %v167_v19, %v195_v40  ;;  %vm4497_vm2 = vcmask 57344  }
 0x107   :  { %v186_v44 = vsel %vm185_vm3, %v183_v42, %v180_v41  ;;  %5320 = vtanh.f32 %v197_v43  ;;  %vm4672_vm3 = vcmask 254976  }
 0x108   :  { %v196_v45 = vsel %vm170_vm4, %v162_v22, %v186_v44 }
 0x109   :  { %5322 = vtanh.f32 %v196_v45 }
 0x114   :  { %v5321_v46 = vpop.eup %5320 }
 0x115   :  { %v201_v49 = vmul.f32 %v5321_v46, %v167_v19 }
 0x116   :  { %v5323_v47 = vpop.eup %5322 }
 0x117   :  { %v200_v48 = vmul.f32 %v5323_v47, %v162_v22 }
 0x119   :  { %4994 = vmatprep.mubr.msk.f32.mxu1 %vm215_vm5, %v200_v48 }
 0x11a   :  { %4995 = vmatmul.mubr.msk.f32.vlgmr.msra.gmra.mxu1 %vm215_vm5, %v201_v49 }
 0x11b   :  { %4998 = vmatpush3.msra.mxu1 %v332_v50 }
 0x11c   :  { %4999 = vmatprep.subr.mxu1 %v331_v51 }
 0x11d   :  { %5000 = vmatpush3.msra.mxu1 %v331_v51 }
 0x11e   :  { %5001 = vmatprep.subr.mxu1 %v330_v52 }
 0x11f   :  { %5002 = vmatpush3.msra.mxu1 %v330_v52 }
 0x120   :  { %5003 = vmatprep.subr.mxu1 %v329_v53 }
 0x121   :  { %5004 = vmatpush3.msra.mxu1 %v329_v53 }
 0x122   :  { %5018 = vmatprep.subr.mxu1 %v5450_v28 }
 0x1da   :  { %v4996_v55 = vpop.f32.mrf.mxu1 }
 0x1db   :  { %v294_v56 = vadd.f32 %v4996_v55, %v4691_v54 }
 0x1dc   :  { %v288_v57 = vpop.f32.mrf.mxu1 }
 0x1dd   :  { %v300_v58 = vmin.f32 %v294_v56, 20.0  ;;  %v289_v59 = vadd.f32 %v4691_v54, %v288_v57  ;;  %vm298_vm7 = vcmp.gt.f32.partialorder %v294_v56, 20.0 }
 0x1df   :  { %v303_v60 = vmul.f32 1.442695, %v300_v58  ;;  %v299_v61 = vmin.f32 %v289_v59, 20.0  ;;  %vm297_vm9 = vcmp.gt.f32.partialorder %v289_v59, 20.0 }
 0x1e1   :  { %5324 = vpow2.f32 %v303_v60  ;;  %v301_v62 = vmul.f32 1.442695, %v299_v61 }
 0x1e3   :  { %5326 = vpow2.f32 %v301_v62 }
 0x1ee   :  { %v5325_v63 = vpop.eup %5324 }
 0x1ef   :  { %v314_v0 = vadd.f32 1.0, %v5325_v63  ;;  %v317_v3 = vmul.f32 -0.5, %v5325_v63  ;;  %v320_v6 = vand.u32 2147483647, %v5325_v63 }
 0x1f0   :  { %v5327_v1 = vpop.eup %5326 }
 0x1f1   :  { %5328 = vlog2.f32 %v314_v0  ;;  %v305_v2 = vadd.f32 1.0, %v5327_v1  ;;  %v308_v4 = vmul.f32 -0.5, %v5327_v1  ;;  %v318_v5 = vadd.f32 1.0, %v317_v3 }
 0x1f2   :  { %v311_v9 = vand.u32 2147483647, %v5327_v1  ;;  %vm321_vm6 = vcmp.lt.f32.partialorder %v320_v6, 0.0004427343 }
 0x1f3   :  { %5330 = vlog2.f32 %v305_v2  ;;  %v309_v7 = vadd.f32 1.0, %v308_v4  ;;  %v319_v11 = vmul.f32 %v5325_v63, %v318_v5 }
 0x1f4   :  { %vm312_vm8 = vcmp.lt.f32.partialorder %v311_v9, 0.0004427343 }
 0x1f5   :  { %v310_v15 = vmul.f32 %v5327_v1, %v309_v7 }
 0x1fe   :  { %v5329_v8 = vpop.eup %5328 }
 0x1ff   :  { %v316_v10 = vmul.f32 0.6931472, %v5329_v8 }
 0x200   :  { %v5331_v12 = vpop.eup %5330 }
 0x201   :  { %v322_v13 = vsel %vm321_vm6, %v319_v11, %v316_v10  ;;  %v307_v14 = vmul.f32 0.6931472, %v5331_v12 }
 0x202   :  { %v324_v16 = vsel %vm298_vm7, %v294_v56, %v322_v13 }
 0x203   :  { %v313_v17 = vsel %vm312_vm8, %v310_v15, %v307_v14  ;;  %5332 = vtanh.f32 %v324_v16 }
 0x204   :  { %v323_v18 = vsel %vm297_vm9, %v289_v59, %v313_v17 }
 0x205   :  { %5334 = vtanh.f32 %v323_v18 }
 0x210   :  { %v5333_v19 = vpop.eup %5332 }
 0x211   :  { %v5651_v22 = vmul.f32 %v5333_v19, %v294_v56 }
 0x212   :  { %v5335_v20 = vpop.eup %5334 }
 0x213   :  { %v5649_v21 = vmul.f32 %v5335_v20, %v289_v59 }
 0x215   :  { %5005 = vmatprep.mubr.msk.f32.mxu1 %vm340_vm10, %v5649_v21 }
 0x216   :  { %5006 = vmatmul.mubr.msk.f32.vlgmr.msra.gmra.mxu1 %vm340_vm10, %v5651_v22 }
 0x217   :  { %5020 = vmatprep.mubr.msk.f32.mxu1 %vm5453_vm13, %v5450_v28 }
 0x2d6   :  { %v5007_v24 = vpop.f32.mrf.mxu1 }
 0x2d7   :  { %v419_v25 = vadd.f32 %v5007_v24, %v4694_v23 }
 0x2d8   :  { %v413_v26 = vpop.f32.mrf.mxu1 }
 0x2d9   :  { %424 = vst.msk [vmem:[#allocation2 + $0x8] sm:$0xff] %vm422_vm11, %v419_v25  ;;  %v414_v27 = vadd.f32 %v4694_v23, %v413_v26 }
 0x2db   :  { %423 = vst.msk [vmem:[#allocation2] sm:$0xff] %vm422_vm11, %v414_v27 }
 0x2e0   :  { %v5664_v29 = vld [vmem:[#allocation2 + $0x8] sm:$0xff] }
 0x2e1   :  { %429 = vst.msk [vmem:[#allocation3 + $0x8] sm:$0xff] %vm427_vm12, %v5664_v29  ;;  %488 = vrot.lane.b32.xlu1 %v5664_v29, %s5451_s0  ;;  %475 = vrot.lane.b32.xlu0 %v5664_v29, %s5452_s4 }
 0x2e2   :  { %v5672_v30 = vld [vmem:[#allocation2] sm:$0xff] }
 0x2e3   :  { %428 = vst.msk [vmem:[#allocation3] sm:$0xff] %vm427_vm12, %v5672_v30 }
 0x2e5   :  { %436 = vrot.lane.b32.xlu1 %v5664_v29, %s5454_s30  ;;  %473 = vrot.lane.b32.xlu0 %v5672_v30, %s5452_s4 }
 0x2e8   :  { %v574_v44 = vld [vmem:[#allocation3 + $0x8] sm:$0xff] }
 0x2e9   :  { %501 = vrot.lane.b32.xlu1 %v5664_v29, %s5455_s5  ;;  %434 = vrot.lane.b32.xlu0 %v5672_v30, %s5454_s30 }
 0x2ea   :  { %v573_v40 = vld [vmem:[#allocation3] sm:$0xff] }
 0x2ed   :  { %486 = vrot.lane.b32.xlu1 %v5672_v30, %s5451_s0  ;;  %499 = vrot.lane.b32.xlu0 %v5672_v30, %s5455_s5 }
 0x2f1   :  { %449 = vrot.lane.b32.xlu1 %v5664_v29, %s5456_s23  ;;  %447 = vrot.lane.b32.xlu0 %v5672_v30, %s5456_s23 }
 0x2f5   :  { %514 = vrot.lane.b32.xlu1 %v5664_v29, %s5457_s1  ;;  %512 = vrot.lane.b32.xlu0 %v5672_v30, %s5457_s1 }
 0x2f9   :  { %462 = vrot.lane.b32.xlu1 %v5664_v29, %s5458_s3  ;;  %460 = vrot.lane.b32.xlu0 %v5672_v30, %s5458_s3 }
 0x353   :  { %v489_v31 = vpop.permute.xlu1 %488  ;;  %v476_v32 = vpop.permute.xlu0 %475 }
 0x354   :  { %494 = vst.msk [vmem:[#allocation3 + $0x58] sm:$0xff] %vm427_vm12, %v489_v31  ;;  %481 = vst.msk [vmem:[#allocation3 + $0x48] sm:$0xff] %vm427_vm12, %v476_v32 }
 0x357   :  { %v437_v33 = vpop.permute.xlu1 %436  ;;  %v474_v34 = vpop.permute.xlu0 %473 }
 0x358   :  { %442 = vst.msk [vmem:[#allocation3 + $0x18] sm:$0xff] %vm427_vm12, %v437_v33  ;;  %480 = vst.msk [vmem:[#allocation3 + $0x40] sm:$0xff] %vm427_vm12, %v474_v34 }
 0x35b   :  { %v502_v35 = vpop.permute.xlu1 %501  ;;  %v435_v36 = vpop.permute.xlu0 %434  ;;  %v582_v43 = vld [vmem:[#allocation3 + $0x48] sm:$0xff]  ;;  %v584_v48 = vld [vmem:[#allocation3 + $0x58] sm:$0xff] }
 0x35c   :  { %507 = vst.msk [vmem:[#allocation3 + $0x68] sm:$0xff] %vm427_vm12, %v502_v35  ;;  %441 = vst.msk [vmem:[#allocation3 + $0x10] sm:$0xff] %vm427_vm12, %v435_v36 }
 0x35f   :  { %v487_v37 = vpop.permute.xlu1 %486  ;;  %v500_v38 = vpop.permute.xlu0 %499  ;;  %v581_v39 = vld [vmem:[#allocation3 + $0x40] sm:$0xff]  ;;  %v576_v50 = vld [vmem:[#allocation3 + $0x18] sm:$0xff] }
 0x360   :  { %493 = vst.msk [vmem:[#allocation3 + $0x50] sm:$0xff] %vm427_vm12, %v487_v37  ;;  %506 = vst.msk [vmem:[#allocation3 + $0x60] sm:$0xff] %vm427_vm12, %v500_v38  ;;  %5009 = vmatpush3.xpose.msk.msra.mxu0 %vm427_vm12, %v581_v39 }
 0x361   :  { %5013 = vmatprep.subr.mxu0 %v5450_v28 }
 0x363   :  { %v450_v41 = vpop.permute.xlu1 %449  ;;  %v448_v42 = vpop.permute.xlu0 %447  ;;  %5011 = vmatmul.mubr.msk.f32.vlgmr.msra.gmra.mxu0 %vm427_vm12, %v573_v40  ;;  %v575_v49 = vld [vmem:[#allocation3 + $0x10] sm:$0xff]  ;;  %v586_v54 = vld [vmem:[#allocation3 + $0x68] sm:$0xff] }
 0x364   :  { %455 = vst.msk [vmem:[#allocation3 + $0x28] sm:$0xff] %vm427_vm12, %v450_v41  ;;  %454 = vst.msk [vmem:[#allocation3 + $0x20] sm:$0xff] %vm427_vm12, %v448_v42  ;;  %5014 = vmatpush3.xpose.msk.msra.mxu0 %vm427_vm12, %v582_v43  ;;  %5015 = vmatprep.mubr.msk.f32.mxu0 %vm5453_vm13, %v5450_v28 }
 0x365   :  { %5023 = vmatprep.subr.mxu0 %v5450_v28 }
 0x367   :  { %v515_v45 = vpop.permute.xlu1 %514  ;;  %v513_v46 = vpop.permute.xlu0 %512  ;;  %5016 = vmatmul.mubr.msk.f32.vlgmr.msra.gmra.mxu0 %vm427_vm12, %v574_v44  ;;  %v583_v47 = vld [vmem:[#allocation3 + $0x50] sm:$0xff]  ;;  %v585_v53 = vld [vmem:[#allocation3 + $0x60] sm:$0xff] }
 0x368   :  { %520 = vst.msk [vmem:[#allocation3 + $0x78] sm:$0xff] %vm427_vm12, %v515_v45  ;;  %519 = vst.msk [vmem:[#allocation3 + $0x70] sm:$0xff] %vm427_vm12, %v513_v46  ;;  %5019 = vmatpush3.xpose.msk.msra.mxu1 %vm427_vm12, %v583_v47  ;;  %5024 = vmatpush3.xpose.msk.msra.mxu0 %vm427_vm12, %v584_v48 }
 0x369   :  { %5025 = vmatprep.mubr.msk.f32.mxu0 %vm5453_vm13, %v5450_v28  ;;  %5028 = vmatprep.subr.mxu1 %v5450_v28 }
 0x36a   :  { %5033 = vmatprep.subr.mxu0 %v5450_v28 }
 0x36b   :  { %v463_v51 = vpop.permute.xlu1 %462  ;;  %5021 = vmatmul.mubr.msk.f32.vlgmr.msra.gmra.mxu1 %vm427_vm12, %v575_v49  ;;  %v461_v52 = vpop.permute.xlu0 %460  ;;  %5026 = vmatmul.mubr.msk.f32.vlgmr.msra.gmra.mxu0 %vm427_vm12, %v576_v50  ;;  %v577_v55 = vld [vmem:[#allocation3 + $0x20] sm:$0xff]  ;;  %v578_v56 = vld [vmem:[#allocation3 + $0x28] sm:$0xff] }
 0x36c   :  { %468 = vst.msk [vmem:[#allocation3 + $0x38] sm:$0xff] %vm427_vm12, %v463_v51  ;;  %467 = vst.msk [vmem:[#allocation3 + $0x30] sm:$0xff] %vm427_vm12, %v461_v52  ;;  %5029 = vmatpush3.xpose.msk.msra.mxu1 %vm427_vm12, %v585_v53  ;;  %5034 = vmatpush3.xpose.msk.msra.mxu0 %vm427_vm12, %v586_v54 }
 0x36d   :  { %5030 = vmatprep.mubr.msk.f32.mxu1 %vm5453_vm13, %v5450_v28  ;;  %5035 = vmatprep.mubr.msk.f32.mxu0 %vm5453_vm13, %v5450_v28 }
 0x36e   :  { %5038 = vmatprep.subr.mxu1 %v5450_v28  ;;  %5043 = vmatprep.subr.mxu0 %v5450_v28 }
 0x36f   :  { %5031 = vmatmul.mubr.msk.f32.vlgmr.msra.gmra.mxu1 %vm427_vm12, %v577_v55  ;;  %5036 = vmatmul.mubr.msk.f32.vlgmr.msra.gmra.mxu0 %vm427_vm12, %v578_v56  ;;  %v587_v57 = vld [vmem:[#allocation3 + $0x70] sm:$0xff]  ;;  %v588_v58 = vld [vmem:[#allocation3 + $0x78] sm:$0xff] }
 0x370   :  { %5039 = vmatpush3.xpose.msk.msra.mxu1 %vm427_vm12, %v587_v57  ;;  %5044 = vmatpush3.xpose.msk.msra.mxu0 %vm427_vm12, %v588_v58 }
 0x371   :  { %5040 = vmatprep.mubr.msk.f32.mxu1 %vm5453_vm13, %v5450_v28  ;;  %5045 = vmatprep.mubr.msk.f32.mxu0 %vm5453_vm13, %v5450_v28 }
 0x372   :  { %5048 = vmatprep.subr.mxu1 %v5450_v28  ;;  %5053 = vmatprep.subr.mxu0 %v5450_v28 }
 0x373   :  { %v579_v59 = vld [vmem:[#allocation3 + $0x30] sm:$0xff]  ;;  %v580_v60 = vld [vmem:[#allocation3 + $0x38] sm:$0xff] }
 0x374   :  { %5041 = vmatmul.mubr.msk.f32.vlgmr.msra.gmra.mxu1 %vm427_vm12, %v579_v59  ;;  %5046 = vmatmul.mubr.msk.f32.vlgmr.msra.gmra.mxu0 %vm427_vm12, %v580_v60 }
 0x375   :  { %5050 = vmatprep.mubr.msk.f32.mxu1 %vm5453_vm13, %v5450_v28  ;;  %5055 = vmatprep.mubr.msk.f32.mxu0 %vm5453_vm13, %v5450_v28 }
 0x423   :  { %v669_v61 = vpop.f32.mrf.mxu0 }
 0x424   :  { %v1205_v62 = vsel %vm427_vm12, %v669_v61, -inf }
 0x425   :  { %1206 = vmax.xlane.f32.xlu0 %v1205_v62  ;;  %v5012_v63 = vpop.f32.mrf.mxu0 }
 0x427   :  { %v745_v0 = vpop.f32.mrf.mxu0 }
 0x428   :  { %v1208_v1 = vsel %vm427_vm12, %v745_v0, -inf }
 0x429   :  { %1209 = vmax.xlane.f32.xlu1 %v1208_v1  ;;  %v5017_v2 = vpop.f32.mrf.mxu0 }
 0x42b   :  { %v821_v3 = vpop.f32.mrf.mxu1  ;;  %v897_v4 = vpop.f32.mrf.mxu0 }
 0x42c   :  { %v1211_v5 = vsel %vm427_vm12, %v821_v3, -inf  ;;  %v1214_v11 = vsel %vm427_vm12, %v897_v4, -inf }
 0x42d   :  { %v5022_v6 = vpop.f32.mrf.mxu1  ;;  %1212 = vmax.xlane.f32.xlu0 %v1211_v5  ;;  %v5027_v7 = vpop.f32.mrf.mxu0 }
 0x42f   :  { %v973_v8 = vpop.f32.mrf.mxu1  ;;  %v1049_v9 = vpop.f32.mrf.mxu0 }
 0x430   :  { %v1217_v10 = vsel %vm427_vm12, %v973_v8, -inf  ;;  %v1220_v16 = vsel %vm427_vm12, %v1049_v9, -inf }
 0x431   :  { %v5032_v12 = vpop.f32.mrf.mxu1  ;;  %1218 = vmax.xlane.f32.xlu1 %v1217_v10  ;;  %1215 = vmax.xlane.f32.xlu0 %v1214_v11  ;;  %v5037_v13 = vpop.f32.mrf.mxu0 }
 0x434   :  { %v1125_v14 = vpop.f32.mrf.mxu1  ;;  %v1201_v15 = vpop.f32.mrf.mxu0 }
 0x435   :  { %1221 = vmax.xlane.f32.xlu0 %v1220_v16  ;;  %v1223_v17 = vsel %vm427_vm12, %v1125_v14, -inf  ;;  %v1226_v20 = vsel %vm427_vm12, %v1201_v15, -inf }
 0x436   :  { %v5042_v18 = vpop.f32.mrf.mxu1  ;;  %1224 = vmax.xlane.f32.xlu1 %v1223_v17  ;;  %v5047_v19 = vpop.f32.mrf.mxu0 }
 0x439   :  { %1227 = vmax.xlane.f32.xlu0 %v1226_v20 }
 0x447   :  { %525 = vrot.lane.b32.xlu1 %v5672_v30, %s6350_s24 }
 0x44b   :  { %538 = vrot.lane.b32.xlu1 %v5672_v30, %s6348_s22 }
 0x44f   :  { %540 = vrot.lane.b32.xlu1 %v5664_v29, %s6348_s22  ;;  %527 = vrot.lane.b32.xlu0 %v5664_v29, %s6350_s24  ;;  %s6354_s24 = smov 16   ;;  %s6352_s22 = smov 24  }
 0x453   :  { %553 = vrot.lane.b32.xlu1 %v5664_v29, %s6346_s2  ;;  %551 = vrot.lane.b32.xlu0 %v5672_v30, %s6346_s2 }
 0x4ae   :  { %v1207_v23 = vpop.xlane.xlu0 %1206 }
 0x4af   :  { %v1229_v24 = vsub.f32 %v669_v61, %v1207_v23 }
 0x4b1   :  { %v1237_v25 = vmul.f32 1.442695, %v1229_v24 }
 0x4b2   :  { %v1210_v26 = vpop.xlane.xlu1 %1209 }
 0x4b3   :  { %5336 = vpow2.f32 %v1237_v25  ;;  %v1230_v27 = vsub.f32 %v745_v0, %v1210_v26 }
 0x4b5   :  { %v1239_v31 = vmul.f32 1.442695, %v1230_v27 }
 0x4b6   :  { %v1213_v32 = vpop.xlane.xlu0 %1212 }
 0x4b7   :  { %5338 = vpow2.f32 %v1239_v31  ;;  %v1231_v33 = vsub.f32 %v821_v3, %v1213_v32 }
 0x4b9   :  { %v1241_v34 = vmul.f32 1.442695, %v1231_v33 }
 0x4ba   :  { %v1219_v35 = vpop.xlane.xlu1 %1218  ;;  %v1216_v36 = vpop.xlane.xlu0 %1215 }
 0x4bb   :  { %5340 = vpow2.f32 %v1241_v34  ;;  %v1233_v37 = vsub.f32 %v973_v8, %v1219_v35  ;;  %v1232_v38 = vsub.f32 %v897_v4, %v1216_v36 }
 0x4bd   :  { %v1245_v39 = vmul.f32 1.442695, %v1233_v37  ;;  %v1243_v40 = vmul.f32 1.442695, %v1232_v38 }
 0x4be   :  { %v1222_v41 = vpop.xlane.xlu0 %1221 }
 0x4bf   :  { %5342 = vpow2.f32 %v1245_v39  ;;  %v1234_v42 = vsub.f32 %v1049_v9, %v1222_v41  ;;  %v1225_v43 = vpop.xlane.xlu1 %1224 }
 0x4c0   :  { %v5778_v44 = vpop.eup %5336  ;;  %5344 = vpow2.f32 %v1243_v40  ;;  %v1235_v45 = vsub.f32 %v1125_v14, %v1225_v43 }
 0x4c1   :  { %v1247_v46 = vmul.f32 1.442695, %v1234_v42  ;;  %v1253_v47 = vsel %vm427_vm12, %v5778_v44, 0.0 }
 0x4c2   :  { %v1249_v48 = vmul.f32 1.442695, %v1235_v45  ;;  %1254 = vadd.xlane.f32.xlu1 %v1253_v47  ;;  %v1228_v49 = vpop.xlane.xlu0 %1227 }
 0x4c3   :  { %5346 = vpow2.f32 %v1247_v46  ;;  %v1236_v50 = vsub.f32 %v1201_v15, %v1228_v49  ;;  %v526_v51 = vpop.permute.xlu1 %525 }
 0x4c4   :  { %v5782_v52 = vpop.eup %5338  ;;  %5348 = vpow2.f32 %v1249_v48  ;;  %532 = vst.msk [vmem:[#allocation3 + $0x80] sm:$0xff] %vm427_vm12, %v526_v51  ;;  %v1916_v51 = vld [vmem:[%s6325_s7 + $0x10] sm:$0xff] }
 0x4c5   :  { %v1251_v53 = vmul.f32 1.442695, %v1236_v50  ;;  %v1256_v54 = vsel %vm427_vm12, %v5782_v52, 0.0  ;;  %v1917_v50 = vld [vmem:[%s6325_s7 + $0x18] sm:$0xff] }
 0x4c6   :  { %1257 = vadd.xlane.f32.xlu0 %v1256_v54  ;;  %v528_v55 = vpop.permute.xlu0 %527 }
 0x4c7   :  { %5350 = vpow2.f32 %v1251_v53  ;;  %533 = vst.msk [vmem:[#allocation3 + $0x88] sm:$0xff] %vm427_vm12, %v528_v55  ;;  %v539_v56 = vpop.permute.xlu1 %538  ;;  %v1915_v53 = vld [vmem:[%s6325_s7 + $0x8] sm:$0xff] }
 0x4c8   :  { %v5788_v57 = vpop.eup %5340  ;;  %545 = vst.msk [vmem:[#allocation3 + $0x90] sm:$0xff] %vm427_vm12, %v539_v56 }
 0x4c9   :  { %v1259_v58 = vsel %vm427_vm12, %v5788_v57, 0.0 }
 0x4ca   :  { %1260 = vadd.xlane.f32.xlu1 %v1259_v58  ;;  %v552_v59 = vpop.permute.xlu0 %551 }
 0x4cb   :  { %558 = vst.msk [vmem:[#allocation3 + $0xa0] sm:$0xff] %vm427_vm12, %v552_v59  ;;  %v541_v60 = vpop.permute.xlu1 %540  ;;  %v589_v61 = vld [vmem:[#allocation3 + $0x80] sm:$0xff] }
 0x4cc   :  { %v5794_v62 = vpop.eup %5342  ;;  %546 = vst.msk [vmem:[#allocation3 + $0x98] sm:$0xff] %vm427_vm12, %v541_v60  ;;  %5049 = vmatpush3.msra.mxu1 %v589_v61 }
 0x4cd   :  { %v5797_v63 = vpop.eup %5344  ;;  %v1265_v0 = vsel %vm427_vm12, %v5794_v62, 0.0  ;;  %5058 = vmatprep.subr.mxu1 %v5450_v28 }
 0x4ce   :  { %1266 = vadd.xlane.f32.xlu1 %v1265_v0  ;;  %v1262_v1 = vsel %vm427_vm12, %v5797_v63, 0.0  ;;  %v590_v2 = vld [vmem:[#allocation3 + $0x88] sm:$0xff] }
 0x4cf   :  { %1263 = vadd.xlane.f32.xlu0 %v1262_v1  ;;  %v554_v3 = vpop.permute.xlu1 %553  ;;  %5054 = vmatpush3.msra.mxu0 %v590_v2 }
 0x4d0   :  { %v5804_v4 = vpop.eup %5346  ;;  %559 = vst.msk [vmem:[#allocation3 + $0xa8] sm:$0xff] %vm427_vm12, %v554_v3  ;;  %5063 = vmatprep.subr.mxu0 %v5450_v28 }
 0x4d1   :  { %v5808_v5 = vpop.eup %5348  ;;  %v1268_v6 = vsel %vm427_vm12, %v5804_v4, 0.0 }
 0x4d2   :  { %v1271_v7 = vsel %vm427_vm12, %v5808_v5, 0.0  ;;  %v593_v31 = vld [vmem:[#allocation3 + $0xa0] sm:$0xff] }
 0x4d3   :  { %1269 = vadd.xlane.f32.xlu0 %v1268_v6  ;;  %1272 = vadd.xlane.f32.xlu1 %v1271_v7  ;;  %v592_v24 = vld [vmem:[#allocation3 + $0x98] sm:$0xff] }
 0x4d4   :  { %v5814_v8 = vpop.eup %5350 }
 0x4d5   :  { %v1274_v9 = vsel %vm427_vm12, %v5814_v8, 0.0 }
 0x4d7   :  { %1275 = vadd.xlane.f32.xlu0 %v1274_v9  ;;  %v594_v36 = vld [vmem:[#allocation3 + $0xa8] sm:$0xff]  ;;  %v4721_v9 = vld [vmem:[%s6326_s8] ss:$0 sm:$0xff] }
 0x4e4   :  { %566 = vrot.lane.b32.xlu1 %v5664_v29, %s6344_s25  ;;  %v591_v29 = vld [vmem:[#allocation3 + $0x90] sm:$0xff] }
 0x4ed   :  { %564 = vrot.lane.b32.xlu0 %v5672_v30, %s6344_s25 }
 0x54b   :  { %v1255_v10 = vpop.xlane.xlu1 %1254 }
 0x54c   :  { %5352 = vrcp.f32 %v1255_v10 }
 0x54f   :  { %v1258_v11 = vpop.xlane.xlu0 %1257 }
 0x550   :  { %5354 = vrcp.f32 %v1258_v11 }
 0x553   :  { %v1261_v12 = vpop.xlane.xlu1 %1260 }
 0x554   :  { %5356 = vrcp.f32 %v1261_v12 }
 0x557   :  { %v1267_v13 = vpop.xlane.xlu1 %1266 }
 0x558   :  { %5358 = vrcp.f32 %v1267_v13  ;;  %v1264_v14 = vpop.xlane.xlu0 %1263 }
 0x559   :  { %v5353_v15 = vpop.eup %5352  ;;  %5360 = vrcp.f32 %v1264_v14 }
 0x55a   :  { %v1285_v16 = vmul.f32 %v5353_v15, %v5778_v44 }
 0x55c   :  { %v1270_v17 = vpop.xlane.xlu0 %1269  ;;  %5051 = vmatmul.mubr.msk.f32.vlgmr.msra.gmra.mxu1 %vm427_vm12, %v1285_v16  ;;  %v1273_v18 = vpop.xlane.xlu1 %1272 }
 0x55d   :  { %v5355_v19 = vpop.eup %5354  ;;  %5362 = vrcp.f32 %v1270_v17  ;;  %5059 = vmatpush3.msra.mxu1 %v591_v29  ;;  %5060 = vmatprep.mubr.msk.f32.mxu1 %vm5453_vm13, %v5450_v28 }
 0x55e   :  { %5364 = vrcp.f32 %v1273_v18  ;;  %v1286_v30 = vmul.f32 %v5355_v19, %v5782_v52  ;;  %5068 = vmatprep.subr.mxu1 %v5450_v28 }
 0x560   :  { %v1276_v20 = vpop.xlane.xlu0 %1275  ;;  %v567_v23 = vpop.permute.xlu1 %566  ;;  %5056 = vmatmul.mubr.msk.f32.vlgmr.msra.gmra.mxu0 %vm427_vm12, %v1286_v30 }
 0x561   :  { %v5357_v25 = vpop.eup %5356  ;;  %5366 = vrcp.f32 %v1276_v20  ;;  %572 = vst.msk [vmem:[#allocation3 + $0xb8] sm:$0xff] %vm427_vm12, %v567_v23  ;;  %5064 = vmatpush3.msra.mxu0 %v592_v24  ;;  %5065 = vmatprep.mubr.msk.f32.mxu0 %vm5453_vm13, %v5450_v28 }
 0x562   :  { %v1287_v26 = vmul.f32 %v5357_v25, %v5788_v57  ;;  %5073 = vmatprep.subr.mxu0 %v5450_v28  ;;  %v1914_v57 = vld [vmem:[%s6325_s7] sm:$0xff] }
 0x564   :  { %v565_v27 = vpop.permute.xlu0 %564  ;;  %5061 = vmatmul.mubr.msk.f32.vlgmr.msra.gmra.mxu1 %vm427_vm12, %v1287_v26 }
 0x565   :  { %v5359_v32 = vpop.eup %5358  ;;  %571 = vst.msk [vmem:[#allocation3 + $0xb0] sm:$0xff] %vm427_vm12, %v565_v27  ;;  %5069 = vmatpush3.msra.mxu1 %v593_v31  ;;  %5070 = vmatprep.mubr.msk.f32.mxu1 %vm5453_vm13, %v5450_v28  ;;  %v2055_v27 = vld [vmem:[%s6329_s11 + $0x10] sm:$0xff]  ;;  %v2054_v31 = vld [vmem:[%s6329_s11 + $0x8] sm:$0xff] }
 0x566   :  { %v5361_v33 = vpop.eup %5360  ;;  %v1289_v34 = vmul.f32 %v5359_v32, %v5794_v62  ;;  %5078 = vmatprep.subr.mxu1 %v5450_v28  ;;  %v2053_v32 = vld [vmem:[%s6329_s11] sm:$0xff] }
 0x567   :  { %v1288_v35 = vmul.f32 %v5361_v33, %v5797_v63  ;;  %v2154_v33 = vld [vmem:[%s6331_s13 + $0x38] sm:$0xff] }
 0x568   :  { %5071 = vmatmul.mubr.msk.f32.vlgmr.msra.gmra.mxu1 %vm427_vm12, %v1289_v34  ;;  %v596_v42 = vld [vmem:[#allocation3 + $0xb8] sm:$0xff]  ;;  %v2153_v34 = vld [vmem:[%s6331_s13 + $0x30] sm:$0xff] }
 0x569   :  { %5066 = vmatmul.mubr.msk.f32.vlgmr.msra.gmra.mxu0 %vm427_vm12, %v1288_v35  ;;  %5080 = vmatprep.mubr.msk.f32.mxu1 %vm5453_vm13, %v5450_v28  ;;  %v2152_v35 = vld [vmem:[%s6331_s13 + $0x28] sm:$0xff] }
 0x56a   :  { %v5363_v37 = vpop.eup %5362  ;;  %5074 = vmatpush3.msra.mxu0 %v594_v36  ;;  %5075 = vmatprep.mubr.msk.f32.mxu0 %vm5453_vm13, %v5450_v28  ;;  %v2151_v36 = vld [vmem:[%s6331_s13 + $0x20] sm:$0xff] }
 0x56b   :  { %v5365_v38 = vpop.eup %5364  ;;  %5083 = vmatprep.subr.mxu0 %v5450_v28  ;;  %v1290_v39 = vmul.f32 %v5363_v37, %v5804_v4 }
 0x56c   :  { %v595_v40 = vld [vmem:[#allocation3 + $0xb0] sm:$0xff]  ;;  %v1291_v41 = vmul.f32 %v5365_v38, %v5808_v5 }
 0x56d   :  { %5076 = vmatmul.mubr.msk.f32.vlgmr.msra.gmra.mxu0 %vm427_vm12, %v1290_v39  ;;  %5079 = vmatpush3.msra.mxu1 %v595_v40 }
 0x56e   :  { %v5367_v43 = vpop.eup %5366  ;;  %5084 = vmatpush3.msra.mxu0 %v596_v42  ;;  %5081 = vmatmul.mubr.msk.f32.vlgmr.msra.gmra.mxu1 %vm427_vm12, %v1291_v41 }
 0x56f   :  { %5085 = vmatprep.mubr.msk.f32.mxu0 %vm5453_vm13, %v5450_v28  ;;  %v1292_v44 = vmul.f32 %v5367_v43, %v5814_v8  ;;  %5088 = vmatprep.subr.mxu1 %v1917_v50 }
 0x570   :  { %5089 = vmatpush3.msra.mxu1 %v1917_v50 }
 0x571   :  { %5086 = vmatmul.mubr.msk.f32.vlgmr.msra.gmra.mxu0 %vm427_vm12, %v1292_v44  ;;  %5090 = vmatprep.subr.mxu1 %v1916_v51  ;;  %v4724_v44 = vld [vmem:[%s6327_s9] ss:$0 sm:$0xff] }
 0x572   :  { %5091 = vmatpush3.msra.mxu1 %v1916_v51 }
 0x573   :  { %5092 = vmatprep.subr.mxu1 %v1915_v53 }
 0x574   :  { %5093 = vmatpush3.msra.mxu1 %v1915_v53  ;;  %v2150_v53 = vld [vmem:[%s6331_s13 + $0x18] sm:$0xff] }
 0x575   :  { %5094 = vmatprep.subr.mxu1 %v1914_v57 }
 0x576   :  { %5095 = vmatpush3.msra.mxu1 %v1914_v57  ;;  %v4726_v57 = vld [vmem:[%s6330_s12] ss:$0 sm:$0xff] }
 0x577   :  { %5110 = vmatprep.subr.mxu1 %v2154_v33 }
 0x61c   :  { %v1362_v45 = vpop.f32.mrf.mxu1 }
 0x61d   :  { %1877 = vst.msk [vmem:[#allocation4] sm:$0xff] %vm427_vm12, %v1362_v45 }
 0x61e   :  { %v5052_v46 = vpop.f32.mrf.mxu1 }
 0x61f   :  { %v4725_v46 = vld [vmem:[%s6328_s10] ss:$0 sm:$0xff] }
 0x620   :  { %v1435_v47 = vpop.f32.mrf.mxu0 }
 0x621   :  { %1878 = vst.msk [vmem:[#allocation4 + $0x8] sm:$0xff] %vm427_vm12, %v1435_v47 }
 0x622   :  { %v5057_v48 = vpop.f32.mrf.mxu0 }
 0x624   :  { %v1508_v49 = vpop.f32.mrf.mxu1 }
 0x625   :  { %1881 = vrot.lane.b32.xlu0 %v1508_v49, %s6356_s26 }
 0x626   :  { %v5062_v52 = vpop.f32.mrf.mxu1 }
 0x628   :  { %v1654_v54 = vpop.f32.mrf.mxu1 }
 0x629   :  { %v1581_v55 = vpop.f32.mrf.mxu0  ;;  %1892 = vrot.lane.b32.xlu0 %v1654_v54, %s6354_s24  ;;  %v2149_v54 = vld [vmem:[%s6331_s13 + $0x10] sm:$0xff] }
 0x62a   :  { %1883 = vrot.lane.b32.xlu1 %v1581_v55, %s6356_s26  ;;  %v5072_v56 = vpop.f32.mrf.mxu1  ;;  %v2148_v55 = vld [vmem:[%s6331_s13 + $0x8] sm:$0xff] }
 0x62b   :  { %v5067_v58 = vpop.f32.mrf.mxu0  ;;  %v2147_v56 = vld [vmem:[%s6331_s13] sm:$0xff] }
 0x62d   :  { %v1727_v59 = vpop.f32.mrf.mxu0 }
 0x62e   :  { %v1800_v60 = vpop.f32.mrf.mxu1  ;;  %1894 = vrot.lane.b32.xlu1 %v1727_v59, %s6354_s24 }
 0x62f   :  { %1903 = vrot.lane.b32.xlu0 %v1800_v60, %s6352_s22  ;;  %v5077_v61 = vpop.f32.mrf.mxu0 }
 0x630   :  { %v5082_v62 = vpop.f32.mrf.mxu1 }
 0x631   :  { %v1873_v63 = vpop.f32.mrf.mxu0 }
 0x632   :  { %1905 = vrot.lane.b32.xlu1 %v1873_v63, %s6352_s22 }
 0x633   :  { %v5087_v0 = vpop.f32.mrf.mxu0 }
 0x634   :  { %v4729_v0 = vld [vmem:[%s6332_s14] ss:$0 sm:$0xff] }
 0x697   :  { %v1882_v1 = vpop.permute.xlu0 %1881 }
 0x698   :  { %1888 = vst.msk [vmem:[#allocation4] sm:$0xff] %vm1887_vm14, %v1882_v1 }
 0x69b   :  { %v1893_v2 = vpop.permute.xlu0 %1892 }
 0x69c   :  { %1899 = vst.msk [vmem:[#allocation4] sm:$0xff] %vm1898_vm15, %v1893_v2  ;;  %v1884_v3 = vpop.permute.xlu1 %1883 }
 0x69d   :  { %1889 = vst.msk [vmem:[#allocation4 + $0x8] sm:$0xff] %vm1887_vm14, %v1884_v3 }
 0x6a0   :  { %v1895_v4 = vpop.permute.xlu1 %1894 }
 0x6a1   :  { %1900 = vst.msk [vmem:[#allocation4 + $0x8] sm:$0xff] %vm1898_vm15, %v1895_v4  ;;  %v1904_v5 = vpop.permute.xlu0 %1903 }
 0x6a2   :  { %1910 = vst.msk [vmem:[#allocation4] sm:$0xff] %vm1909_vm1, %v1904_v5 }
 0x6a4   :  { %v1906_v6 = vpop.permute.xlu1 %1905 }
 0x6a5   :  { %1911 = vst.msk [vmem:[#allocation4 + $0x8] sm:$0xff] %vm1909_vm1, %v1906_v6 }
 0x6a9   :  { %v1912_v7 = vld [vmem:[#allocation4] sm:$0xff] }
 0x6aa   :  { %5096 = vmatprep.mubr.msk.f32.mxu1 %vm340_vm10, %v1912_v7 }
 0x6ac   :  { %v1913_v8 = vld [vmem:[#allocation4 + $0x8] sm:$0xff] }
 0x6ad   :  { %5097 = vmatmul.mubr.msk.f32.vlgmr.msra.gmra.mxu1 %vm340_vm10, %v1913_v8 }
 0x6ae   :  { %5111 = vmatpush3.msra.mxu1 %v2154_v33 }
 0x6af   :  { %5112 = vmatprep.subr.mxu1 %v2153_v34 }
 0x6b0   :  { %5113 = vmatpush3.msra.mxu1 %v2153_v34 }
 0x6b1   :  { %5114 = vmatprep.subr.mxu1 %v2152_v35 }
 0x6b2   :  { %5115 = vmatpush3.msra.mxu1 %v2152_v35 }
 0x6b3   :  { %5116 = vmatprep.subr.mxu1 %v2151_v36 }
 0x6b4   :  { %5117 = vmatpush3.msra.mxu1 %v2151_v36  ;;  %v4733_v36 = vld [vmem:[%s6334_s16] ss:$0 sm:$0xff] }
 0x6b5   :  { %5118 = vmatprep.subr.mxu1 %v2150_v53 }
 0x6b6   :  { %5119 = vmatpush3.msra.mxu1 %v2150_v53 }
 0x6b7   :  { %5120 = vmatprep.subr.mxu1 %v2149_v54 }
 0x6b8   :  { %5121 = vmatpush3.msra.mxu1 %v2149_v54 }
 0x6b9   :  { %5122 = vmatprep.subr.mxu1 %v2148_v55 }
 0x6ba   :  { %5123 = vmatpush3.msra.mxu1 %v2148_v55 }
 0x6bb   :  { %5124 = vmatprep.subr.mxu1 %v2147_v56 }
 0x6bc   :  { %5125 = vmatpush3.msra.mxu1 %v2147_v56 }
 0x6bd   :  { %5150 = vmatprep.subr.mxu1 %v5450_v28 }
 0x76d   :  { %v5098_v10 = vpop.f32.mrf.mxu1 }
 0x76e   :  { %v2003_v11 = vadd.f32 %v5098_v10, %v4721_v9 }
 0x76f   :  { %v1997_v12 = vpop.f32.mrf.mxu1 }
 0x770   :  { %v1998_v13 = vadd.f32 %v4721_v9, %v1997_v12  ;;  %v2007_v14 = vadd.f32 %v2003_v11, %v5651_v22 }
 0x772   :  { %v2013_v15 = vsel %vm340_vm10, %v2007_v14, 0.0  ;;  %v2006_v16 = vadd.f32 %v1998_v13, %v5649_v21  ;;  %v2056_v21 = vld [vmem:[%s6329_s11 + $0x18] sm:$0xff] }
 0x773   :  { %2014 = vadd.xlane.f32.xlu1 %v2013_v15  ;;  %5099 = vmatprep.subr.mxu0 %v2056_v21 }
 0x774   :  { %v2010_v17 = vsel %vm340_vm10, %v2006_v16, 0.0  ;;  %5100 = vmatpush3.msra.mxu0 %v2056_v21 }
 0x775   :  { %2011 = vadd.xlane.f32.xlu0 %v2010_v17  ;;  %5101 = vmatprep.subr.mxu0 %v2055_v27 }
 0x776   :  { %5102 = vmatpush3.msra.mxu0 %v2055_v27 }
 0x777   :  { %5103 = vmatprep.subr.mxu0 %v2054_v31 }
 0x778   :  { %5104 = vmatpush3.msra.mxu0 %v2054_v31  ;;  %v4732_v31 = vld [vmem:[%s6333_s15] ss:$0 sm:$0xff] }
 0x779   :  { %5105 = vmatprep.subr.mxu0 %v2053_v32 }
 0x77a   :  { %5106 = vmatpush3.msra.mxu0 %v2053_v32 }
 0x7fc   :  { %v2015_v29 = vpop.xlane.xlu1 %2014 }
 0x7fd   :  { %v2018_v18 = vmul.f32 0.03125, %v2015_v29 }
 0x7fe   :  { %v2012_v19 = vpop.xlane.xlu0 %2011 }
 0x7ff   :  { %v2017_v30 = vmul.f32 0.03125, %v2012_v19  ;;  %v2020_v20 = vsub.f32 %v2007_v14, %v2018_v18  ;;  %v4737_v18 = vld [vmem:[%s6368_s20 + $0x38] sm:$0xff]  ;;  %v4736_v19 = vld [vmem:[%s6368_s20 + $0x30] sm:$0xff] }
 0x800   :  { %5129 = vmatprep.subr.mxu0 %v4737_v18 }
 0x801   :  { %v2019_v23 = vsub.f32 %v2006_v16, %v2017_v30  ;;  %v2022_v26 = vmul.f32 %v2020_v20, %v2020_v20  ;;  %v4735_v30 = vld [vmem:[%s6368_s20 + $0x28] sm:$0xff] }
 0x803   :  { %v2021_v24 = vmul.f32 %v2019_v23, %v2019_v23  ;;  %v2026_v22 = vsel %vm340_vm10, %v2022_v26, 0.0 }
 0x805   :  { %v2023_v25 = vsel %vm340_vm10, %v2021_v24, 0.0 }
 0x806   :  { %2024 = vadd.xlane.f32.xlu0 %v2023_v25 }
 0x80a   :  { %2027 = vadd.xlane.f32.xlu0 %v2026_v22 }
 0x88f   :  { %v2025_v37 = vpop.xlane.xlu0 %2024 }
 0x890   :  { %v2029_v38 = vmul.f32 0.03125, %v2025_v37 }
 0x892   :  { %v2031_v39 = vadd.f32 1e-05, %v2029_v38 }
 0x893   :  { %v2028_v40 = vpop.xlane.xlu0 %2027 }
 0x894   :  { %5368 = vrsqrt.f32 %v2031_v39  ;;  %v2030_v41 = vmul.f32 0.03125, %v2028_v40  ;;  %v4739_v40 = vld [vmem:[%s6324_s6 + $0x1] ss:$0 sm:$0xff]  ;;  %s6370_s6 = smov 64  }
 0x896   :  { %v2032_v42 = vadd.f32 1e-05, %v2030_v41 }
 0x898   :  { %5370 = vrsqrt.f32 %v2032_v42 }
 0x8a1   :  { %v5369_v43 = vpop.eup %5368 }
 0x8a2   :  { %v2035_v45 = vmul.f32 %v5369_v43, %v2019_v23 }
 0x8a4   :  { %v2043_v47 = vmul.f32 %v4724_v44, %v2035_v45 }
 0x8a5   :  { %v5371_v48 = vpop.eup %5370 }
 0x8a6   :  { %v2036_v49 = vmul.f32 %v5371_v48, %v2020_v20  ;;  %v2051_v50 = vadd.f32 %v4725_v46, %v2043_v47  ;;  %v4734_v20 = vld [vmem:[%s6368_s20 + $0x20] sm:$0xff] }
 0x8a8   :  { %v2044_v51 = vmul.f32 %v4724_v44, %v2036_v49  ;;  %5107 = vmatprep.mubr.msk.f32.mxu0 %vm340_vm10, %v2051_v50 }
 0x8aa   :  { %v2052_v52 = vadd.f32 %v4725_v46, %v2044_v51 }
 0x8ac   :  { %5108 = vmatmul.mubr.msk.f32.vlgmr.msra.gmra.mxu0 %vm340_vm10, %v2052_v52 }
 0x8ad   :  { %5130 = vmatpush3.msra.mxu0 %v4737_v18 }
 0x8ae   :  { %5131 = vmatprep.subr.mxu0 %v4736_v19 }
 0x8af   :  { %5132 = vmatpush3.msra.mxu0 %v4736_v19 }
 0x8b0   :  { %5133 = vmatprep.subr.mxu0 %v4735_v30 }
 0x8b1   :  { %5134 = vmatpush3.msra.mxu0 %v4735_v30 }
 0x8b2   :  { %5135 = vmatprep.subr.mxu0 %v4734_v20 }
 0x8b3   :  { %5136 = vmatpush3.msra.mxu0 %v4734_v20 }
 0x8b4   :  { %5140 = vmatprep.subr.mxu0 %v5450_v28 }
 0x96c   :  { %v5109_v58 = vpop.f32.mrf.mxu0 }
 0x96d   :  { %v2142_v59 = vadd.f32 %v5109_v58, %v4726_v57 }
 0x96e   :  { %v2136_v60 = vpop.f32.mrf.mxu0 }
 0x96f   :  { %v2137_v61 = vadd.f32 %v4726_v57, %v2136_v60  ;;  %v2146_v63 = vmax.f32 %v2142_v59, 0.0 }
 0x971   :  { %v2145_v62 = vmax.f32 %v2137_v61, 0.0 }
 0x973   :  { %5126 = vmatprep.mubr.msk.f32.mxu1 %vm88_vm0, %v2145_v62 }
 0x974   :  { %5127 = vmatmul.mubr.msk.f32.vlgmr.msra.gmra.mxu1 %vm88_vm0, %v2146_v63 }
 0x975   :  { %5152 = vmatprep.mubr.msk.f32.mxu1 %vm5453_vm13, %v5450_v28 }
 0xa34   :  { %v5128_v1 = vpop.f32.mrf.mxu1 }
 0xa35   :  { %v2240_v2 = vadd.f32 %v5128_v1, %v4729_v0 }
 0xa36   :  { %v2234_v3 = vpop.f32.mrf.mxu1 }
 0xa37   :  { %v2235_v4 = vadd.f32 %v4729_v0, %v2234_v3  ;;  %v2244_v5 = vadd.f32 %v2240_v2, %v2052_v52 }
 0xa39   :  { %v2250_v6 = vsel %vm340_vm10, %v2244_v5, 0.0  ;;  %v2243_v7 = vadd.f32 %v2235_v4, %v2051_v50 }
 0xa3a   :  { %2251 = vadd.xlane.f32.xlu0 %v2250_v6 }
 0xa3b   :  { %v2247_v8 = vsel %vm340_vm10, %v2243_v7, 0.0 }
 0xa3c   :  { %2248 = vadd.xlane.f32.xlu1 %v2247_v8 }
 0xac3   :  { %v2252_v9 = vpop.xlane.xlu0 %2251 }
 0xac4   :  { %v2254_v10 = vmul.f32 0.03125, %v2252_v9 }
 0xac5   :  { %v2249_v11 = vpop.xlane.xlu1 %2248 }
 0xac6   :  { %v2256_v12 = vsub.f32 %v2244_v5, %v2254_v10  ;;  %v2253_v13 = vmul.f32 0.03125, %v2249_v11 }
 0xac8   :  { %v2255_v14 = vsub.f32 %v2243_v7, %v2253_v13  ;;  %v2258_v15 = vmul.f32 %v2256_v12, %v2256_v12 }
 0xaca   :  { %v2262_v16 = vsel %vm340_vm10, %v2258_v15, 0.0  ;;  %v2257_v17 = vmul.f32 %v2255_v14, %v2255_v14 }
 0xacb   :  { %2263 = vadd.xlane.f32.xlu0 %v2262_v16 }
 0xacc   :  { %v2259_v29 = vsel %vm340_vm10, %v2257_v17, 0.0 }
 0xacd   :  { %2260 = vadd.xlane.f32.xlu1 %v2259_v29 }
 0xb54   :  { %v2264_v23 = vpop.xlane.xlu0 %2263 }
 0xb55   :  { %v2266_v24 = vmul.f32 0.03125, %v2264_v23 }
 0xb56   :  { %v2261_v25 = vpop.xlane.xlu1 %2260 }
 0xb57   :  { %v2268_v26 = vadd.f32 1e-05, %v2266_v24  ;;  %v2265_v22 = vmul.f32 0.03125, %v2261_v25 }
 0xb59   :  { %5372 = vrsqrt.f32 %v2268_v26  ;;  %v2267_v21 = vadd.f32 1e-05, %v2265_v22 }
 0xb5b   :  { %5374 = vrsqrt.f32 %v2267_v21 }
 0xb66   :  { %v5373_v27 = vpop.eup %5372 }
 0xb67   :  { %v2272_v32 = vmul.f32 %v5373_v27, %v2256_v12 }
 0xb68   :  { %v5375_v33 = vpop.eup %5374 }
 0xb69   :  { %v2271_v34 = vmul.f32 %v5375_v33, %v2255_v14  ;;  %v2280_v35 = vmul.f32 %v4732_v31, %v2272_v32 }
 0xb6b   :  { %v2279_v37 = vmul.f32 %v4732_v31, %v2271_v34  ;;  %v5973_v39 = vadd.f32 %v4733_v36, %v2280_v35 }
 0xb6d   :  { %v5971_v38 = vadd.f32 %v4733_v36, %v2279_v37 }
 0xb6f   :  { %5137 = vmatprep.mubr.msk.f32.mxu0 %vm340_vm10, %v5971_v38 }
 0xb70   :  { %5138 = vmatmul.mubr.msk.f32.vlgmr.msra.gmra.mxu0 %vm340_vm10, %v5973_v39 }
 0xb71   :  { %5142 = vmatprep.mubr.msk.f32.mxu0 %vm5453_vm13, %v5450_v28 }
 0xc30   :  { %v5139_v41 = vpop.f32.mrf.mxu0 }
 0xc31   :  { %v2380_v42 = vadd.f32 %v5139_v41, %v4739_v40 }
 0xc32   :  { %v2374_v43 = vpop.f32.mrf.mxu0 }
 0xc33   :  { %2384 = vst.msk [vmem:[#allocation2 + $0x8] sm:$0xff] %vm422_vm11, %v2380_v42  ;;  %v2375_v44 = vadd.f32 %v4739_v40, %v2374_v43 }
 0xc35   :  { %2383 = vst.msk [vmem:[#allocation2] sm:$0xff] %vm422_vm11, %v2375_v44 }
 0xc3a   :  { %v5986_v45 = vld [vmem:[#allocation2 + $0x8] sm:$0xff] }
 0xc3b   :  { %2443 = vrot.lane.b32.xlu1 %v5986_v45, %s5451_s0  ;;  %2431 = vrot.lane.b32.xlu0 %v5986_v45, %s5452_s4  ;;  %2388 = vst.msk [vmem:[#allocation3 + $0x8] sm:$0xff] %vm427_vm12, %v5986_v45 }
 0xc3c   :  { %v5994_v46 = vld [vmem:[#allocation2] sm:$0xff] }
 0xc3d   :  { %2387 = vst.msk [vmem:[#allocation3] sm:$0xff] %vm427_vm12, %v5994_v46 }
 0xc3f   :  { %2395 = vrot.lane.b32.xlu1 %v5986_v45, %s5454_s30  ;;  %2393 = vrot.lane.b32.xlu0 %v5994_v46, %s5454_s30  ;;  %s6373_s30 = smov 40  }
 0xc42   :  { %v2522_v62 = vld [vmem:[#allocation3 + $0x8] sm:$0xff] }
 0xc43   :  { %2429 = vrot.lane.b32.xlu1 %v5994_v46, %s5452_s4  ;;  %2453 = vrot.lane.b32.xlu0 %v5994_v46, %s5455_s5  ;;  %s6372_s4 = smov 48  }
 0xc44   :  { %v2521_v58 = vld [vmem:[#allocation3] sm:$0xff] }
 0xc47   :  { %2455 = vrot.lane.b32.xlu1 %v5986_v45, %s5455_s5  ;;  %2405 = vrot.lane.b32.xlu0 %v5994_v46, %s5456_s23  ;;  %s6374_s5 = smov 8  }
 0xc4b   :  { %2441 = vrot.lane.b32.xlu1 %v5994_v46, %s5451_s0  ;;  %2465 = vrot.lane.b32.xlu0 %v5994_v46, %s5457_s1  ;;  %s6371_s0 = smov 56  }
 0xc4f   :  { %2407 = vrot.lane.b32.xlu1 %v5986_v45, %s5456_s23  ;;  %2417 = vrot.lane.b32.xlu0 %v5994_v46, %s5458_s3 }
 0xc53   :  { %2467 = vrot.lane.b32.xlu1 %v5986_v45, %s5457_s1 }
 0xc57   :  { %2419 = vrot.lane.b32.xlu1 %v5986_v45, %s5458_s3 }
 0xcad   :  { %v2444_v47 = vpop.permute.xlu1 %2443  ;;  %v2432_v48 = vpop.permute.xlu0 %2431 }
 0xcae   :  { %2448 = vst.msk [vmem:[#allocation3 + $0x58] sm:$0xff] %vm427_vm12, %v2444_v47  ;;  %2436 = vst.msk [vmem:[#allocation3 + $0x48] sm:$0xff] %vm427_vm12, %v2432_v48 }
 0xcb1   :  { %v2396_v49 = vpop.permute.xlu1 %2395  ;;  %v2394_v50 = vpop.permute.xlu0 %2393 }
 0xcb2   :  { %2400 = vst.msk [vmem:[#allocation3 + $0x18] sm:$0xff] %vm427_vm12, %v2396_v49  ;;  %2399 = vst.msk [vmem:[#allocation3 + $0x10] sm:$0xff] %vm427_vm12, %v2394_v50 }
 0xcb5   :  { %v2430_v51 = vpop.permute.xlu1 %2429  ;;  %v2454_v52 = vpop.permute.xlu0 %2453  ;;  %v2530_v61 = vld [vmem:[#allocation3 + $0x48] sm:$0xff]  ;;  %v2532_v1 = vld [vmem:[#allocation3 + $0x58] sm:$0xff] }
 0xcb6   :  { %2435 = vst.msk [vmem:[#allocation3 + $0x40] sm:$0xff] %vm427_vm12, %v2430_v51  ;;  %2459 = vst.msk [vmem:[#allocation3 + $0x60] sm:$0xff] %vm427_vm12, %v2454_v52 }
 0xcb9   :  { %v2456_v53 = vpop.permute.xlu1 %2455  ;;  %v2406_v54 = vpop.permute.xlu0 %2405  ;;  %v2523_v2 = vld [vmem:[#allocation3 + $0x10] sm:$0xff]  ;;  %v2524_v3 = vld [vmem:[#allocation3 + $0x18] sm:$0xff] }
 0xcba   :  { %2460 = vst.msk [vmem:[#allocation3 + $0x68] sm:$0xff] %vm427_vm12, %v2456_v53  ;;  %2411 = vst.msk [vmem:[#allocation3 + $0x20] sm:$0xff] %vm427_vm12, %v2406_v54 }
 0xcbd   :  { %v2442_v55 = vpop.permute.xlu1 %2441  ;;  %v2466_v56 = vpop.permute.xlu0 %2465  ;;  %v2529_v57 = vld [vmem:[#allocation3 + $0x40] sm:$0xff] }
 0xcbe   :  { %2447 = vst.msk [vmem:[#allocation3 + $0x50] sm:$0xff] %vm427_vm12, %v2442_v55  ;;  %2471 = vst.msk [vmem:[#allocation3 + $0x70] sm:$0xff] %vm427_vm12, %v2466_v56  ;;  %5141 = vmatpush3.xpose.msk.msra.mxu0 %vm427_vm12, %v2529_v57  ;;  %v2533_v5 = vld [vmem:[#allocation3 + $0x60] sm:$0xff] }
 0xcbf   :  { %5145 = vmatprep.subr.mxu0 %v5450_v28 }
 0xcc1   :  { %v2408_v59 = vpop.permute.xlu1 %2407  ;;  %v2418_v60 = vpop.permute.xlu0 %2417  ;;  %5143 = vmatmul.mubr.msk.f32.vlgmr.msra.gmra.mxu0 %vm427_vm12, %v2521_v58  ;;  %v2534_v6 = vld [vmem:[#allocation3 + $0x68] sm:$0xff]  ;;  %v2525_v7 = vld [vmem:[#allocation3 + $0x20] sm:$0xff] }
 0xcc2   :  { %2412 = vst.msk [vmem:[#allocation3 + $0x28] sm:$0xff] %vm427_vm12, %v2408_v59  ;;  %2423 = vst.msk [vmem:[#allocation3 + $0x30] sm:$0xff] %vm427_vm12, %v2418_v60  ;;  %5146 = vmatpush3.xpose.msk.msra.mxu0 %vm427_vm12, %v2530_v61  ;;  %5147 = vmatprep.mubr.msk.f32.mxu0 %vm5453_vm13, %v5450_v28 }
 0xcc3   :  { %5155 = vmatprep.subr.mxu0 %v5450_v28 }
 0xcc5   :  { %v2468_v63 = vpop.permute.xlu1 %2467  ;;  %5148 = vmatmul.mubr.msk.f32.vlgmr.msra.gmra.mxu0 %vm427_vm12, %v2522_v62  ;;  %v2531_v0 = vld [vmem:[#allocation3 + $0x50] sm:$0xff] }
 0xcc6   :  { %2472 = vst.msk [vmem:[#allocation3 + $0x78] sm:$0xff] %vm427_vm12, %v2468_v63  ;;  %5151 = vmatpush3.xpose.msk.msra.mxu1 %vm427_vm12, %v2531_v0  ;;  %5156 = vmatpush3.xpose.msk.msra.mxu0 %vm427_vm12, %v2532_v1  ;;  %v2535_v9 = vld [vmem:[#allocation3 + $0x70] sm:$0xff] }
 0xcc7   :  { %5157 = vmatprep.mubr.msk.f32.mxu0 %vm5453_vm13, %v5450_v28  ;;  %5160 = vmatprep.subr.mxu1 %v5450_v28 }
 0xcc8   :  { %5165 = vmatprep.subr.mxu0 %v5450_v28 }
 0xcc9   :  { %v2420_v4 = vpop.permute.xlu1 %2419  ;;  %5153 = vmatmul.mubr.msk.f32.vlgmr.msra.gmra.mxu1 %vm427_vm12, %v2523_v2  ;;  %5158 = vmatmul.mubr.msk.f32.vlgmr.msra.gmra.mxu0 %vm427_vm12, %v2524_v3  ;;  %v2526_v8 = vld [vmem:[#allocation3 + $0x28] sm:$0xff]  ;;  %v2527_v11 = vld [vmem:[#allocation3 + $0x30] sm:$0xff] }
 0xcca   :  { %2424 = vst.msk [vmem:[#allocation3 + $0x38] sm:$0xff] %vm427_vm12, %v2420_v4  ;;  %5161 = vmatpush3.xpose.msk.msra.mxu1 %vm427_vm12, %v2533_v5  ;;  %5166 = vmatpush3.xpose.msk.msra.mxu0 %vm427_vm12, %v2534_v6 }
 0xccb   :  { %5162 = vmatprep.mubr.msk.f32.mxu1 %vm5453_vm13, %v5450_v28  ;;  %5167 = vmatprep.mubr.msk.f32.mxu0 %vm5453_vm13, %v5450_v28 }
 0xccc   :  { %5170 = vmatprep.subr.mxu1 %v5450_v28  ;;  %5175 = vmatprep.subr.mxu0 %v5450_v28 }
 0xccd   :  { %5163 = vmatmul.mubr.msk.f32.vlgmr.msra.gmra.mxu1 %vm427_vm12, %v2525_v7  ;;  %5168 = vmatmul.mubr.msk.f32.vlgmr.msra.gmra.mxu0 %vm427_vm12, %v2526_v8  ;;  %v2536_v10 = vld [vmem:[#allocation3 + $0x78] sm:$0xff] }
 0xcce   :  { %5171 = vmatpush3.xpose.msk.msra.mxu1 %vm427_vm12, %v2535_v9  ;;  %5176 = vmatpush3.xpose.msk.msra.mxu0 %vm427_vm12, %v2536_v10 }
 0xccf   :  { %5172 = vmatprep.mubr.msk.f32.mxu1 %vm5453_vm13, %v5450_v28  ;;  %5177 = vmatprep.mubr.msk.f32.mxu0 %vm5453_vm13, %v5450_v28 }
 0xcd0   :  { %5180 = vmatprep.subr.mxu1 %v5450_v28  ;;  %5185 = vmatprep.subr.mxu0 %v5450_v28 }
 0xcd1   :  { %5173 = vmatmul.mubr.msk.f32.vlgmr.msra.gmra.mxu1 %vm427_vm12, %v2527_v11  ;;  %v2528_v12 = vld [vmem:[#allocation3 + $0x38] sm:$0xff] }
 0xcd2   :  { %5178 = vmatmul.mubr.msk.f32.vlgmr.msra.gmra.mxu0 %vm427_vm12, %v2528_v12  ;;  %5182 = vmatprep.mubr.msk.f32.mxu1 %vm5453_vm13, %v5450_v28 }
 0xcd3   :  { %5187 = vmatprep.mubr.msk.f32.mxu0 %vm5453_vm13, %v5450_v28 }
 0xd81   :  { %v2617_v13 = vpop.f32.mrf.mxu0 }
 0xd82   :  { %v3153_v14 = vsel %vm427_vm12, %v2617_v13, -inf }
 0xd83   :  { %3154 = vmax.xlane.f32.xlu0 %v3153_v14  ;;  %v5144_v15 = vpop.f32.mrf.mxu0 }
 0xd85   :  { %v2693_v16 = vpop.f32.mrf.mxu0 }
 0xd86   :  { %v3156_v17 = vsel %vm427_vm12, %v2693_v16, -inf }
 0xd87   :  { %3157 = vmax.xlane.f32.xlu1 %v3156_v17  ;;  %v5149_v29 = vpop.f32.mrf.mxu0 }
 0xd89   :  { %v2769_v18 = vpop.f32.mrf.mxu1  ;;  %v2845_v19 = vpop.f32.mrf.mxu0 }
 0xd8a   :  { %v3159_v30 = vsel %vm427_vm12, %v2769_v18, -inf  ;;  %v3162_v22 = vsel %vm427_vm12, %v2845_v19, -inf }
 0xd8b   :  { %v5154_v20 = vpop.f32.mrf.mxu1  ;;  %3160 = vmax.xlane.f32.xlu0 %v3159_v30  ;;  %v5159_v23 = vpop.f32.mrf.mxu0 }
 0xd8d   :  { %v2921_v24 = vpop.f32.mrf.mxu1  ;;  %v2997_v25 = vpop.f32.mrf.mxu0 }
 0xd8e   :  { %v3165_v26 = vsel %vm427_vm12, %v2921_v24, -inf  ;;  %v3168_v34 = vsel %vm427_vm12, %v2997_v25, -inf }
 0xd8f   :  { %v5164_v21 = vpop.f32.mrf.mxu1  ;;  %3166 = vmax.xlane.f32.xlu1 %v3165_v26  ;;  %3163 = vmax.xlane.f32.xlu0 %v3162_v22  ;;  %v5169_v27 = vpop.f32.mrf.mxu0 }
 0xd91   :  { %v3073_v31 = vpop.f32.mrf.mxu1 }
 0xd92   :  { %v3149_v32 = vpop.f32.mrf.mxu0  ;;  %v3171_v33 = vsel %vm427_vm12, %v3073_v31, -inf }
 0xd93   :  { %v5174_v35 = vpop.f32.mrf.mxu1  ;;  %3172 = vmax.xlane.f32.xlu1 %v3171_v33  ;;  %3169 = vmax.xlane.f32.xlu0 %v3168_v34  ;;  %v3174_v37 = vsel %vm427_vm12, %v3149_v32, -inf }
 0xd94   :  { %v5179_v36 = vpop.f32.mrf.mxu0 }
 0xd97   :  { %3175 = vmax.xlane.f32.xlu0 %v3174_v37 }
 0xda4   :  { %2477 = vrot.lane.b32.xlu1 %v5994_v46, %s6370_s6 }
 0xda8   :  { %2489 = vrot.lane.b32.xlu1 %v5994_v46, %s6371_s0 }
 0xdac   :  { %2491 = vrot.lane.b32.xlu1 %v5986_v45, %s6371_s0 }
 0xdad   :  { %2479 = vrot.lane.b32.xlu0 %v5986_v45, %s6370_s6 }
 0xdb0   :  { %2503 = vrot.lane.b32.xlu1 %v5986_v45, %s6372_s4 }
 0xdb1   :  { %2501 = vrot.lane.b32.xlu0 %v5994_v46, %s6372_s4 }
 0xe0c   :  { %v3155_v40 = vpop.xlane.xlu0 %3154 }
 0xe0d   :  { %v3177_v41 = vsub.f32 %v2617_v13, %v3155_v40 }
 0xe0f   :  { %v3185_v42 = vmul.f32 1.442695, %v3177_v41 }
 0xe10   :  { %v3158_v43 = vpop.xlane.xlu1 %3157 }
 0xe11   :  { %5376 = vpow2.f32 %v3185_v42  ;;  %v3178_v44 = vsub.f32 %v2693_v16, %v3158_v43 }
 0xe13   :  { %v3187_v47 = vmul.f32 1.442695, %v3178_v44 }
 0xe14   :  { %v3161_v48 = vpop.xlane.xlu0 %3160 }
 0xe15   :  { %5378 = vpow2.f32 %v3187_v47  ;;  %v3179_v49 = vsub.f32 %v2769_v18, %v3161_v48 }
 0xe17   :  { %v3189_v50 = vmul.f32 1.442695, %v3179_v49 }
 0xe18   :  { %v3167_v51 = vpop.xlane.xlu1 %3166  ;;  %v3164_v52 = vpop.xlane.xlu0 %3163 }
 0xe19   :  { %5380 = vpow2.f32 %v3189_v50  ;;  %v3181_v53 = vsub.f32 %v2921_v24, %v3167_v51  ;;  %v3180_v54 = vsub.f32 %v2845_v19, %v3164_v52 }
 0xe1b   :  { %v3193_v55 = vmul.f32 1.442695, %v3181_v53  ;;  %v3191_v56 = vmul.f32 1.442695, %v3180_v54 }
 0xe1c   :  { %v3173_v57 = vpop.xlane.xlu1 %3172  ;;  %v3170_v58 = vpop.xlane.xlu0 %3169 }
 0xe1d   :  { %5382 = vpow2.f32 %v3193_v55  ;;  %v3183_v59 = vsub.f32 %v3073_v31, %v3173_v57  ;;  %v3182_v60 = vsub.f32 %v2997_v25, %v3170_v58 }
 0xe1e   :  { %v6096_v61 = vpop.eup %5376  ;;  %5384 = vpow2.f32 %v3191_v56 }
 0xe1f   :  { %v3197_v62 = vmul.f32 1.442695, %v3183_v59  ;;  %v3195_v63 = vmul.f32 1.442695, %v3182_v60  ;;  %v3201_v0 = vsel %vm427_vm12, %v6096_v61, 0.0 }
 0xe20   :  { %3202 = vadd.xlane.f32.xlu1 %v3201_v0  ;;  %v2478_v1 = vpop.permute.xlu1 %2477  ;;  %v3176_v2 = vpop.xlane.xlu0 %3175 }
 0xe21   :  { %5386 = vpow2.f32 %v3197_v62  ;;  %2483 = vst.msk [vmem:[#allocation3 + $0x80] sm:$0xff] %vm427_vm12, %v2478_v1  ;;  %v3184_v3 = vsub.f32 %v3149_v32, %v3176_v2  ;;  %v4769_v2 = vld [vmem:[%s6325_s7 + $0x38] sm:$0xff] }
 0xe22   :  { %v6101_v4 = vpop.eup %5378  ;;  %5388 = vpow2.f32 %v3195_v63 }
 0xe23   :  { %v3199_v5 = vmul.f32 1.442695, %v3184_v3  ;;  %v3204_v6 = vsel %vm427_vm12, %v6101_v4, 0.0  ;;  %v4768_v3 = vld [vmem:[%s6325_s7 + $0x30] sm:$0xff] }
 0xe24   :  { %v2490_v7 = vpop.permute.xlu1 %2489  ;;  %3205 = vadd.xlane.f32.xlu0 %v3204_v6  ;;  %v2480_v8 = vpop.permute.xlu0 %2479 }
 0xe25   :  { %5390 = vpow2.f32 %v3199_v5  ;;  %2495 = vst.msk [vmem:[#allocation3 + $0x90] sm:$0xff] %vm427_vm12, %v2490_v7  ;;  %2484 = vst.msk [vmem:[#allocation3 + $0x88] sm:$0xff] %vm427_vm12, %v2480_v8  ;;  %v4767_v5 = vld [vmem:[%s6325_s7 + $0x28] sm:$0xff] }
 0xe26   :  { %v6107_v9 = vpop.eup %5380 }
 0xe27   :  { %v3207_v10 = vsel %vm427_vm12, %v6107_v9, 0.0 }
 0xe28   :  { %3208 = vadd.xlane.f32.xlu1 %v3207_v10  ;;  %v2492_v11 = vpop.permute.xlu1 %2491  ;;  %v2502_v12 = vpop.permute.xlu0 %2501  ;;  %v2537_v13 = vld [vmem:[#allocation3 + $0x80] sm:$0xff] }
 0xe29   :  { %2496 = vst.msk [vmem:[#allocation3 + $0x98] sm:$0xff] %vm427_vm12, %v2492_v11  ;;  %2507 = vst.msk [vmem:[#allocation3 + $0xa0] sm:$0xff] %vm427_vm12, %v2502_v12  ;;  %5181 = vmatpush3.msra.mxu1 %v2537_v13 }
 0xe2a   :  { %v6113_v14 = vpop.eup %5382  ;;  %5190 = vmatprep.subr.mxu1 %v5450_v28 }
 0xe2b   :  { %v6116_v15 = vpop.eup %5384  ;;  %v3213_v16 = vsel %vm427_vm12, %v6113_v14, 0.0 }
 0xe2c   :  { %3214 = vadd.xlane.f32.xlu1 %v3213_v16  ;;  %v2504_v17 = vpop.permute.xlu1 %2503  ;;  %v3210_v29 = vsel %vm427_vm12, %v6116_v15, 0.0  ;;  %v2538_v18 = vld [vmem:[#allocation3 + $0x88] sm:$0xff] }
 0xe2d   :  { %2508 = vst.msk [vmem:[#allocation3 + $0xa8] sm:$0xff] %vm427_vm12, %v2504_v17  ;;  %3211 = vadd.xlane.f32.xlu0 %v3210_v29  ;;  %5186 = vmatpush3.msra.mxu0 %v2538_v18 }
 0xe2e   :  { %v6123_v19 = vpop.eup %5386  ;;  %5195 = vmatprep.subr.mxu0 %v5450_v28 }
 0xe2f   :  { %v6126_v30 = vpop.eup %5388  ;;  %v3219_v20 = vsel %vm427_vm12, %v6123_v19, 0.0 }
 0xe30   :  { %3220 = vadd.xlane.f32.xlu1 %v3219_v20  ;;  %v3216_v23 = vsel %vm427_vm12, %v6126_v30, 0.0  ;;  %v2540_v41 = vld [vmem:[#allocation3 + $0x98] sm:$0xff]  ;;  %v2541_v47 = vld [vmem:[#allocation3 + $0xa0] sm:$0xff] }
 0xe31   :  { %3217 = vadd.xlane.f32.xlu0 %v3216_v23 }
 0xe32   :  { %v6132_v24 = vpop.eup %5390 }
 0xe33   :  { %v3222_v25 = vsel %vm427_vm12, %v6132_v24, 0.0 }
 0xe34   :  { %v2542_v53 = vld [vmem:[#allocation3 + $0xa8] sm:$0xff] }
 0xe35   :  { %3223 = vadd.xlane.f32.xlu0 %v3222_v25  ;;  %v4771_v25 = vld [vmem:[%s6326_s8 + $0x1] ss:$0 sm:$0xff] }
 0xe41   :  { %2515 = vrot.lane.b32.xlu1 %v5986_v45, %s6373_s30  ;;  %v2539_v45 = vld [vmem:[#allocation3 + $0x90] sm:$0xff] }
 0xe4b   :  { %2513 = vrot.lane.b32.xlu0 %v5994_v46, %s6373_s30 }
 0xea9   :  { %v3203_v26 = vpop.xlane.xlu1 %3202 }
 0xeaa   :  { %5392 = vrcp.f32 %v3203_v26 }
 0xead   :  { %v3206_v22 = vpop.xlane.xlu0 %3205 }
 0xeae   :  { %5394 = vrcp.f32 %v3206_v22 }
 0xeb1   :  { %v3209_v21 = vpop.xlane.xlu1 %3208 }
 0xeb2   :  { %5396 = vrcp.f32 %v3209_v21 }
 0xeb5   :  { %v3215_v27 = vpop.xlane.xlu1 %3214 }
 0xeb6   :  { %5398 = vrcp.f32 %v3215_v27  ;;  %v3212_v31 = vpop.xlane.xlu0 %3211 }
 0xeb7   :  { %v5393_v32 = vpop.eup %5392  ;;  %5400 = vrcp.f32 %v3212_v31 }
 0xeb8   :  { %v3233_v33 = vmul.f32 %v5393_v32, %v6096_v61 }
 0xeb9   :  { %v3221_v34 = vpop.xlane.xlu1 %3220 }
 0xeba   :  { %5402 = vrcp.f32 %v3221_v34  ;;  %v3218_v35 = vpop.xlane.xlu0 %3217  ;;  %5183 = vmatmul.mubr.msk.f32.vlgmr.msra.gmra.mxu1 %vm427_vm12, %v3233_v33 }
 0xebb   :  { %v5395_v46 = vpop.eup %5394  ;;  %5404 = vrcp.f32 %v3218_v35  ;;  %5191 = vmatpush3.msra.mxu1 %v2539_v45  ;;  %5192 = vmatprep.mubr.msk.f32.mxu1 %vm5453_vm13, %v5450_v28 }
 0xebc   :  { %v3234_v36 = vmul.f32 %v5395_v46, %v6101_v4  ;;  %5200 = vmatprep.subr.mxu1 %v5450_v28 }
 0xebd   :  { %v2516_v37 = vpop.permute.xlu1 %2515 }
 0xebe   :  { %2520 = vst.msk [vmem:[#allocation3 + $0xb8] sm:$0xff] %vm427_vm12, %v2516_v37  ;;  %v3224_v40 = vpop.xlane.xlu0 %3223  ;;  %5188 = vmatmul.mubr.msk.f32.vlgmr.msra.gmra.mxu0 %vm427_vm12, %v3234_v36 }
 0xebf   :  { %v5397_v42 = vpop.eup %5396  ;;  %5406 = vrcp.f32 %v3224_v40  ;;  %5196 = vmatpush3.msra.mxu0 %v2540_v41  ;;  %5197 = vmatprep.mubr.msk.f32.mxu0 %vm5453_vm13, %v5450_v28 }
 0xec0   :  { %v3235_v43 = vmul.f32 %v5397_v42, %v6107_v9  ;;  %5205 = vmatprep.subr.mxu0 %v5450_v28  ;;  %v4766_v9 = vld [vmem:[%s6325_s7 + $0x20] sm:$0xff] }
 0xec2   :  { %v2514_v44 = vpop.permute.xlu0 %2513  ;;  %5193 = vmatmul.mubr.msk.f32.vlgmr.msra.gmra.mxu1 %vm427_vm12, %v3235_v43 }
 0xec3   :  { %v5399_v48 = vpop.eup %5398  ;;  %2519 = vst.msk [vmem:[#allocation3 + $0xb0] sm:$0xff] %vm427_vm12, %v2514_v44  ;;  %5201 = vmatpush3.msra.mxu1 %v2541_v47  ;;  %5202 = vmatprep.mubr.msk.f32.mxu1 %vm5453_vm13, %v5450_v28  ;;  %v4780_v44 = vld [vmem:[%s6329_s11 + $0x30] sm:$0xff]  ;;  %v4779_v47 = vld [vmem:[%s6329_s11 + $0x28] sm:$0xff] }
 0xec4   :  { %v5401_v49 = vpop.eup %5400  ;;  %v3237_v50 = vmul.f32 %v5399_v48, %v6113_v14  ;;  %5210 = vmatprep.subr.mxu1 %v5450_v28  ;;  %v4778_v48 = vld [vmem:[%s6329_s11 + $0x20] sm:$0xff] }
 0xec5   :  { %v3236_v51 = vmul.f32 %v5401_v49, %v6116_v15  ;;  %v2544_v58 = vld [vmem:[#allocation3 + $0xb8] sm:$0xff]  ;;  %v4793_v49 = vld [vmem:[%s6331_s13 + $0x78] sm:$0xff] }
 0xec6   :  { %5203 = vmatmul.mubr.msk.f32.vlgmr.msra.gmra.mxu1 %vm427_vm12, %v3237_v50  ;;  %v4792_v50 = vld [vmem:[%s6331_s13 + $0x70] sm:$0xff] }
 0xec7   :  { %v5403_v52 = vpop.eup %5402  ;;  %5198 = vmatmul.mubr.msk.f32.vlgmr.msra.gmra.mxu0 %vm427_vm12, %v3236_v51  ;;  %5212 = vmatprep.mubr.msk.f32.mxu1 %vm5453_vm13, %v5450_v28  ;;  %v4791_v51 = vld [vmem:[%s6331_s13 + $0x68] sm:$0xff] }
 0xec8   :  { %v5405_v54 = vpop.eup %5404  ;;  %5206 = vmatpush3.msra.mxu0 %v2542_v53  ;;  %5207 = vmatprep.mubr.msk.f32.mxu0 %vm5453_vm13, %v5450_v28  ;;  %v3239_v55 = vmul.f32 %v5403_v52, %v6123_v19  ;;  %v4790_v52 = vld [vmem:[%s6331_s13 + $0x60] sm:$0xff] }
 0xec9   :  { %5215 = vmatprep.subr.mxu0 %v5450_v28  ;;  %v3238_v56 = vmul.f32 %v5405_v54, %v6126_v30 }
 0xeca   :  { %v2543_v57 = vld [vmem:[#allocation3 + $0xb0] sm:$0xff] }
 0xecb   :  { %5208 = vmatmul.mubr.msk.f32.vlgmr.msra.gmra.mxu0 %vm427_vm12, %v3238_v56  ;;  %5211 = vmatpush3.msra.mxu1 %v2543_v57 }
 0xecc   :  { %v5407_v59 = vpop.eup %5406  ;;  %5216 = vmatpush3.msra.mxu0 %v2544_v58  ;;  %5213 = vmatmul.mubr.msk.f32.vlgmr.msra.gmra.mxu1 %vm427_vm12, %v3239_v55 }
 0xecd   :  { %5217 = vmatprep.mubr.msk.f32.mxu0 %vm5453_vm13, %v5450_v28  ;;  %v3240_v60 = vmul.f32 %v5407_v59, %v6132_v24  ;;  %5220 = vmatprep.subr.mxu1 %v4769_v2 }
 0xece   :  { %5221 = vmatpush3.msra.mxu1 %v4769_v2 }
 0xecf   :  { %5218 = vmatmul.mubr.msk.f32.vlgmr.msra.gmra.mxu0 %vm427_vm12, %v3240_v60  ;;  %5222 = vmatprep.subr.mxu1 %v4768_v3  ;;  %v4776_v60 = vld [vmem:[%s6327_s9 + $0x1] ss:$0 sm:$0xff] }
 0xed0   :  { %5223 = vmatpush3.msra.mxu1 %v4768_v3 }
 0xed1   :  { %5224 = vmatprep.subr.mxu1 %v4767_v5 }
 0xed2   :  { %5225 = vmatpush3.msra.mxu1 %v4767_v5  ;;  %v4789_v5 = vld [vmem:[%s6331_s13 + $0x58] sm:$0xff] }
 0xed3   :  { %5226 = vmatprep.subr.mxu1 %v4766_v9 }
 0xed4   :  { %5227 = vmatpush3.msra.mxu1 %v4766_v9  ;;  %v4783_v9 = vld [vmem:[%s6330_s12 + $0x1] ss:$0 sm:$0xff] }
 0xed5   :  { %5242 = vmatprep.subr.mxu1 %v4793_v49 }
 0xf7a   :  { %v3310_v61 = vpop.f32.mrf.mxu1 }
 0xf7b   :  { %3825 = vst.msk [vmem:[#allocation4] sm:$0xff] %vm427_vm12, %v3310_v61 }
 0xf7c   :  { %v5184_v62 = vpop.f32.mrf.mxu1 }
 0xf7d   :  { %v4777_v62 = vld [vmem:[%s6328_s10 + $0x1] ss:$0 sm:$0xff] }
 0xf7e   :  { %v3383_v63 = vpop.f32.mrf.mxu0 }
 0xf7f   :  { %3826 = vst.msk [vmem:[#allocation4 + $0x8] sm:$0xff] %vm427_vm12, %v3383_v63 }
 0xf80   :  { %v5189_v0 = vpop.f32.mrf.mxu0 }
 0xf82   :  { %v3456_v1 = vpop.f32.mrf.mxu1 }
 0xf83   :  { %3829 = vrot.lane.b32.xlu0 %v3456_v1, %s6374_s5 }
 0xf84   :  { %v5194_v4 = vpop.f32.mrf.mxu1 }
 0xf86   :  { %v3602_v6 = vpop.f32.mrf.mxu1 }
 0xf87   :  { %v3529_v7 = vpop.f32.mrf.mxu0  ;;  %3839 = vrot.lane.b32.xlu0 %v3602_v6, %s6375_s29  ;;  %v4788_v6 = vld [vmem:[%s6331_s13 + $0x50] sm:$0xff] }
 0xf88   :  { %3831 = vrot.lane.b32.xlu1 %v3529_v7, %s6374_s5  ;;  %v5204_v8 = vpop.f32.mrf.mxu1  ;;  %v4787_v7 = vld [vmem:[%s6331_s13 + $0x48] sm:$0xff] }
 0xf89   :  { %v5199_v10 = vpop.f32.mrf.mxu0  ;;  %v4786_v8 = vld [vmem:[%s6331_s13 + $0x40] sm:$0xff] }
 0xf8b   :  { %v3675_v11 = vpop.f32.mrf.mxu0 }
 0xf8c   :  { %v3748_v12 = vpop.f32.mrf.mxu1  ;;  %3841 = vrot.lane.b32.xlu1 %v3675_v11, %s6375_s29 }
 0xf8d   :  { %3849 = vrot.lane.b32.xlu0 %v3748_v12, %s6376_s27  ;;  %v5209_v13 = vpop.f32.mrf.mxu0 }
 0xf8e   :  { %v5214_v14 = vpop.f32.mrf.mxu1 }
 0xf8f   :  { %v3821_v15 = vpop.f32.mrf.mxu0 }
 0xf90   :  { %3851 = vrot.lane.b32.xlu1 %v3821_v15, %s6376_s27 }
 0xf91   :  { %v5219_v16 = vpop.f32.mrf.mxu0 }
 0xf92   :  { %v4795_v16 = vld [vmem:[%s6332_s14 + $0x1] ss:$0 sm:$0xff] }
 0xff5   :  { %v3830_v17 = vpop.permute.xlu0 %3829 }
 0xff6   :  { %3835 = vst.msk [vmem:[#allocation4] sm:$0xff] %vm1887_vm14, %v3830_v17 }
 0xff9   :  { %v3840_v29 = vpop.permute.xlu0 %3839 }
 0xffa   :  { %3845 = vst.msk [vmem:[#allocation4] sm:$0xff] %vm1898_vm15, %v3840_v29  ;;  %v3832_v18 = vpop.permute.xlu1 %3831 }
 0xffb   :  { %3836 = vst.msk [vmem:[#allocation4 + $0x8] sm:$0xff] %vm1887_vm14, %v3832_v18 }
 0xffe   :  { %v3842_v19 = vpop.permute.xlu1 %3841 }
 0xfff   :  { %3846 = vst.msk [vmem:[#allocation4 + $0x8] sm:$0xff] %vm1898_vm15, %v3842_v19  ;;  %v3850_v30 = vpop.permute.xlu0 %3849 }
0x1000   :  { %3855 = vst.msk [vmem:[#allocation4] sm:$0xff] %vm1909_vm1, %v3850_v30 }
0x1002   :  { %v3852_v20 = vpop.permute.xlu1 %3851 }
0x1003   :  { %3856 = vst.msk [vmem:[#allocation4 + $0x8] sm:$0xff] %vm1909_vm1, %v3852_v20 }
0x1007   :  { %v3857_v23 = vld [vmem:[#allocation4] sm:$0xff] }
0x1008   :  { %5228 = vmatprep.mubr.msk.f32.mxu1 %vm340_vm10, %v3857_v23 }
0x100a   :  { %v3858_v24 = vld [vmem:[#allocation4 + $0x8] sm:$0xff] }
0x100b   :  { %5229 = vmatmul.mubr.msk.f32.vlgmr.msra.gmra.mxu1 %vm340_vm10, %v3858_v24 }
0x100c   :  { %5243 = vmatpush3.msra.mxu1 %v4793_v49 }
0x100d   :  { %5244 = vmatprep.subr.mxu1 %v4792_v50 }
0x100e   :  { %5245 = vmatpush3.msra.mxu1 %v4792_v50 }
0x100f   :  { %5246 = vmatprep.subr.mxu1 %v4791_v51 }
0x1010   :  { %5247 = vmatpush3.msra.mxu1 %v4791_v51 }
0x1011   :  { %5248 = vmatprep.subr.mxu1 %v4790_v52 }
0x1012   :  { %5249 = vmatpush3.msra.mxu1 %v4790_v52  ;;  %v4801_v52 = vld [vmem:[%s6334_s16 + $0x1] ss:$0 sm:$0xff] }
0x1013   :  { %5250 = vmatprep.subr.mxu1 %v4789_v5 }
0x1014   :  { %5251 = vmatpush3.msra.mxu1 %v4789_v5 }
0x1015   :  { %5252 = vmatprep.subr.mxu1 %v4788_v6 }
0x1016   :  { %5253 = vmatpush3.msra.mxu1 %v4788_v6 }
0x1017   :  { %5254 = vmatprep.subr.mxu1 %v4787_v7 }
0x1018   :  { %5255 = vmatpush3.msra.mxu1 %v4787_v7 }
0x1019   :  { %5256 = vmatprep.subr.mxu1 %v4786_v8 }
0x101a   :  { %5257 = vmatpush3.msra.mxu1 %v4786_v8 }
0x101b   :  { %5282 = vmatprep.subr.mxu1 %v5450_v28 }
0x10cb   :  { %v5230_v26 = vpop.f32.mrf.mxu1 }
0x10cc   :  { %v3950_v22 = vadd.f32 %v5230_v26, %v4771_v25 }
0x10cd   :  { %v3944_v21 = vpop.f32.mrf.mxu1 }
0x10ce   :  { %v3945_v27 = vadd.f32 %v4771_v25, %v3944_v21  ;;  %v3954_v31 = vadd.f32 %v3950_v22, %v5973_v39 }
0x10d0   :  { %v3962_v32 = vsel %vm340_vm10, %v3954_v31, 0.0  ;;  %v3953_v33 = vadd.f32 %v3945_v27, %v5971_v38  ;;  %v4781_v38 = vld [vmem:[%s6329_s11 + $0x38] sm:$0xff] }
0x10d1   :  { %3963 = vadd.xlane.f32.xlu1 %v3962_v32  ;;  %5231 = vmatprep.subr.mxu0 %v4781_v38 }
0x10d2   :  { %v3959_v34 = vsel %vm340_vm10, %v3953_v33, 0.0  ;;  %5232 = vmatpush3.msra.mxu0 %v4781_v38 }
0x10d3   :  { %3960 = vadd.xlane.f32.xlu0 %v3959_v34  ;;  %5233 = vmatprep.subr.mxu0 %v4780_v44 }
0x10d4   :  { %5234 = vmatpush3.msra.mxu0 %v4780_v44 }
0x10d5   :  { %5235 = vmatprep.subr.mxu0 %v4779_v47 }
0x10d6   :  { %5236 = vmatpush3.msra.mxu0 %v4779_v47  ;;  %v4800_v47 = vld [vmem:[%s6333_s15 + $0x1] ss:$0 sm:$0xff] }
0x10d7   :  { %5237 = vmatprep.subr.mxu0 %v4778_v48 }
0x10d8   :  { %5238 = vmatpush3.msra.mxu0 %v4778_v48 }
0x115a   :  { %v3964_v35 = vpop.xlane.xlu1 %3963 }
0x115b   :  { %v3966_v45 = vmul.f32 0.03125, %v3964_v35 }
0x115c   :  { %v3961_v46 = vpop.xlane.xlu0 %3960 }
0x115d   :  { %v3965_v36 = vmul.f32 0.03125, %v3961_v46  ;;  %v3968_v37 = vsub.f32 %v3954_v31, %v3966_v45  ;;  %v4246_v45 = vld [vmem:[%s6335_s17 + $0x18] sm:$0xff]  ;;  %v4245_v46 = vld [vmem:[%s6335_s17 + $0x10] sm:$0xff] }
0x115e   :  { %5261 = vmatprep.subr.mxu0 %v4246_v45 }
0x115f   :  { %v3967_v40 = vsub.f32 %v3953_v33, %v3965_v36  ;;  %v3970_v43 = vmul.f32 %v3968_v37, %v3968_v37  ;;  %v4244_v36 = vld [vmem:[%s6335_s17 + $0x8] sm:$0xff] }
0x1161   :  { %v3969_v41 = vmul.f32 %v3967_v40, %v3967_v40  ;;  %v3974_v39 = vsel %vm340_vm10, %v3970_v43, 0.0 }
0x1163   :  { %v3971_v42 = vsel %vm340_vm10, %v3969_v41, 0.0 }
0x1164   :  { %3972 = vadd.xlane.f32.xlu0 %v3971_v42 }
0x1168   :  { %3975 = vadd.xlane.f32.xlu0 %v3974_v39 }
0x11ed   :  { %v3973_v53 = vpop.xlane.xlu0 %3972 }
0x11ee   :  { %v3977_v54 = vmul.f32 0.03125, %v3973_v53 }
0x11f0   :  { %v3979_v55 = vadd.f32 1e-05, %v3977_v54 }
0x11f1   :  { %v3976_v56 = vpop.xlane.xlu0 %3975 }
0x11f2   :  { %5408 = vrsqrt.f32 %v3979_v55  ;;  %v3978_v57 = vmul.f32 0.03125, %v3976_v56  ;;  %v4338_v56 = vld [vmem:[#allocation5] sm:$0x1] }
0x11f4   :  { %v3980_v58 = vadd.f32 1e-05, %v3978_v57  ;;  %v5466_v57 = vmov 0  }
0x11f5   :  { %5310 = vset.pattern.permute.xlu1 %v5466_v57  ;;  %5311 = vset.pattern.permute.xlu0 %v5466_v57 }
0x11f6   :  { %5410 = vrsqrt.f32 %v3980_v58 }
0x11ff   :  { %v5409_v59 = vpop.eup %5408 }
0x1200   :  { %v3983_v61 = vmul.f32 %v5409_v59, %v3967_v40  ;;  %v4802_v59 = vld [vmem:[%s6336_s18] ss:$0 sm:$0xff]  ;;  %s5467_s18 = smov [#allocation6]  }
0x1202   :  { %v3991_v63 = vmul.f32 %v4776_v60, %v3983_v61 }
0x1203   :  { %v5411_v0 = vpop.eup %5410 }
0x1204   :  { %v3984_v1 = vmul.f32 %v5411_v0, %v3968_v37  ;;  %v3999_v2 = vadd.f32 %v4777_v62, %v3991_v63  ;;  %v4243_v37 = vld [vmem:[%s6335_s17] sm:$0xff] }
0x1205   :  { %v4337_v0 = vld [vmem:[%s6337_s19] sm:$0x1]  ;;  %s4680_s19 = sshll.u32 %s5467_s18, 4  ;;  %s4681_s19 = int_to_ptr.vmem [resolvable:$true] %s4680_s19 }
0x1206   :  { %v3992_v3 = vmul.f32 %v4776_v60, %v3984_v1  ;;  %5239 = vmatprep.mubr.msk.f32.mxu0 %vm340_vm10, %v3999_v2  ;;  %s5428_s8 = scalar_lea.vmem %s4681_s19, 32  ;;  %p5433_p1 = scmp.lt.s32.totalorder %s4681_s19, %s4681_s19 }
0x1207   :  { %p5429_p0 = scmp.ne.s32.totalorder %s4681_s19, %s5428_s8  ;;  %p5434_p2 = scmp.lt.s32.totalorder %s5428_s8, %s5428_s8 }
0x1208   :  { %v4000_v4 = vadd.f32 %v4777_v62, %v3992_v3 }
0x1209   :  { %p5435_p3 = por %p5434_p2, %p5433_p1 }
0x120a   :  { %5240 = vmatmul.mubr.msk.f32.vlgmr.msra.gmra.mxu0 %vm340_vm10, %v4000_v4 }
0x120b   :  { %5262 = vmatpush3.msra.mxu0 %v4246_v45  ;;  %p5436_p4 = pnand %p5435_p3, %p5429_p0 }
0x120c   :  { %5263 = vmatprep.subr.mxu0 %v4245_v46 }
0x120d   :  { %5264 = vmatpush3.msra.mxu0 %v4245_v46 }
0x120e   :  { %5265 = vmatprep.subr.mxu0 %v4244_v36 }
0x120f   :  { %5266 = vmatpush3.msra.mxu0 %v4244_v36 }
0x1210   :  { %5267 = vmatprep.subr.mxu0 %v4243_v37 }
0x1211   :  { %5268 = vmatpush3.msra.mxu0 %v4243_v37 }
0x1212   :  { %5272 = vmatprep.subr.mxu0 %v5450_v28 }
0x12ca   :  { %v5241_v10 = vpop.f32.mrf.mxu0 }
0x12cb   :  { %v4092_v11 = vadd.f32 %v5241_v10, %v4783_v9 }
0x12cc   :  { %v4086_v12 = vpop.f32.mrf.mxu0 }
0x12cd   :  { %v4087_v13 = vadd.f32 %v4783_v9, %v4086_v12  ;;  %v4096_v15 = vmax.f32 %v4092_v11, 0.0 }
0x12cf   :  { %v4095_v14 = vmax.f32 %v4087_v13, 0.0 }
0x12d1   :  { %5258 = vmatprep.mubr.msk.f32.mxu1 %vm88_vm0, %v4095_v14 }
0x12d2   :  { %5259 = vmatmul.mubr.msk.f32.vlgmr.msra.gmra.mxu1 %vm88_vm0, %v4096_v15 }
0x12d3   :  { %5284 = vmatprep.mubr.msk.f32.mxu1 %vm5453_vm13, %v5450_v28 }
0x1392   :  { %v5260_v17 = vpop.f32.mrf.mxu1 }
0x1393   :  { %v4192_v29 = vadd.f32 %v5260_v17, %v4795_v16 }
0x1394   :  { %v4186_v18 = vpop.f32.mrf.mxu1 }
0x1395   :  { %v4196_v19 = vadd.f32 %v4192_v29, %v4000_v4  ;;  %v4187_v30 = vadd.f32 %v4795_v16, %v4186_v18 }
0x1397   :  { %v4195_v20 = vadd.f32 %v4187_v30, %v3999_v2  ;;  %v4204_v23 = vsel %vm340_vm10, %v4196_v19, 0.0  ;;  %v4344_v2 = vlaneseq }
0x1398   :  { %4205 = vadd.xlane.f32.xlu0 %v4204_v23 }
0x1399   :  { %v4201_v24 = vsel %vm340_vm10, %v4195_v20, 0.0  ;;  %v4345_v3 = vshrl.u32 %v4344_v2, 7 }
0x139a   :  { %4202 = vadd.xlane.f32.xlu1 %v4201_v24 }
0x139b   :  { %v4346_v4 = vsub.s32 0, %v4345_v3 }
0x1421   :  { %v4206_v25 = vpop.xlane.xlu0 %4205 }
0x1422   :  { %v4208_v26 = vmul.f32 0.03125, %v4206_v25 }
0x1423   :  { %v4203_v22 = vpop.xlane.xlu1 %4202 }
0x1424   :  { %v4210_v21 = vsub.f32 %v4196_v19, %v4208_v26  ;;  %v4207_v27 = vmul.f32 0.03125, %v4203_v22 }
0x1426   :  { %v4209_v31 = vsub.f32 %v4195_v20, %v4207_v27  ;;  %v4212_v32 = vmul.f32 %v4210_v21, %v4210_v21 }
0x1428   :  { %v4216_v33 = vsel %vm340_vm10, %v4212_v32, 0.0  ;;  %v4211_v34 = vmul.f32 %v4209_v31, %v4209_v31 }
0x1429   :  { %4217 = vadd.xlane.f32.xlu0 %v4216_v33 }
0x142a   :  { %v4213_v35 = vsel %vm340_vm10, %v4211_v34, 0.0 }
0x142b   :  { %4214 = vadd.xlane.f32.xlu1 %v4213_v35 }
0x143c   :  { %4341 = vperm.xlu1 %5310, %v4338_v56  }
0x14b2   :  { %v4218_v40 = vpop.xlane.xlu0 %4217 }
0x14b3   :  { %v4220_v41 = vmul.f32 0.03125, %v4218_v40 }
0x14b4   :  { %v4215_v42 = vpop.xlane.xlu1 %4214 }
0x14b5   :  { %v4222_v43 = vadd.f32 1e-05, %v4220_v41  ;;  %v4219_v39 = vmul.f32 0.03125, %v4215_v42 }
0x14b7   :  { %5412 = vrsqrt.f32 %v4222_v43  ;;  %v4221_v38 = vadd.f32 1e-05, %v4219_v39 }
0x14b8   :  { %v4342_v5 = vpop.permute.xlu1 %4341 }
0x14b9   :  { %5414 = vrsqrt.f32 %v4221_v38  ;;  %v4347_v8 = vrot.slane %v4342_v5, %v4346_v4 }
0x14c4   :  { %v5413_v44 = vpop.eup %5412 }
0x14c5   :  { %v4226_v48 = vmul.f32 %v5413_v44, %v4210_v21 }
0x14c6   :  { %v5415_v49 = vpop.eup %5414 }
0x14c7   :  { %v4225_v50 = vmul.f32 %v5415_v49, %v4209_v31  ;;  %v4234_v51 = vmul.f32 %v4800_v47, %v4226_v48 }
0x14c9   :  { %v4233_v53 = vmul.f32 %v4800_v47, %v4225_v50  ;;  %v4242_v55 = vadd.f32 %v4801_v52, %v4234_v51 }
0x14cb   :  { %v4241_v54 = vadd.f32 %v4801_v52, %v4233_v53 }
0x14cd   :  { %5269 = vmatprep.mubr.msk.f32.mxu0 %vm340_vm10, %v4241_v54  ;;  %5283 = vmatpush3.msra.mxu1 %v4241_v54 }
0x14ce   :  { %5270 = vmatmul.mubr.msk.f32.vlgmr.msra.gmra.mxu0 %vm340_vm10, %v4242_v55 }
0x14cf   :  { %5274 = vmatprep.mubr.msk.f32.mxu0 %vm5453_vm13, %v5450_v28 }
0x158e   :  { %v5271_v58 = vpop.f32.mrf.mxu0 }
0x158f   :  { %v4332_v62 = vadd.f32 %v5271_v58, %v4802_v59 }
0x1590   :  { %v4326_v60 = vpop.f32.mrf.mxu0 }
0x1591   :  { %v4327_v61 = vadd.f32 %v4802_v59, %v4326_v60 }
0x1593   :  { %5416 = vtanh.f32 %v4327_v61 }
0x1594   :  { %5418 = vtanh.f32 %v4332_v62 }
0x15a0   :  { %v5417_v63 = vpop.eup %5416 }
0x15a1   :  { %5273 = vmatpush3.xpose.msk.msra.mxu0 %vm88_vm0, %v5417_v63  ;;  %v5419_v1 = vpop.eup %5418 }
0x15a2   :  { %5277 = vmatprep.subr.mxu0 %v5450_v28 }
0x15a4   :  { %5275 = vmatmul.mubr.msk.f32.vlgmr.msra.gmra.mxu0 %vm88_vm0, %v4337_v0 }
0x15a5   :  { %5278 = vmatpush3.xpose.msk.msra.mxu0 %vm88_vm0, %v5419_v1  ;;  %5279 = vmatprep.mubr.msk.f32.mxu0 %vm5453_vm13, %v5450_v28 }
0x15a6   :  { %5287 = vmatprep.subr.mxu0 %v5450_v28 }
0x15a8   :  { %5280 = vmatmul.mubr.msk.f32.vlgmr.msra.gmra.mxu0 %vm88_vm0, %v4337_v0  ;;  %vm4669_vm0 = vcmask 1041409  }
0x15a9   :  { %5288 = vmatpush3.msra.mxu0 %v4242_v55  ;;  %5289 = vmatprep.mubr.msk.f32.mxu0 %vm5453_vm13, %v5450_v28 }
0x1664   :  { %v4420_v6 = vpop.f32.mrf.mxu0 }
0x1665   :  { %v4421_v12 = vadd.f32 %v4420_v6, %v4347_v8 }
0x1666   :  { %v5276_v7 = vpop.f32.mrf.mxu0 }
0x1667   :  { %v4498_v14 = vsel %vm4497_vm2, %v4421_v12, -inf }
0x1668   :  { %v4493_v9 = vpop.f32.mrf.mxu0 }
0x1669   :  { %v4494_v10 = vadd.f32 %v4493_v9, %v4347_v8 }
0x166a   :  { %v5281_v11 = vpop.f32.mrf.mxu0 }
0x166b   :  { %v4501_v13 = vsel %vm4497_vm2, %v4494_v10, -inf }
0x166c   :  { %4502 = vmax.xlane.f32.xlu0 %v4501_v13 }
0x1670   :  { %4499 = vmax.xlane.f32.xlu0 %v4498_v14 }
0x16f5   :  { %v4503_v15 = vpop.xlane.xlu0 %4502 }
0x16f6   :  { %v4505_v28 = vsub.f32 %v4494_v10, %v4503_v15 }
0x16f8   :  { %v4508_v16 = vmul.f32 1.442695, %v4505_v28 }
0x16f9   :  { %v4500_v17 = vpop.xlane.xlu0 %4499 }
0x16fa   :  { %5420 = vpow2.f32 %v4508_v16  ;;  %v4504_v29 = vsub.f32 %v4421_v12, %v4500_v17 }
0x16fc   :  { %v4506_v18 = vmul.f32 1.442695, %v4504_v29 }
0x16fe   :  { %5422 = vpow2.f32 %v4506_v18 }
0x1707   :  { %v5421_v19 = vpop.eup %5420 }
0x1708   :  { %v4513_v30 = vsel %vm4497_vm2, %v5421_v19, 0.0 }
0x1709   :  { %4514 = vadd.xlane.f32.xlu0 %v4513_v30 }
0x170b   :  { %v5423_v20 = vpop.eup %5422 }
0x170c   :  { %v4510_v23 = vsel %vm4497_vm2, %v5423_v20, 0.0 }
0x170d   :  { %4511 = vadd.xlane.f32.xlu0 %v4510_v23 }
0x1792   :  { %v4515_v24 = vpop.xlane.xlu0 %4514 }
0x1793   :  { %5424 = vrcp.f32 %v4515_v24 }
0x1796   :  { %v4512_v25 = vpop.xlane.xlu0 %4511 }
0x1797   :  { %5426 = vrcp.f32 %v4512_v25 }
0x17a0   :  { %v5425_v26 = vpop.eup %5424 }
0x17a1   :  { %v4519_v22 = vmul.f32 %v5425_v26, %v5421_v19 }
0x17a3   :  { %5290 = vmatmul.mubr.msk.f32.vlgmr.msra.gmra.mxu0 %vm427_vm12, %v4519_v22 }
0x17a4   :  { %v5427_v21 = vpop.eup %5426 }
0x17a5   :  { %v4518_v27 = vmul.f32 %v5427_v21, %v5423_v20 }
0x17a7   :  { %5285 = vmatmul.mubr.msk.f32.vlgmr.msra.gmra.mxu1 %vm427_vm12, %v4518_v27 }
0x1863   :  { %v4662_v31 = vpop.f32.mrf.mxu0 }
0x1864   :  { %v4668_v33 = vrot.slane %v4662_v31, 7 }
0x1865   :  { %v5291_v32 = vpop.f32.mrf.mxu0 }
0x1867   :  { %v4589_v34 = vpop.f32.mrf.mxu1 }
0x1868   :  { %v4670_v35 = vsel %vm4669_vm0, %v4668_v33, %v4589_v34 }
0x1869   :  { %v5286_v45 = vpop.f32.mrf.mxu1  ;;  %4673 = vst.msk [vmem:[#allocation6] sm:$0x3] %vm4672_vm3, %v4670_v35 }
0x186a   :  { %5439 = shalt.err (!%p5436_p4)
}
0x186b   :  { %4683 = dma.vmem_to_hbm [thread:$0]  %s4681_s19, 32, %s6339_s21, [#allocation7]  }
0x186c   :  { %5448 = dma.done.wait [#allocation7], 32  }
0x186d   :  { %5449 = vsyncadd [#allocation7], 4294967264 }
0x186e   :  { %4687 = vsyncpa [#allocation7], 1 }

</bundles_post_ra>
